<compile_context>
chip_gen: v6e
topology: v6e:2x2x1
jax: 0.10.0
libtpu: 0.0.40
codegen_flags: <defaults>
</compile_context>

<pallas_src>
import functools
import math

import jax
import jax.numpy as jnp
from jax.experimental import pallas as pl
from jax.experimental.pallas import tpu as pltpu

D_MODEL = 64
N_HEAD = 2
HEAD_DIM = D_MODEL // N_HEAD
D_FF = 8
SEQ_LEN = 41          # fixed by fc input size: 1312 * 2 = 2624 = 41 * 64
LN_EPS = 1e-5
BN_EPS = 1e-5


# ---------------------------------------------------------------------------
# Single fused kernel: one batch element per grid step.
# ---------------------------------------------------------------------------
def _net_kernel(x_ref, xf_ref,
                w1_ref, w2x_ref, w2y_ref, w3_ref,
                wqkv_ref, bqkv_ref, wo_ref,
                w1ff_ref, b1ff_ref, w2ff_ref,
                fc1w_ref, fc2w_ref, fc2b_ref, vec_ref,
                o_ref):
    L = x_ref.shape[1]
    x = x_ref[0]                      # (L, C_in)      -- this batch element
    xf = xf_ref[0]                    # (L, C_in)      -- flipped-batch element

    vecs = vec_ref[...]               # (10, 64) packed per-channel vectors
    b1, b2, b3 = vecs[0:1, :], vecs[1:2, :], vecs[2:3, :]   # folded conv+BN biases
    bo = vecs[3:4, :]                                        # attn out_proj bias
    g1, be1 = vecs[4:5, :], vecs[5:6, :]                     # LayerNorm1 gamma/beta
    b2ff = vecs[6:7, :]                                      # FF linear2 bias
    g2, be2 = vecs[7:8, :], vecs[8:9, :]                     # LayerNorm2 gamma/beta
    fc1b = vecs[9:10, :]                                     # fc1 bias

    # Shift matrices replace explicit zero-padding for the k=3 convolutions:
    #   (s_down @ a)[l] = a[l-1]  (zero row at l=0)
    #   (s_up   @ a)[l] = a[l+1]  (zero row at l=L-1)
    rows = jax.lax.broadcasted_iota(jnp.int32, (L, L), 0)
    cols = jax.lax.broadcasted_iota(jnp.int32, (L, L), 1)
    s_down = (cols == rows - 1).astype(jnp.float32)
    s_up = (cols == rows + 1).astype(jnp.float32)

    def tap_combine(zw, bias):
        # zw (L, 3*64): columns = [tap(-1) | tap(0) | tap(+1)], BN already folded
        left = jnp.dot(s_down, zw[:, 0:D_MODEL],
                       preferred_element_type=jnp.float32)
        right = jnp.dot(s_up, zw[:, 2 * D_MODEL:3 * D_MODEL],
                        preferred_element_type=jnp.float32)
        return jnp.maximum(left + zw[:, D_MODEL:2 * D_MODEL] + right + bias, 0.0)

    # --- conv1D(k=3, pad=1) + BN1 + ReLU on both branches (shared weights) ---
    w1 = w1_ref[...]                                         # (C_in, 192)
    xa = tap_combine(jnp.dot(x, w1, preferred_element_type=jnp.float32), b1)
    ya = tap_combine(jnp.dot(xf, w1, preferred_element_type=jnp.float32), b1)

    # --- conv2D(kernel=(2,3), pad=(0,1)) + BN2 + ReLU (branch dim = kh) ------
    zw = (jnp.dot(xa, w2x_ref[...], preferred_element_type=jnp.float32)
          + jnp.dot(ya, w2y_ref[...], preferred_element_type=jnp.float32))
    z2 = tap_combine(zw, b2)

    # --- conv1D_2 (k=1) + BN3 + ReLU -----------------------------------------
    z3 = jnp.maximum(
        jnp.dot(z2, w3_ref[...], preferred_element_type=jnp.float32) + b3, 0.0)

    # --- TransformerEncoderLayer (post-norm, ReLU FF, eval-mode dropout) -----
    # merged QKV projection; 1/sqrt(head_dim) is folded into the q columns.
    qkv = jnp.dot(z3, wqkv_ref[...], preferred_element_type=jnp.float32) + bqkv_ref[...]
    heads = []
    for h in range(N_HEAD):                                  # static, 2 heads
        q = qkv[:, h * HEAD_DIM:(h + 1) * HEAD_DIM]
        k = qkv[:, D_MODEL + h * HEAD_DIM:D_MODEL + (h + 1) * HEAD_DIM]
        v = qkv[:, 2 * D_MODEL + h * HEAD_DIM:2 * D_MODEL + (h + 1) * HEAD_DIM]
        s = jax.lax.dot_general(q, k, (((1,), (1,)), ((), ())),
                                preferred_element_type=jnp.float32)
        s = s - jnp.max(s, axis=-1, keepdims=True)
        e = jnp.exp(s)
        p = e * pl.reciprocal(jnp.sum(e, axis=-1, keepdims=True), approx=True)
        heads.append(jnp.dot(p, v, preferred_element_type=jnp.float32))
    attn = jnp.concatenate(heads, axis=-1)                   # (L, 64)
    attn = jnp.dot(attn, wo_ref[...], preferred_element_type=jnp.float32) + bo

    h1 = z3 + attn
    mu = jnp.mean(h1, axis=-1, keepdims=True)
    var = jnp.mean((h1 - mu) ** 2, axis=-1, keepdims=True)
    h1n = (h1 - mu) * jax.lax.rsqrt(var + LN_EPS) * g1 + be1

    ff = jnp.maximum(
        jnp.dot(h1n, w1ff_ref[...], preferred_element_type=jnp.float32) + b1ff_ref[...],
        0.0)
    ff = jnp.dot(ff, w2ff_ref[...], preferred_element_type=jnp.float32) + b2ff
    h2 = h1n + ff
    mu2 = jnp.mean(h2, axis=-1, keepdims=True)
    var2 = jnp.mean((h2 - mu2) ** 2, axis=-1, keepdims=True)
    t = (h2 - mu2) * jax.lax.rsqrt(var2 + LN_EPS) * g2 + be2   # (L, 64)

    # --- flatten (row-major, matches torch Flatten) + fc head ----------------
    flat = jnp.concatenate([t[l:l + 1, :] for l in range(L)], axis=1)  # (1, L*64)
    hfc = jnp.maximum(
        jnp.dot(flat, fc1w_ref[...], preferred_element_type=jnp.float32) + fc1b, 0.0)
    o_ref[0] = jnp.dot(hfc, fc2w_ref[...],
                       preferred_element_type=jnp.float32) + fc2b_ref[...]


# ---------------------------------------------------------------------------
# Wrapper: one pallas_call for the whole network.
# ---------------------------------------------------------------------------
def _full_spec(a):
    zeros = (0,) * a.ndim
    return pl.BlockSpec(a.shape, lambda b, _z=zeros: _z)


def forward(x, p):
    # x: (B, L, C_in) -- identical to the PyTorch call signature.
    B, L, cin = x.shape
    out_ch = p["fc2w"].shape[1]

    weights = [p["w1cat"], p["w2x"], p["w2y"], p["w3"],
               p["wqkv"], p["bqkv"], p["wo"],
               p["w1ff"], p["b1ff"], p["w2ff"],
               p["fc1w"], p["fc2w"], p["fc2b"], p["vec"]]

    in_specs = (
        [pl.BlockSpec((1, L, cin), lambda b: (b, 0, 0)),              # x[b]
         pl.BlockSpec((1, L, cin), lambda b: (B - 1 - b, 0, 0))]      # flip(x)[b]
        + [_full_spec(w) for w in weights])

    out = pl.pallas_call(
        _net_kernel,
        out_shape=jax.ShapeDtypeStruct((B, 1, out_ch), jnp.float32),
        grid=(B,),
        in_specs=in_specs,
        out_specs=pl.BlockSpec((1, 1, out_ch), lambda b: (b, 0, 0)),
        compiler_params=pltpu.CompilerParams(dimension_semantics=("parallel",)),
    )(x, x, *weights)
    return out.reshape(B, out_ch)


# ---------------------------------------------------------------------------
# Deterministic synthetic parameters (PyTorch-shaped) + host-side prep:
# fold BatchNorm into conv weights/biases, fold 1/sqrt(head_dim) into Wq,
# pre-transpose all Linear weights, pack the (64,)-wide vectors into one array.
# ---------------------------------------------------------------------------
def init_raw_params(key, in_channels, out_channels):
    ks = iter(jax.random.split(key, 64))
    nrm = lambda shape, s=0.1: (s * jax.random.normal(next(ks), shape)).astype(jnp.float32)
    uni = lambda shape: jax.random.uniform(next(ks), shape, jnp.float32)

    r = {}
    r["conv1_w"] = nrm((64, in_channels, 3)); r["conv1_b"] = nrm((64,))
    r["conv2d_w"] = nrm((64, 64, 2, 3));       r["conv2d_b"] = nrm((64,))
    r["conv3_w"] = nrm((64, 64, 1));           r["conv3_b"] = nrm((64,))
    for n in ("bn1", "bn2", "bn3"):            # eval-mode running stats
        r[n + "_g"] = 1.0 + nrm((64,))
        r[n + "_b"] = nrm((64,))
        r[n + "_m"] = nrm((64,))
        r[n + "_v"] = 1.0 + 0.1 * uni((64,))
    r["in_proj_w"] = nrm((3 * D_MODEL, D_MODEL)); r["in_proj_b"] = nrm((3 * D_MODEL,))
    r["out_proj_w"] = nrm((D_MODEL, D_MODEL));    r["out_proj_b"] = nrm((D_MODEL,))
    r["ln1_g"] = 1.0 + nrm((D_MODEL,)); r["ln1_b"] = nrm((D_MODEL,))
    r["lin1_w"] = nrm((D_FF, D_MODEL)); r["lin1_b"] = nrm((D_FF,))
    r["lin2_w"] = nrm((D_MODEL, D_FF)); r["lin2_b"] = nrm((D_MODEL,))
    r["ln2_g"] = 1.0 + nrm((D_MODEL,)); r["ln2_b"] = nrm((D_MODEL,))
    r["fc1_w"] = nrm((64, SEQ_LEN * D_MODEL)); r["fc1_b"] = nrm((64,))
    r["fc2_w"] = nrm((out_channels, 64));      r["fc2_b"] = nrm((out_channels,))
    return r


def prepare_params(r):
    def bn_fold(n):
        scale = r[n + "_g"] / jnp.sqrt(r[n + "_v"] + BN_EPS)
        shift = r[n + "_b"] - r[n + "_m"] * scale
        return scale, shift

    p = {}
    # conv1D + bn: weight columns ordered [tap(-1) | tap(0) | tap(+1)] x C_out
    s1, sh1 = bn_fold("bn1")
    cin = r["conv1_w"].shape[1]
    p["w1cat"] = (jnp.transpose(r["conv1_w"], (1, 2, 0)) * s1).reshape(cin, 3 * 64)
    b1 = r["conv1_b"] * s1 + sh1

    # conv2D + bn_2: kh=0 acts on the x-branch, kh=1 on the flipped branch
    s2, sh2 = bn_fold("bn2")
    p["w2x"] = (jnp.transpose(r["conv2d_w"][:, :, 0, :], (1, 2, 0)) * s2).reshape(64, 3 * 64)
    p["w2y"] = (jnp.transpose(r["conv2d_w"][:, :, 1, :], (1, 2, 0)) * s2).reshape(64, 3 * 64)
    b2 = r["conv2d_b"] * s2 + sh2

    # conv1D_2 + bn_3
    s3, sh3 = bn_fold("bn3")
    p["w3"] = r["conv3_w"][:, :, 0].T * s3
    b3 = r["conv3_b"] * s3 + sh3

    # transformer: merged QKV, softmax scale folded into the q columns
    sm = 1.0 / math.sqrt(HEAD_DIM)
    wqkv = r["in_proj_w"].T                                   # (64, 192)
    p["wqkv"] = jnp.concatenate([wqkv[:, :D_MODEL] * sm, wqkv[:, D_MODEL:]], axis=1)
    bqkv = r["in_proj_b"]
    p["bqkv"] = jnp.concatenate([bqkv[:D_MODEL] * sm, bqkv[D_MODEL:]]).reshape(1, -1)
    p["wo"] = r["out_proj_w"].T
    p["w1ff"] = r["lin1_w"].T
    p["b1ff"] = r["lin1_b"].reshape(1, -1)
    p["w2ff"] = r["lin2_w"].T

    # fc head
    p["fc1w"] = r["fc1_w"].T                                  # (2624, 64)
    p["fc2w"] = r["fc2_w"].T                                  # (64, out)
    p["fc2b"] = r["fc2_b"].reshape(1, -1)

    # packed (N, 64) per-channel vectors (cuts DMA/buffer count in the kernel)
    p["vec"] = jnp.stack([b1, b2, b3, r["out_proj_b"], r["ln1_g"], r["ln1_b"],
                          r["lin2_b"], r["ln2_g"], r["ln2_b"], r["fc1_b"]], axis=0)
    return jax.tree_util.tree_map(lambda a: a.astype(jnp.float32), p)


if __name__ == "__main__":
    in_channels, out_channels, B = 4, 8, 2
    key = jax.random.PRNGKey(0)
    k_param, k_x = jax.random.split(key)
    raw = init_raw_params(k_param, in_channels, out_channels)
    params = prepare_params(raw)
    x = jax.random.normal(k_x, (B, SEQ_LEN, in_channels), jnp.float32)

    out = jax.jit(forward)(x, params)
    out = jax.block_until_ready(out)
    assert out.shape == (B, out_channels), out.shape
    assert bool(jnp.all(jnp.isfinite(out)))
    print("KERNEL_OK")
</pallas_src>

<mosaic_0001>
module attributes {stable_mosaic.version = 11 : i64} {
  func.func @_net_kernel(%arg0: i32, %arg1: memref<1x41x4xf32, #tpu.memory_space<vmem>>, %arg2: memref<1x41x4xf32, #tpu.memory_space<vmem>>, %arg3: memref<4x192xf32, #tpu.memory_space<vmem>>, %arg4: memref<64x192xf32, #tpu.memory_space<vmem>>, %arg5: memref<64x192xf32, #tpu.memory_space<vmem>>, %arg6: memref<64x64xf32, #tpu.memory_space<vmem>>, %arg7: memref<64x192xf32, #tpu.memory_space<vmem>>, %arg8: memref<1x192xf32, #tpu.memory_space<vmem>>, %arg9: memref<64x64xf32, #tpu.memory_space<vmem>>, %arg10: memref<64x8xf32, #tpu.memory_space<vmem>>, %arg11: memref<1x8xf32, #tpu.memory_space<vmem>>, %arg12: memref<8x64xf32, #tpu.memory_space<vmem>>, %arg13: memref<2624x64xf32, #tpu.memory_space<vmem>>, %arg14: memref<64x8xf32, #tpu.memory_space<vmem>>, %arg15: memref<1x8xf32, #tpu.memory_space<vmem>>, %arg16: memref<10x64xf32, #tpu.memory_space<vmem>>, %arg17: memref<1x1x8xf32, #tpu.memory_space<vmem>>) attributes {dimension_semantics = [#tpu.dimension_semantics<parallel>], iteration_bounds = array<i64: 2>, scalar_prefetch = 0 : i64, scratch_operands = 0 : i64, tpu.core_type = #tpu.core_type<tc>, window_params = [{transform_indices = @transform_0, window_bounds = array<i64: 1, 41, 4>}, {transform_indices = @transform_1, window_bounds = array<i64: 1, 41, 4>}, {pipeline_mode = #tpu.pipeline_mode<synchronous>, transform_indices = @transform_2, window_bounds = array<i64: 4, 192>}, {pipeline_mode = #tpu.pipeline_mode<synchronous>, transform_indices = @transform_3, window_bounds = array<i64: 64, 192>}, {pipeline_mode = #tpu.pipeline_mode<synchronous>, transform_indices = @transform_4, window_bounds = array<i64: 64, 192>}, {pipeline_mode = #tpu.pipeline_mode<synchronous>, transform_indices = @transform_5, window_bounds = array<i64: 64, 64>}, {pipeline_mode = #tpu.pipeline_mode<synchronous>, transform_indices = @transform_6, window_bounds = array<i64: 64, 192>}, {pipeline_mode = #tpu.pipeline_mode<synchronous>, transform_indices = @transform_7, window_bounds = array<i64: 1, 192>}, {pipeline_mode = #tpu.pipeline_mode<synchronous>, transform_indices = @transform_8, window_bounds = array<i64: 64, 64>}, {pipeline_mode = #tpu.pipeline_mode<synchronous>, transform_indices = @transform_9, window_bounds = array<i64: 64, 8>}, {pipeline_mode = #tpu.pipeline_mode<synchronous>, transform_indices = @transform_10, window_bounds = array<i64: 1, 8>}, {pipeline_mode = #tpu.pipeline_mode<synchronous>, transform_indices = @transform_11, window_bounds = array<i64: 8, 64>}, {pipeline_mode = #tpu.pipeline_mode<synchronous>, transform_indices = @transform_12, window_bounds = array<i64: 2624, 64>}, {pipeline_mode = #tpu.pipeline_mode<synchronous>, transform_indices = @transform_13, window_bounds = array<i64: 64, 8>}, {pipeline_mode = #tpu.pipeline_mode<synchronous>, transform_indices = @transform_14, window_bounds = array<i64: 1, 8>}, {pipeline_mode = #tpu.pipeline_mode<synchronous>, transform_indices = @transform_15, window_bounds = array<i64: 10, 64>}, {transform_indices = @transform_16, window_bounds = array<i64: 1, 1, 8>}]} {
    %c0 = arith.constant 0 : index
    %c0_0 = arith.constant 0 : index
    %c0_1 = arith.constant 0 : index
    %0 = vector.load %arg1[%c0, %c0_0, %c0_1] : memref<1x41x4xf32, #tpu.memory_space<vmem>>, vector<1x41x4xf32>
    %1 = vector.shape_cast %0 : vector<1x41x4xf32> to vector<41x4xf32>
    %c0_2 = arith.constant 0 : index
    %c0_3 = arith.constant 0 : index
    %c0_4 = arith.constant 0 : index
    %2 = vector.load %arg2[%c0_2, %c0_3, %c0_4] : memref<1x41x4xf32, #tpu.memory_space<vmem>>, vector<1x41x4xf32>
    %3 = vector.shape_cast %2 : vector<1x41x4xf32> to vector<41x4xf32>
    %c0_5 = arith.constant 0 : index
    %c0_6 = arith.constant 0 : index
    %4 = vector.load %arg16[%c0_5, %c0_6] : memref<10x64xf32, #tpu.memory_space<vmem>>, vector<10x64xf32>
    %5 = vector.extract_strided_slice %4 {offsets = [0, 0], sizes = [1, 64], strides = [1, 1]} : vector<10x64xf32> to vector<1x64xf32>
    %6 = vector.extract_strided_slice %4 {offsets = [1, 0], sizes = [1, 64], strides = [1, 1]} : vector<10x64xf32> to vector<1x64xf32>
    %7 = vector.extract_strided_slice %4 {offsets = [2, 0], sizes = [1, 64], strides = [1, 1]} : vector<10x64xf32> to vector<1x64xf32>
    %8 = vector.extract_strided_slice %4 {offsets = [3, 0], sizes = [1, 64], strides = [1, 1]} : vector<10x64xf32> to vector<1x64xf32>
    %9 = vector.extract_strided_slice %4 {offsets = [4, 0], sizes = [1, 64], strides = [1, 1]} : vector<10x64xf32> to vector<1x64xf32>
    %10 = vector.extract_strided_slice %4 {offsets = [5, 0], sizes = [1, 64], strides = [1, 1]} : vector<10x64xf32> to vector<1x64xf32>
    %11 = vector.extract_strided_slice %4 {offsets = [6, 0], sizes = [1, 64], strides = [1, 1]} : vector<10x64xf32> to vector<1x64xf32>
    %12 = vector.extract_strided_slice %4 {offsets = [7, 0], sizes = [1, 64], strides = [1, 1]} : vector<10x64xf32> to vector<1x64xf32>
    %13 = vector.extract_strided_slice %4 {offsets = [8, 0], sizes = [1, 64], strides = [1, 1]} : vector<10x64xf32> to vector<1x64xf32>
    %14 = vector.extract_strided_slice %4 {offsets = [9, 0], sizes = [1, 64], strides = [1, 1]} : vector<10x64xf32> to vector<1x64xf32>
    %15 = tpu.iota {dimensions = array<i32: 0>} : vector<41x41xi32>
    %16 = tpu.iota {dimensions = array<i32: 1>} : vector<41x41xi32>
    %c1_i32 = arith.constant 1 : i32
    %17 = vector.broadcast %c1_i32 : i32 to vector<41x41xi32>
    %18 = arith.subi %15, %17 : vector<41x41xi32>
    %19 = arith.cmpi eq, %16, %18 : vector<41x41xi32>
    %20 = arith.extui %19 : vector<41x41xi1> to vector<41x41xi32>
    %21 = arith.sitofp %20 : vector<41x41xi32> to vector<41x41xf32>
    %c1_i32_7 = arith.constant 1 : i32
    %22 = vector.broadcast %c1_i32_7 : i32 to vector<41x41xi32>
    %23 = arith.addi %15, %22 : vector<41x41xi32>
    %24 = arith.cmpi eq, %16, %23 : vector<41x41xi32>
    %25 = arith.extui %24 : vector<41x41xi1> to vector<41x41xi32>
    %26 = arith.sitofp %25 : vector<41x41xi32> to vector<41x41xf32>
    %c0_8 = arith.constant 0 : index
    %c0_9 = arith.constant 0 : index
    %27 = vector.load %arg3[%c0_8, %c0_9] : memref<4x192xf32, #tpu.memory_space<vmem>>, vector<4x192xf32>
    %cst = arith.constant dense<0.000000e+00> : vector<41x192xf32>
    %28 = tpu.matmul %1, %27, %cst {dimension_numbers = #tpu.dot_dimension_numbers<[1], [0], [0], [1], [0, 0, 1, 1], [], []>} : vector<41x4xf32>, vector<4x192xf32>, vector<41x192xf32> -> vector<41x192xf32>
    %29 = vector.extract_strided_slice %28 {offsets = [0, 0], sizes = [41, 64], strides = [1, 1]} : vector<41x192xf32> to vector<41x64xf32>
    %cst_10 = arith.constant dense<0.000000e+00> : vector<41x64xf32>
    %30 = tpu.matmul %21, %29, %cst_10 {dimension_numbers = #tpu.dot_dimension_numbers<[1], [0], [0], [1], [0, 0, 1, 1], [], []>} : vector<41x41xf32>, vector<41x64xf32>, vector<41x64xf32> -> vector<41x64xf32>
    %31 = vector.extract_strided_slice %28 {offsets = [0, 128], sizes = [41, 64], strides = [1, 1]} : vector<41x192xf32> to vector<41x64xf32>
    %cst_11 = arith.constant dense<0.000000e+00> : vector<41x64xf32>
    %32 = tpu.matmul %26, %31, %cst_11 {dimension_numbers = #tpu.dot_dimension_numbers<[1], [0], [0], [1], [0, 0, 1, 1], [], []>} : vector<41x41xf32>, vector<41x64xf32>, vector<41x64xf32> -> vector<41x64xf32>
    %33 = vector.extract_strided_slice %28 {offsets = [0, 64], sizes = [41, 64], strides = [1, 1]} : vector<41x192xf32> to vector<41x64xf32>
    %34 = arith.addf %30, %33 : vector<41x64xf32>
    %35 = arith.addf %34, %32 : vector<41x64xf32>
    %36 = vector.broadcast %5 : vector<1x64xf32> to vector<41x64xf32>
    %37 = arith.addf %35, %36 : vector<41x64xf32>
    %cst_12 = arith.constant 0.000000e+00 : f32
    %38 = vector.broadcast %cst_12 : f32 to vector<41x64xf32>
    %39 = arith.maximumf %37, %38 : vector<41x64xf32>
    %cst_13 = arith.constant dense<0.000000e+00> : vector<41x192xf32>
    %40 = tpu.matmul %3, %27, %cst_13 {dimension_numbers = #tpu.dot_dimension_numbers<[1], [0], [0], [1], [0, 0, 1, 1], [], []>} : vector<41x4xf32>, vector<4x192xf32>, vector<41x192xf32> -> vector<41x192xf32>
    %41 = vector.extract_strided_slice %40 {offsets = [0, 0], sizes = [41, 64], strides = [1, 1]} : vector<41x192xf32> to vector<41x64xf32>
    %cst_14 = arith.constant dense<0.000000e+00> : vector<41x64xf32>
    %42 = tpu.matmul %21, %41, %cst_14 {dimension_numbers = #tpu.dot_dimension_numbers<[1], [0], [0], [1], [0, 0, 1, 1], [], []>} : vector<41x41xf32>, vector<41x64xf32>, vector<41x64xf32> -> vector<41x64xf32>
    %43 = vector.extract_strided_slice %40 {offsets = [0, 128], sizes = [41, 64], strides = [1, 1]} : vector<41x192xf32> to vector<41x64xf32>
    %cst_15 = arith.constant dense<0.000000e+00> : vector<41x64xf32>
    %44 = tpu.matmul %26, %43, %cst_15 {dimension_numbers = #tpu.dot_dimension_numbers<[1], [0], [0], [1], [0, 0, 1, 1], [], []>} : vector<41x41xf32>, vector<41x64xf32>, vector<41x64xf32> -> vector<41x64xf32>
    %45 = vector.extract_strided_slice %40 {offsets = [0, 64], sizes = [41, 64], strides = [1, 1]} : vector<41x192xf32> to vector<41x64xf32>
    %46 = arith.addf %42, %45 : vector<41x64xf32>
    %47 = arith.addf %46, %44 : vector<41x64xf32>
    %48 = vector.broadcast %5 : vector<1x64xf32> to vector<41x64xf32>
    %49 = arith.addf %47, %48 : vector<41x64xf32>
    %cst_16 = arith.constant 0.000000e+00 : f32
    %50 = vector.broadcast %cst_16 : f32 to vector<41x64xf32>
    %51 = arith.maximumf %49, %50 : vector<41x64xf32>
    %c0_17 = arith.constant 0 : index
    %c0_18 = arith.constant 0 : index
    %52 = vector.load %arg4[%c0_17, %c0_18] : memref<64x192xf32, #tpu.memory_space<vmem>>, vector<64x192xf32>
    %cst_19 = arith.constant dense<0.000000e+00> : vector<41x192xf32>
    %53 = tpu.matmul %39, %52, %cst_19 {dimension_numbers = #tpu.dot_dimension_numbers<[1], [0], [0], [1], [0, 0, 1, 1], [], []>} : vector<41x64xf32>, vector<64x192xf32>, vector<41x192xf32> -> vector<41x192xf32>
    %c0_20 = arith.constant 0 : index
    %c0_21 = arith.constant 0 : index
    %54 = vector.load %arg5[%c0_20, %c0_21] : memref<64x192xf32, #tpu.memory_space<vmem>>, vector<64x192xf32>
    %cst_22 = arith.constant dense<0.000000e+00> : vector<41x192xf32>
    %55 = tpu.matmul %51, %54, %cst_22 {dimension_numbers = #tpu.dot_dimension_numbers<[1], [0], [0], [1], [0, 0, 1, 1], [], []>} : vector<41x64xf32>, vector<64x192xf32>, vector<41x192xf32> -> vector<41x192xf32>
    %56 = arith.addf %53, %55 : vector<41x192xf32>
    %57 = vector.extract_strided_slice %56 {offsets = [0, 0], sizes = [41, 64], strides = [1, 1]} : vector<41x192xf32> to vector<41x64xf32>
    %cst_23 = arith.constant dense<0.000000e+00> : vector<41x64xf32>
    %58 = tpu.matmul %21, %57, %cst_23 {dimension_numbers = #tpu.dot_dimension_numbers<[1], [0], [0], [1], [0, 0, 1, 1], [], []>} : vector<41x41xf32>, vector<41x64xf32>, vector<41x64xf32> -> vector<41x64xf32>
    %59 = vector.extract_strided_slice %56 {offsets = [0, 128], sizes = [41, 64], strides = [1, 1]} : vector<41x192xf32> to vector<41x64xf32>
    %cst_24 = arith.constant dense<0.000000e+00> : vector<41x64xf32>
    %60 = tpu.matmul %26, %59, %cst_24 {dimension_numbers = #tpu.dot_dimension_numbers<[1], [0], [0], [1], [0, 0, 1, 1], [], []>} : vector<41x41xf32>, vector<41x64xf32>, vector<41x64xf32> -> vector<41x64xf32>
    %61 = vector.extract_strided_slice %56 {offsets = [0, 64], sizes = [41, 64], strides = [1, 1]} : vector<41x192xf32> to vector<41x64xf32>
    %62 = arith.addf %58, %61 : vector<41x64xf32>
    %63 = arith.addf %62, %60 : vector<41x64xf32>
    %64 = vector.broadcast %6 : vector<1x64xf32> to vector<41x64xf32>
    %65 = arith.addf %63, %64 : vector<41x64xf32>
    %cst_25 = arith.constant 0.000000e+00 : f32
    %66 = vector.broadcast %cst_25 : f32 to vector<41x64xf32>
    %67 = arith.maximumf %65, %66 : vector<41x64xf32>
    %c0_26 = arith.constant 0 : index
    %c0_27 = arith.constant 0 : index
    %68 = vector.load %arg6[%c0_26, %c0_27] : memref<64x64xf32, #tpu.memory_space<vmem>>, vector<64x64xf32>
    %cst_28 = arith.constant dense<0.000000e+00> : vector<41x64xf32>
    %69 = tpu.matmul %67, %68, %cst_28 {dimension_numbers = #tpu.dot_dimension_numbers<[1], [0], [0], [1], [0, 0, 1, 1], [], []>} : vector<41x64xf32>, vector<64x64xf32>, vector<41x64xf32> -> vector<41x64xf32>
    %70 = vector.broadcast %7 : vector<1x64xf32> to vector<41x64xf32>
    %71 = arith.addf %69, %70 : vector<41x64xf32>
    %cst_29 = arith.constant 0.000000e+00 : f32
    %72 = vector.broadcast %cst_29 : f32 to vector<41x64xf32>
    %73 = arith.maximumf %71, %72 : vector<41x64xf32>
    %c0_30 = arith.constant 0 : index
    %c0_31 = arith.constant 0 : index
    %74 = vector.load %arg7[%c0_30, %c0_31] : memref<64x192xf32, #tpu.memory_space<vmem>>, vector<64x192xf32>
    %cst_32 = arith.constant dense<0.000000e+00> : vector<41x192xf32>
    %75 = tpu.matmul %73, %74, %cst_32 {dimension_numbers = #tpu.dot_dimension_numbers<[1], [0], [0], [1], [0, 0, 1, 1], [], []>} : vector<41x64xf32>, vector<64x192xf32>, vector<41x192xf32> -> vector<41x192xf32>
    %c0_33 = arith.constant 0 : index
    %c0_34 = arith.constant 0 : index
    %76 = vector.load %arg8[%c0_33, %c0_34] : memref<1x192xf32, #tpu.memory_space<vmem>>, vector<1x192xf32>
    %77 = vector.broadcast %76 : vector<1x192xf32> to vector<41x192xf32>
    %78 = arith.addf %75, %77 : vector<41x192xf32>
    %79 = vector.extract_strided_slice %78 {offsets = [0, 0], sizes = [41, 32], strides = [1, 1]} : vector<41x192xf32> to vector<41x32xf32>
    %80 = vector.extract_strided_slice %78 {offsets = [0, 64], sizes = [41, 32], strides = [1, 1]} : vector<41x192xf32> to vector<41x32xf32>
    %81 = vector.extract_strided_slice %78 {offsets = [0, 128], sizes = [41, 32], strides = [1, 1]} : vector<41x192xf32> to vector<41x32xf32>
    %cst_35 = arith.constant dense<0.000000e+00> : vector<41x41xf32>
    %82 = tpu.matmul %79, %80, %cst_35 {dimension_numbers = #tpu.dot_dimension_numbers<[1], [1], [0], [0], [0, 0, 1, 0], [], []>} : vector<41x32xf32>, vector<41x32xf32>, vector<41x41xf32> -> vector<41x41xf32>
    %cst_36 = arith.constant dense<0xFF800000> : vector<41xf32>
    %83 = vector.multi_reduction <maximumf>, %82, %cst_36 [1] : vector<41x41xf32> to vector<41xf32>
    %84 = vector.shape_cast %83 : vector<41xf32> to vector<41x1xf32>
    %85 = vector.broadcast %84 : vector<41x1xf32> to vector<41x41xf32>
    %86 = arith.subf %82, %85 : vector<41x41xf32>
    %87 = math.exp %86 : vector<41x41xf32>
    %cst_37 = arith.constant dense<0.000000e+00> : vector<41xf32>
    %88 = vector.multi_reduction <add>, %87, %cst_37 [1] : vector<41x41xf32> to vector<41xf32>
    %89 = vector.shape_cast %88 : vector<41xf32> to vector<41x1xf32>
    %90 = tpu.reciprocal %89 {approx = true} : vector<41x1xf32> -> vector<41x1xf32>
    %91 = vector.broadcast %90 : vector<41x1xf32> to vector<41x41xf32>
    %92 = arith.mulf %87, %91 : vector<41x41xf32>
    %cst_38 = arith.constant dense<0.000000e+00> : vector<41x32xf32>
    %93 = tpu.matmul %92, %81, %cst_38 {dimension_numbers = #tpu.dot_dimension_numbers<[1], [0], [0], [1], [0, 0, 1, 1], [], []>} : vector<41x41xf32>, vector<41x32xf32>, vector<41x32xf32> -> vector<41x32xf32>
    %94 = vector.extract_strided_slice %78 {offsets = [0, 32], sizes = [41, 32], strides = [1, 1]} : vector<41x192xf32> to vector<41x32xf32>
    %95 = vector.extract_strided_slice %78 {offsets = [0, 96], sizes = [41, 32], strides = [1, 1]} : vector<41x192xf32> to vector<41x32xf32>
    %96 = vector.extract_strided_slice %78 {offsets = [0, 160], sizes = [41, 32], strides = [1, 1]} : vector<41x192xf32> to vector<41x32xf32>
    %cst_39 = arith.constant dense<0.000000e+00> : vector<41x41xf32>
    %97 = tpu.matmul %94, %95, %cst_39 {dimension_numbers = #tpu.dot_dimension_numbers<[1], [1], [0], [0], [0, 0, 1, 0], [], []>} : vector<41x32xf32>, vector<41x32xf32>, vector<41x41xf32> -> vector<41x41xf32>
    %cst_40 = arith.constant dense<0xFF800000> : vector<41xf32>
    %98 = vector.multi_reduction <maximumf>, %97, %cst_40 [1] : vector<41x41xf32> to vector<41xf32>
    %99 = vector.shape_cast %98 : vector<41xf32> to vector<41x1xf32>
    %100 = vector.broadcast %99 : vector<41x1xf32> to vector<41x41xf32>
    %101 = arith.subf %97, %100 : vector<41x41xf32>
    %102 = math.exp %101 : vector<41x41xf32>
    %cst_41 = arith.constant dense<0.000000e+00> : vector<41xf32>
    %103 = vector.multi_reduction <add>, %102, %cst_41 [1] : vector<41x41xf32> to vector<41xf32>
    %104 = vector.shape_cast %103 : vector<41xf32> to vector<41x1xf32>
    %105 = tpu.reciprocal %104 {approx = true} : vector<41x1xf32> -> vector<41x1xf32>
    %106 = vector.broadcast %105 : vector<41x1xf32> to vector<41x41xf32>
    %107 = arith.mulf %102, %106 : vector<41x41xf32>
    %cst_42 = arith.constant dense<0.000000e+00> : vector<41x32xf32>
    %108 = tpu.matmul %107, %96, %cst_42 {dimension_numbers = #tpu.dot_dimension_numbers<[1], [0], [0], [1], [0, 0, 1, 1], [], []>} : vector<41x41xf32>, vector<41x32xf32>, vector<41x32xf32> -> vector<41x32xf32>
    %109 = tpu.concatenate %93, %108 in 1 : vector<41x32xf32>, vector<41x32xf32> -> vector<41x64xf32>
    %c0_43 = arith.constant 0 : index
    %c0_44 = arith.constant 0 : index
    %110 = vector.load %arg9[%c0_43, %c0_44] : memref<64x64xf32, #tpu.memory_space<vmem>>, vector<64x64xf32>
    %cst_45 = arith.constant dense<0.000000e+00> : vector<41x64xf32>
    %111 = tpu.matmul %109, %110, %cst_45 {dimension_numbers = #tpu.dot_dimension_numbers<[1], [0], [0], [1], [0, 0, 1, 1], [], []>} : vector<41x64xf32>, vector<64x64xf32>, vector<41x64xf32> -> vector<41x64xf32>
    %112 = vector.broadcast %8 : vector<1x64xf32> to vector<41x64xf32>
    %113 = arith.addf %111, %112 : vector<41x64xf32>
    %114 = arith.addf %73, %113 : vector<41x64xf32>
    %cst_46 = arith.constant dense<0.000000e+00> : vector<41xf32>
    %115 = vector.multi_reduction <add>, %114, %cst_46 [1] : vector<41x64xf32> to vector<41xf32>
    %116 = vector.shape_cast %115 : vector<41xf32> to vector<41x1xf32>
    %cst_47 = arith.constant 6.400000e+01 : f32
    %117 = vector.broadcast %cst_47 : f32 to vector<41x1xf32>
    %118 = arith.divf %116, %117 : vector<41x1xf32>
    %119 = vector.broadcast %118 : vector<41x1xf32> to vector<41x64xf32>
    %120 = arith.subf %114, %119 : vector<41x64xf32>
    %121 = arith.mulf %120, %120 : vector<41x64xf32>
    %cst_48 = arith.constant dense<0.000000e+00> : vector<41xf32>
    %122 = vector.multi_reduction <add>, %121, %cst_48 [1] : vector<41x64xf32> to vector<41xf32>
    %123 = vector.shape_cast %122 : vector<41xf32> to vector<41x1xf32>
    %cst_49 = arith.constant 6.400000e+01 : f32
    %124 = vector.broadcast %cst_49 : f32 to vector<41x1xf32>
    %125 = arith.divf %123, %124 : vector<41x1xf32>
    %126 = vector.broadcast %118 : vector<41x1xf32> to vector<41x64xf32>
    %127 = arith.subf %114, %126 : vector<41x64xf32>
    %cst_50 = arith.constant 9.99999974E-6 : f32
    %128 = vector.broadcast %cst_50 : f32 to vector<41x1xf32>
    %129 = arith.addf %125, %128 : vector<41x1xf32>
    %130 = math.rsqrt %129 : vector<41x1xf32>
    %131 = vector.broadcast %130 : vector<41x1xf32> to vector<41x64xf32>
    %132 = arith.mulf %127, %131 : vector<41x64xf32>
    %133 = vector.broadcast %9 : vector<1x64xf32> to vector<41x64xf32>
    %134 = arith.mulf %132, %133 : vector<41x64xf32>
    %135 = vector.broadcast %10 : vector<1x64xf32> to vector<41x64xf32>
    %136 = arith.addf %134, %135 : vector<41x64xf32>
    %c0_51 = arith.constant 0 : index
    %c0_52 = arith.constant 0 : index
    %137 = vector.load %arg10[%c0_51, %c0_52] : memref<64x8xf32, #tpu.memory_space<vmem>>, vector<64x8xf32>
    %cst_53 = arith.constant dense<0.000000e+00> : vector<41x8xf32>
    %138 = tpu.matmul %136, %137, %cst_53 {dimension_numbers = #tpu.dot_dimension_numbers<[1], [0], [0], [1], [0, 0, 1, 1], [], []>} : vector<41x64xf32>, vector<64x8xf32>, vector<41x8xf32> -> vector<41x8xf32>
    %c0_54 = arith.constant 0 : index
    %c0_55 = arith.constant 0 : index
    %139 = vector.load %arg11[%c0_54, %c0_55] : memref<1x8xf32, #tpu.memory_space<vmem>>, vector<1x8xf32>
    %140 = vector.broadcast %139 : vector<1x8xf32> to vector<41x8xf32>
    %141 = arith.addf %138, %140 : vector<41x8xf32>
    %cst_56 = arith.constant 0.000000e+00 : f32
    %142 = vector.broadcast %cst_56 : f32 to vector<41x8xf32>
    %143 = arith.maximumf %141, %142 : vector<41x8xf32>
    %c0_57 = arith.constant 0 : index
    %c0_58 = arith.constant 0 : index
    %144 = vector.load %arg12[%c0_57, %c0_58] : memref<8x64xf32, #tpu.memory_space<vmem>>, vector<8x64xf32>
    %cst_59 = arith.constant dense<0.000000e+00> : vector<41x64xf32>
    %145 = tpu.matmul %143, %144, %cst_59 {dimension_numbers = #tpu.dot_dimension_numbers<[1], [0], [0], [1], [0, 0, 1, 1], [], []>} : vector<41x8xf32>, vector<8x64xf32>, vector<41x64xf32> -> vector<41x64xf32>
    %146 = vector.broadcast %11 : vector<1x64xf32> to vector<41x64xf32>
    %147 = arith.addf %145, %146 : vector<41x64xf32>
    %148 = arith.addf %136, %147 : vector<41x64xf32>
    %cst_60 = arith.constant dense<0.000000e+00> : vector<41xf32>
    %149 = vector.multi_reduction <add>, %148, %cst_60 [1] : vector<41x64xf32> to vector<41xf32>
    %150 = vector.shape_cast %149 : vector<41xf32> to vector<41x1xf32>
    %cst_61 = arith.constant 6.400000e+01 : f32
    %151 = vector.broadcast %cst_61 : f32 to vector<41x1xf32>
    %152 = arith.divf %150, %151 : vector<41x1xf32>
    %153 = vector.broadcast %152 : vector<41x1xf32> to vector<41x64xf32>
    %154 = arith.subf %148, %153 : vector<41x64xf32>
    %155 = arith.mulf %154, %154 : vector<41x64xf32>
    %cst_62 = arith.constant dense<0.000000e+00> : vector<41xf32>
    %156 = vector.multi_reduction <add>, %155, %cst_62 [1] : vector<41x64xf32> to vector<41xf32>
    %157 = vector.shape_cast %156 : vector<41xf32> to vector<41x1xf32>
    %cst_63 = arith.constant 6.400000e+01 : f32
    %158 = vector.broadcast %cst_63 : f32 to vector<41x1xf32>
    %159 = arith.divf %157, %158 : vector<41x1xf32>
    %160 = vector.broadcast %152 : vector<41x1xf32> to vector<41x64xf32>
    %161 = arith.subf %148, %160 : vector<41x64xf32>
    %cst_64 = arith.constant 9.99999974E-6 : f32
    %162 = vector.broadcast %cst_64 : f32 to vector<41x1xf32>
    %163 = arith.addf %159, %162 : vector<41x1xf32>
    %164 = math.rsqrt %163 : vector<41x1xf32>
    %165 = vector.broadcast %164 : vector<41x1xf32> to vector<41x64xf32>
    %166 = arith.mulf %161, %165 : vector<41x64xf32>
    %167 = vector.broadcast %12 : vector<1x64xf32> to vector<41x64xf32>
    %168 = arith.mulf %166, %167 : vector<41x64xf32>
    %169 = vector.broadcast %13 : vector<1x64xf32> to vector<41x64xf32>
    %170 = arith.addf %168, %169 : vector<41x64xf32>
    %171 = vector.extract_strided_slice %170 {offsets = [0, 0], sizes = [1, 64], strides = [1, 1]} : vector<41x64xf32> to vector<1x64xf32>
    %172 = vector.extract_strided_slice %170 {offsets = [1, 0], sizes = [1, 64], strides = [1, 1]} : vector<41x64xf32> to vector<1x64xf32>
    %173 = vector.extract_strided_slice %170 {offsets = [2, 0], sizes = [1, 64], strides = [1, 1]} : vector<41x64xf32> to vector<1x64xf32>
    %174 = vector.extract_strided_slice %170 {offsets = [3, 0], sizes = [1, 64], strides = [1, 1]} : vector<41x64xf32> to vector<1x64xf32>
    %175 = vector.extract_strided_slice %170 {offsets = [4, 0], sizes = [1, 64], strides = [1, 1]} : vector<41x64xf32> to vector<1x64xf32>
    %176 = vector.extract_strided_slice %170 {offsets = [5, 0], sizes = [1, 64], strides = [1, 1]} : vector<41x64xf32> to vector<1x64xf32>
    %177 = vector.extract_strided_slice %170 {offsets = [6, 0], sizes = [1, 64], strides = [1, 1]} : vector<41x64xf32> to vector<1x64xf32>
    %178 = vector.extract_strided_slice %170 {offsets = [7, 0], sizes = [1, 64], strides = [1, 1]} : vector<41x64xf32> to vector<1x64xf32>
    %179 = vector.extract_strided_slice %170 {offsets = [8, 0], sizes = [1, 64], strides = [1, 1]} : vector<41x64xf32> to vector<1x64xf32>
    %180 = vector.extract_strided_slice %170 {offsets = [9, 0], sizes = [1, 64], strides = [1, 1]} : vector<41x64xf32> to vector<1x64xf32>
    %181 = vector.extract_strided_slice %170 {offsets = [10, 0], sizes = [1, 64], strides = [1, 1]} : vector<41x64xf32> to vector<1x64xf32>
    %182 = vector.extract_strided_slice %170 {offsets = [11, 0], sizes = [1, 64], strides = [1, 1]} : vector<41x64xf32> to vector<1x64xf32>
    %183 = vector.extract_strided_slice %170 {offsets = [12, 0], sizes = [1, 64], strides = [1, 1]} : vector<41x64xf32> to vector<1x64xf32>
    %184 = vector.extract_strided_slice %170 {offsets = [13, 0], sizes = [1, 64], strides = [1, 1]} : vector<41x64xf32> to vector<1x64xf32>
    %185 = vector.extract_strided_slice %170 {offsets = [14, 0], sizes = [1, 64], strides = [1, 1]} : vector<41x64xf32> to vector<1x64xf32>
    %186 = vector.extract_strided_slice %170 {offsets = [15, 0], sizes = [1, 64], strides = [1, 1]} : vector<41x64xf32> to vector<1x64xf32>
    %187 = vector.extract_strided_slice %170 {offsets = [16, 0], sizes = [1, 64], strides = [1, 1]} : vector<41x64xf32> to vector<1x64xf32>
    %188 = vector.extract_strided_slice %170 {offsets = [17, 0], sizes = [1, 64], strides = [1, 1]} : vector<41x64xf32> to vector<1x64xf32>
    %189 = vector.extract_strided_slice %170 {offsets = [18, 0], sizes = [1, 64], strides = [1, 1]} : vector<41x64xf32> to vector<1x64xf32>
    %190 = vector.extract_strided_slice %170 {offsets = [19, 0], sizes = [1, 64], strides = [1, 1]} : vector<41x64xf32> to vector<1x64xf32>
    %191 = vector.extract_strided_slice %170 {offsets = [20, 0], sizes = [1, 64], strides = [1, 1]} : vector<41x64xf32> to vector<1x64xf32>
    %192 = vector.extract_strided_slice %170 {offsets = [21, 0], sizes = [1, 64], strides = [1, 1]} : vector<41x64xf32> to vector<1x64xf32>
    %193 = vector.extract_strided_slice %170 {offsets = [22, 0], sizes = [1, 64], strides = [1, 1]} : vector<41x64xf32> to vector<1x64xf32>
    %194 = vector.extract_strided_slice %170 {offsets = [23, 0], sizes = [1, 64], strides = [1, 1]} : vector<41x64xf32> to vector<1x64xf32>
    %195 = vector.extract_strided_slice %170 {offsets = [24, 0], sizes = [1, 64], strides = [1, 1]} : vector<41x64xf32> to vector<1x64xf32>
    %196 = vector.extract_strided_slice %170 {offsets = [25, 0], sizes = [1, 64], strides = [1, 1]} : vector<41x64xf32> to vector<1x64xf32>
    %197 = vector.extract_strided_slice %170 {offsets = [26, 0], sizes = [1, 64], strides = [1, 1]} : vector<41x64xf32> to vector<1x64xf32>
    %198 = vector.extract_strided_slice %170 {offsets = [27, 0], sizes = [1, 64], strides = [1, 1]} : vector<41x64xf32> to vector<1x64xf32>
    %199 = vector.extract_strided_slice %170 {offsets = [28, 0], sizes = [1, 64], strides = [1, 1]} : vector<41x64xf32> to vector<1x64xf32>
    %200 = vector.extract_strided_slice %170 {offsets = [29, 0], sizes = [1, 64], strides = [1, 1]} : vector<41x64xf32> to vector<1x64xf32>
    %201 = vector.extract_strided_slice %170 {offsets = [30, 0], sizes = [1, 64], strides = [1, 1]} : vector<41x64xf32> to vector<1x64xf32>
    %202 = vector.extract_strided_slice %170 {offsets = [31, 0], sizes = [1, 64], strides = [1, 1]} : vector<41x64xf32> to vector<1x64xf32>
    %203 = vector.extract_strided_slice %170 {offsets = [32, 0], sizes = [1, 64], strides = [1, 1]} : vector<41x64xf32> to vector<1x64xf32>
    %204 = vector.extract_strided_slice %170 {offsets = [33, 0], sizes = [1, 64], strides = [1, 1]} : vector<41x64xf32> to vector<1x64xf32>
    %205 = vector.extract_strided_slice %170 {offsets = [34, 0], sizes = [1, 64], strides = [1, 1]} : vector<41x64xf32> to vector<1x64xf32>
    %206 = vector.extract_strided_slice %170 {offsets = [35, 0], sizes = [1, 64], strides = [1, 1]} : vector<41x64xf32> to vector<1x64xf32>
    %207 = vector.extract_strided_slice %170 {offsets = [36, 0], sizes = [1, 64], strides = [1, 1]} : vector<41x64xf32> to vector<1x64xf32>
    %208 = vector.extract_strided_slice %170 {offsets = [37, 0], sizes = [1, 64], strides = [1, 1]} : vector<41x64xf32> to vector<1x64xf32>
    %209 = vector.extract_strided_slice %170 {offsets = [38, 0], sizes = [1, 64], strides = [1, 1]} : vector<41x64xf32> to vector<1x64xf32>
    %210 = vector.extract_strided_slice %170 {offsets = [39, 0], sizes = [1, 64], strides = [1, 1]} : vector<41x64xf32> to vector<1x64xf32>
    %211 = vector.extract_strided_slice %170 {offsets = [40, 0], sizes = [1, 64], strides = [1, 1]} : vector<41x64xf32> to vector<1x64xf32>
    %212 = tpu.concatenate %171, %172, %173, %174, %175, %176, %177, %178, %179, %180, %181, %182, %183, %184, %185, %186 in 1 : vector<1x64xf32>, vector<1x64xf32>, vector<1x64xf32>, vector<1x64xf32>, vector<1x64xf32>, vector<1x64xf32>, vector<1x64xf32>, vector<1x64xf32>, vector<1x64xf32>, vector<1x64xf32>, vector<1x64xf32>, vector<1x64xf32>, vector<1x64xf32>, vector<1x64xf32>, vector<1x64xf32>, vector<1x64xf32> -> vector<1x1024xf32>
    %213 = tpu.concatenate %187, %188, %189, %190, %191, %192, %193, %194, %195, %196, %197, %198, %199, %200, %201, %202 in 1 : vector<1x64xf32>, vector<1x64xf32>, vector<1x64xf32>, vector<1x64xf32>, vector<1x64xf32>, vector<1x64xf32>, vector<1x64xf32>, vector<1x64xf32>, vector<1x64xf32>, vector<1x64xf32>, vector<1x64xf32>, vector<1x64xf32>, vector<1x64xf32>, vector<1x64xf32>, vector<1x64xf32>, vector<1x64xf32> -> vector<1x1024xf32>
    %214 = tpu.concatenate %203, %204, %205, %206, %207, %208, %209, %210, %211 in 1 : vector<1x64xf32>, vector<1x64xf32>, vector<1x64xf32>, vector<1x64xf32>, vector<1x64xf32>, vector<1x64xf32>, vector<1x64xf32>, vector<1x64xf32>, vector<1x64xf32> -> vector<1x576xf32>
    %215 = tpu.concatenate %212, %213, %214 in 1 : vector<1x1024xf32>, vector<1x1024xf32>, vector<1x576xf32> -> vector<1x2624xf32>
    %c0_65 = arith.constant 0 : index
    %c0_66 = arith.constant 0 : index
    %216 = vector.load %arg13[%c0_65, %c0_66] : memref<2624x64xf32, #tpu.memory_space<vmem>>, vector<2624x64xf32>
    %cst_67 = arith.constant dense<0.000000e+00> : vector<1x64xf32>
    %217 = tpu.matmul %215, %216, %cst_67 {dimension_numbers = #tpu.dot_dimension_numbers<[1], [0], [0], [1], [0, 0, 1, 1], [], []>} : vector<1x2624xf32>, vector<2624x64xf32>, vector<1x64xf32> -> vector<1x64xf32>
    %218 = arith.addf %217, %14 : vector<1x64xf32>
    %cst_68 = arith.constant 0.000000e+00 : f32
    %219 = vector.broadcast %cst_68 : f32 to vector<1x64xf32>
    %220 = arith.maximumf %218, %219 : vector<1x64xf32>
    %c0_69 = arith.constant 0 : index
    %c0_70 = arith.constant 0 : index
    %221 = vector.load %arg14[%c0_69, %c0_70] : memref<64x8xf32, #tpu.memory_space<vmem>>, vector<64x8xf32>
    %cst_71 = arith.constant dense<0.000000e+00> : vector<1x8xf32>
    %222 = tpu.matmul %220, %221, %cst_71 {dimension_numbers = #tpu.dot_dimension_numbers<[1], [0], [0], [1], [0, 0, 1, 1], [], []>} : vector<1x64xf32>, vector<64x8xf32>, vector<1x8xf32> -> vector<1x8xf32>
    %c0_72 = arith.constant 0 : index
    %c0_73 = arith.constant 0 : index
    %223 = vector.load %arg15[%c0_72, %c0_73] : memref<1x8xf32, #tpu.memory_space<vmem>>, vector<1x8xf32>
    %224 = arith.addf %222, %223 : vector<1x8xf32>
    %c0_74 = arith.constant 0 : index
    %c0_75 = arith.constant 0 : index
    %c0_76 = arith.constant 0 : index
    %225 = vector.load %arg17[%c0_74, %c0_75, %c0_76] : memref<1x1x8xf32, #tpu.memory_space<vmem>>, vector<1x1x8xf32>
    %226 = vector.shape_cast %225 : vector<1x1x8xf32> to vector<1x8xf32>
    %227 = vector.shape_cast %224 : vector<1x8xf32> to vector<1x1x8xf32>
    tpu.vector_store %arg17[%c0_74, %c0_75, %c0_76], %227 {strides = array<i32>} : memref<1x1x8xf32, #tpu.memory_space<vmem>>, vector<1x1x8xf32>,
    return
  }
  func.func @transform_0(%arg0: i32) -> (i32, i32, i32) {
    %c0_i32 = arith.constant 0 : i32
    %c0_i32_0 = arith.constant 0 : i32
    %c0_i32_1 = arith.constant 0 : i32
    return %arg0, %c0_i32, %c0_i32_0 : i32, i32, i32
  }
  func.func @transform_1(%arg0: i32) -> (i32, i32, i32) {
    %c1_i32 = arith.constant 1 : i32
    %0 = arith.subi %c1_i32, %arg0 : i32
    %c0_i32 = arith.constant 0 : i32
    %c0_i32_0 = arith.constant 0 : i32
    %c0_i32_1 = arith.constant 0 : i32
    return %0, %c0_i32, %c0_i32_0 : i32, i32, i32
  }
  func.func @transform_2(%arg0: i32) -> (i32, i32) {
    %c0_i32 = arith.constant 0 : i32
    %c0_i32_0 = arith.constant 0 : i32
    %c0_i32_1 = arith.constant 0 : i32
    return %c0_i32, %c0_i32_0 : i32, i32
  }
  func.func @transform_3(%arg0: i32) -> (i32, i32) {
    %c0_i32 = arith.constant 0 : i32
    %c0_i32_0 = arith.constant 0 : i32
    %c0_i32_1 = arith.constant 0 : i32
    return %c0_i32, %c0_i32_0 : i32, i32
  }
  func.func @transform_4(%arg0: i32) -> (i32, i32) {
    %c0_i32 = arith.constant 0 : i32
    %c0_i32_0 = arith.constant 0 : i32
    %c0_i32_1 = arith.constant 0 : i32
    return %c0_i32, %c0_i32_0 : i32, i32
  }
  func.func @transform_5(%arg0: i32) -> (i32, i32) {
    %c0_i32 = arith.constant 0 : i32
    %c0_i32_0 = arith.constant 0 : i32
    %c0_i32_1 = arith.constant 0 : i32
    return %c0_i32, %c0_i32_0 : i32, i32
  }
  func.func @transform_6(%arg0: i32) -> (i32, i32) {
    %c0_i32 = arith.constant 0 : i32
    %c0_i32_0 = arith.constant 0 : i32
    %c0_i32_1 = arith.constant 0 : i32
    return %c0_i32, %c0_i32_0 : i32, i32
  }
  func.func @transform_7(%arg0: i32) -> (i32, i32) {
    %c0_i32 = arith.constant 0 : i32
    %c0_i32_0 = arith.constant 0 : i32
    %c0_i32_1 = arith.constant 0 : i32
    return %c0_i32, %c0_i32_0 : i32, i32
  }
  func.func @transform_8(%arg0: i32) -> (i32, i32) {
    %c0_i32 = arith.constant 0 : i32
    %c0_i32_0 = arith.constant 0 : i32
    %c0_i32_1 = arith.constant 0 : i32
    return %c0_i32, %c0_i32_0 : i32, i32
  }
  func.func @transform_9(%arg0: i32) -> (i32, i32) {
    %c0_i32 = arith.constant 0 : i32
    %c0_i32_0 = arith.constant 0 : i32
    %c0_i32_1 = arith.constant 0 : i32
    return %c0_i32, %c0_i32_0 : i32, i32
  }
  func.func @transform_10(%arg0: i32) -> (i32, i32) {
    %c0_i32 = arith.constant 0 : i32
    %c0_i32_0 = arith.constant 0 : i32
    %c0_i32_1 = arith.constant 0 : i32
    return %c0_i32, %c0_i32_0 : i32, i32
  }
  func.func @transform_11(%arg0: i32) -> (i32, i32) {
    %c0_i32 = arith.constant 0 : i32
    %c0_i32_0 = arith.constant 0 : i32
    %c0_i32_1 = arith.constant 0 : i32
    return %c0_i32, %c0_i32_0 : i32, i32
  }
  func.func @transform_12(%arg0: i32) -> (i32, i32) {
    %c0_i32 = arith.constant 0 : i32
    %c0_i32_0 = arith.constant 0 : i32
    %c0_i32_1 = arith.constant 0 : i32
    return %c0_i32, %c0_i32_0 : i32, i32
  }
  func.func @transform_13(%arg0: i32) -> (i32, i32) {
    %c0_i32 = arith.constant 0 : i32
    %c0_i32_0 = arith.constant 0 : i32
    %c0_i32_1 = arith.constant 0 : i32
    return %c0_i32, %c0_i32_0 : i32, i32
  }
  func.func @transform_14(%arg0: i32) -> (i32, i32) {
    %c0_i32 = arith.constant 0 : i32
    %c0_i32_0 = arith.constant 0 : i32
    %c0_i32_1 = arith.constant 0 : i32
    return %c0_i32, %c0_i32_0 : i32, i32
  }
  func.func @transform_15(%arg0: i32) -> (i32, i32) {
    %c0_i32 = arith.constant 0 : i32
    %c0_i32_0 = arith.constant 0 : i32
    %c0_i32_1 = arith.constant 0 : i32
    return %c0_i32, %c0_i32_0 : i32, i32
  }
  func.func @transform_16(%arg0: i32) -> (i32, i32, i32) {
    %c0_i32 = arith.constant 0 : i32
    %c0_i32_0 = arith.constant 0 : i32
    %c0_i32_1 = arith.constant 0 : i32
    return %arg0, %c0_i32, %c0_i32_0 : i32, i32, i32
  }
}

</mosaic_0001>

<bundles_post_ra>
// kernel: forward.1
= control target key start
LH: loop header
LB: loop body
LE: loop exit
PB: predicated region body
PF: predicated region fallthrough
CT: control target
= control target key end

     0   :  { %s8459_s0 = inlined_call_operand.vmem [shape: f32[2,41,4], index: 0, kind: input, shape index: {}, may-alias: {0,1}]   ;;  %s8460_s1 = inlined_call_operand.vmem [shape: f32[2,41,4], index: 1, kind: input, shape index: {}, may-alias: {0,1}]   ;;  %s8461_s2 = inlined_call_operand.vmem [shape: f32[4,192], index: 2, kind: input, shape index: {}]   ;;  %s8462_s3 = inlined_call_operand.vmem [shape: f32[64,192], index: 3, kind: input, shape index: {}]   ;;  %s8463_s4 = inlined_call_operand.vmem [shape: f32[64,192], index: 4, kind: input, shape index: {}]   ;;  %s8464_s5 = inlined_call_operand.vmem [shape: f32[64,64], index: 5, kind: input, shape index: {}]   ;;  %s8465_s6 = inlined_call_operand.vmem [shape: f32[64,192], index: 6, kind: input, shape index: {}]   ;;  %s8466_s7 = inlined_call_operand.vmem [shape: f32[1,192], index: 7, kind: input, shape index: {}]   ;;  %s8467_s8 = inlined_call_operand.vmem [shape: f32[64,64], index: 8, kind: input, shape index: {}]   ;;  %s8468_s9 = inlined_call_operand.vmem [shape: f32[64,8], index: 9, kind: input, shape index: {}]   ;;  %s8469_s10 = inlined_call_operand.vmem [shape: f32[1,8], index: 10, kind: input, shape index: {}]   ;;  %s8470_s11 = inlined_call_operand.vmem [shape: f32[8,64], index: 11, kind: input, shape index: {}]   ;;  %s8471_s12 = inlined_call_operand.vmem [shape: f32[2624,64], index: 12, kind: input, shape index: {}]   ;;  %s8472_s13 = inlined_call_operand.vmem [shape: f32[64,8], index: 13, kind: input, shape index: {}]   ;;  %s8473_s14 = inlined_call_operand.vmem [shape: f32[1,8], index: 14, kind: input, shape index: {}]   ;;  %s8474_s15 = inlined_call_operand.vmem [shape: f32[10,64], index: 15, kind: input, shape index: {}]   ;;  %s8475_s16 = inlined_call_operand.hbm [shape: f32[2,1,8], index: 16, kind: output, shape index: {}]  }
   0x1   :  { %8479 = sst [smem:[#allocation7_spill]] %s8459_s0 }
   0x2   :  { %8480 = sst [smem:[#allocation8_spill]] %s8460_s1 }
   0x3   :  { %8481 = sst [smem:[#allocation9_spill]] %s8461_s2 }
   0x4   :  { %8482 = sst [smem:[#allocation10_spill]] %s8462_s3 }
   0x5   :  { %21 = vsyncpa [#allocation3], 0 }
   0x6   :  { %23 = vsyncpa [#allocation3 + $0x1], 0  ;;  %s6222_s21 = smov 0   ;;  %s6224_s22 = smov 0  }
   0x7   :  { %s6226_s23 = smov 0   ;;  %s6228_s24 = smov 0  }
   0x8 LB: > { %8483 = sst [smem:[#allocation5_spill]] %s6125_s23  ;;  %s6243_s25 = sadd.s32 4294967295, %s6129_s24   ;;  %s6129_s24 = sphi %s6228_s24, %s8496_s24   ;;  %s6125_s23 = sphi %s6226_s23, %s8493_s23   ;;  %s6121_s22 = sphi %s6224_s22, %s8495_s22   ;;  %s6117_s21 = sphi %s6222_s21, %s8494_s21  }
   0x9   : > { %s4859_s26 = sadd.s32 4294967294, %s6129_s24   ;;  %s6247_s27 = sadd.s32 1, %s6129_s24  }
   0xa   : > { %s384_s28 = sadd.s32 1, %s6125_s23  ;;  %s381_s29 = ssub.s32 %s6129_s24, %s6247_s27 }
   0xb   : > { %p394_p0 = scmp.ne.s32.totalorder %s6125_s23, %s6121_s22  ;;  %p382_p1 = scmp.eq.s32.totalorder %s381_s29, 0 }
   0xc   : > { %p395_p2 = scmp.eq.s32.totalorder %s6243_s25, 1  ;;  %p400_p3 = scmp.ne.s32.totalorder %s6121_s22, %s6117_s21 }
   0xd   : > { %p401_p4 = scmp.eq.s32.totalorder %s4859_s26, 1  ;;  %p4862_p7 = scmp.ge.s32.totalorder %s6129_s24, 1 }
   0xe   : > { %s6258_s30 = scalar_select %p382_p1, %s6125_s23, %s384_s28  }
   0xf   : > { %p6260_p5 = por %p395_p2, %p394_p0  ;;  %p6264_p6 = por %p401_p4, %p400_p3 }
  0x10   : > { %8484 = sst [smem:[#allocation6_spill]] %s6258_s30  ;;  %p479_p8 = scmp.lt.s32.totalorder %s6129_s24, 3 }
  0x12   : > { %p480_p9 = pnand %p4862_p7, %p479_p8 }
  0x13   : > { %s8487_s2 = sld [smem:[#allocation9_spill]] (!%p480_p9)  ;;  %p534_p10 = scmp.lt.s32.totalorder (!%p480_p9), %s6243_s25, 1 }
  0x14   : > { %483 = sbr.rel (%p480_p9) target bundleno = 4311 (0x10d7), region = 84  ;;  %s8488_s18 = sld [smem:[#allocation7_spill]] (!%p480_p9) }
  0x15   : > { %s8489_s1 = sld [smem:[#allocation8_spill]] (!%p480_p9)  ;;  %s6134_s30 = smov (!%p480_p9), 96  }
  0x16   : > { %s8490_s3 = sld [smem:[#allocation10_spill]] (!%p480_p9) }
  0x19   : > { %v617_v0 = vld [vmem:[%s8487_s2] sm:$0xff]  ;;  %vm639_vm0 = vcmask 1043456   ;;  %v6131_v2 = vmov 0.0   ;;  %s535_s20 = scalar_select %p534_p10, %s6243_s25, 1  ;;  %vm620_vm1 = vcmask 31744   ;;  %v560_v15 = vlaneseq }
  0x1a   : > { %v619_v1 = vcombine.high %v617_v0, %v617_v0  ;;  %708 = vmatprep.mubr.f32.mxu0 %v6131_v2  ;;  %s539_s2 = ssub.s32 1, %s6243_s25  ;;  %vm745_vm3 = vcmask 334848   ;;  %vm764_vm4 = vcmask 1040384  }
  0x1b   : > { %s5898_s26 = smul.u32 48, %s535_s20  ;;  %p540_p11 = scmp.lt.s32.totalorder %s539_s2, 1  ;;  %v6311_v16 = vshrl.u32 %v560_v15, 7  ;;  %v6313_v17 = vand.u32 127, %v560_v15 }
  0x1c   : > { %4883 = vmatprep.subr.msk.mxu0 %vm639_vm0, %v619_v1  ;;  %v1388_v15 = vld [vmem:[%s8490_s3 + $0x40] sm:$0xff] }
  0x1d   : > { %4884 = vmatpush1.msk.msra.mxu0 %vm639_vm0, %v617_v0  ;;  %s538_s19 = scalar_lea.vmem %s8488_s18, %s5898_s26  ;;  %s8498_s2 = smov (!%p540_p11, %s539_s2), 1  ;;  %v593_v18 = vadd.s32 1, %v6311_v16  ;;  %v562_v32 = vadd.s32 8, %v6311_v16  ;;  %v563_v34 = vadd.s32 16, %v6311_v16  ;;  %v564_v37 = vadd.s32 24, %v6311_v16 }
  0x1e   : > { %4905 = vmatprep.subr.msk.mxu0 %vm639_vm0, %v619_v1  ;;  %v546_v3 = vld [vmem:[%s538_s19] sm:$0xff]  ;;  %v547_v4 = vld [vmem:[%s538_s19 + $0x8] sm:$0xff]  ;;  %v548_v5 = vld [vmem:[%s538_s19 + $0x10] sm:$0xff]  ;;  %s5899_s20 = smul.u32 48, %s8498_s2  ;;  %s8476_s2 = smov 64   ;;  %v565_v40 = vadd.s32 32, %v6311_v16 }
  0x1f   : > { %4885 = vmatmul.mubr.msk.f32.vlgmr.msra.gmra.mxu0 %vm620_vm1, %v546_v3  ;;  %v549_v6 = vld [vmem:[%s538_s19 + $0x18] sm:$0xff]  ;;  %v550_v7 = vld [vmem:[%s538_s19 + $0x20] sm:$0xff]  ;;  %v551_v8 = vld [vmem:[%s538_s19 + $0x28] sm:$0x1]  ;;  %vm599_vm2 = vcmp.eq.s32.totalorder %v6313_v17, %v593_v18  ;;  %v594_v36 = vadd.s32 1, %v562_v32  ;;  %v595_v39 = vadd.s32 1, %v563_v34 }
  0x20   : > { %714 = vmatprep.mubr.f32.mxu0 %v6131_v2  ;;  %4906 = vmatpush1.msk.msra.mxu0 %vm639_vm0, %v617_v0  ;;  %s544_s29 = scalar_lea.vmem %s8489_s1, %s5899_s20  ;;  %v6318_v19 = vsel %vm599_vm2, 1.0, %v6131_v2  ;;  %v596_v42 = vadd.s32 1, %v564_v37  ;;  %v566_v43 = vadd.s32 40, %v6311_v16  ;;  %v597_v46 = vadd.s32 1, %v565_v40  ;;  %v1386_v18 = vld [vmem:[%s8490_s3 + $0x30] sm:$0xff]  ;;  %s8491_s1 = smov 64  }
  0x21   : > { %v552_v9 = vld [vmem:[%s544_s29] sm:$0xff]  ;;  %v553_v10 = vld [vmem:[%s544_s29 + $0x8] sm:$0xff]  ;;  %v554_v11 = vld [vmem:[%s544_s29 + $0x10] sm:$0xff]  ;;  %5576 = vmatprep.mubr.msk.f32.mxu1 %vm745_vm3, %v6318_v19  ;;  %vm600_vm5 = vcmp.eq.s32.totalorder %v6313_v17, %v594_v36  ;;  %vm601_vm6 = vcmp.eq.s32.totalorder %v6313_v17, %v595_v39  ;;  %v4865_v49 = vadd.s32 4294967295, %v6311_v16  ;;  %v4866_v53 = vadd.s32 4294967295, %v562_v32  ;;  %s5024_s19 = sshll.u32 %s6243_s25, 4 }
  0x22   : > { %v555_v12 = vld [vmem:[%s544_s29 + $0x18] sm:$0xff]  ;;  %v556_v13 = vld [vmem:[%s544_s29 + $0x20] sm:$0xff]  ;;  %v557_v14 = vld [vmem:[%s544_s29 + $0x28] sm:$0x1]  ;;  %v6361_v45 = vsel %vm600_vm5, 1.0, %v6131_v2  ;;  %vm602_vm7 = vcmp.eq.s32.totalorder %v6313_v17, %v596_v42  ;;  %v598_v48 = vadd.s32 1, %v566_v43  ;;  %vm603_vm8 = vcmp.eq.s32.totalorder %v6313_v17, %v597_v46  ;;  %s8424_s29 = scalar_lea.hbm %s8475_s16, %s5024_s19 }
  0x23   : > { %4886 = vmatmul.mubr.msk.f32.gmra.mxu0 %vm620_vm1, %v547_v4  ;;  %v6376_v51 = vsel %vm601_vm6, 1.0, %v6131_v2  ;;  %v6381_v52 = vsel %vm602_vm7, 1.0, %v6131_v2  ;;  %vm575_vm10 = vcmp.eq.s32.totalorder %v6313_v17, %v4865_v49  ;;  %v4867_v55 = vadd.s32 4294967295, %v563_v34  ;;  %v1405_v32 = vld [vmem:[%s8463_s4 + $0x48] sm:$0xff]  ;;  %v1403_v34 = vld [vmem:[%s8463_s4 + $0x38] sm:$0xff]  ;;  %v1398_v39 = vld [vmem:[%s8463_s4 + $0x10] sm:$0xff] }
  0x24   : > { %720 = vmatprep.mubr.f32.mxu0 %v6131_v2  ;;  %vm604_vm9 = vcmp.eq.s32.totalorder %v6313_v17, %v598_v48  ;;  %v6394_v57 = vsel %vm603_vm8, 1.0, %v6131_v2  ;;  %v6404_v60 = vsel %vm575_vm10, 1.0, %v6131_v2  ;;  %vm576_vm11 = vcmp.eq.s32.totalorder %v6313_v17, %v4866_v53  ;;  %v1401_v36 = vld [vmem:[%s8463_s4 + $0x28] sm:$0xff]  ;;  %s6136_s25 = smov [#allocation2]  }
  0x25   : > { %v6399_v58 = vsel %vm604_vm9, 1.0, %v6131_v2  ;;  %v4868_v61 = vadd.s32 4294967295, %v564_v37  ;;  %vm577_vm12 = vcmp.eq.s32.totalorder %v6313_v17, %v4867_v55  ;;  %v4869_v62 = vadd.s32 4294967295, %v565_v40  ;;  %v1400_v37 = vld [vmem:[%s8463_s4 + $0x20] sm:$0xff]  ;;  %v1397_v40 = vld [vmem:[%s8463_s4 + $0x8] sm:$0xff] }
  0x26   : > { %v6418_v0 = vsel %vm576_vm11, 1.0, %v6131_v2  ;;  %v6423_v3 = vsel %vm577_vm12, 1.0, %v6131_v2  ;;  %v4870_v4 = vadd.s32 4294967295, %v566_v43  ;;  %vm1412_vm0 = vcmask 523264  }
  0x27   : > { %4887 = vmatmul.mubr.msk.f32.gmra.mxu0 %vm620_vm1, %v548_v5  ;;  %vm578_vm13 = vcmp.eq.s32.totalorder %v6313_v17, %v4868_v61  ;;  %vm579_vm14 = vcmp.eq.s32.totalorder %v6313_v17, %v4869_v62  ;;  %v6593_v61 = vld [vmem:[%s8474_s15] sm:$0xff]  ;;  %vm2323_vm2 = vcmask 327680   ;;  %vm6135_vm5 = vmmov 0  }
  0x28   : > { %726 = vmatprep.mubr.f32.mxu0 %v6131_v2  ;;  %v6435_v5 = vsel %vm578_vm13, 1.0, %v6131_v2  ;;  %vm580_vm15 = vcmp.eq.s32.totalorder %v6313_v17, %v4870_v4  ;;  %v1387_v17 = vld [vmem:[%s8490_s3 + $0x38] sm:$0xff]  ;;  %vm4777_vm6 = vcmask 57344  }
  0x2b   : > { %4888 = vmatmul.mubr.msk.f32.gmra.mxu0 %vm620_vm1, %v549_v6  ;;  %v6438_v6 = vsel %vm579_vm14, 1.0, %v6131_v2 }
  0x2c   : > { %732 = vmatprep.mubr.f32.mxu0 %v6131_v2 }
  0x2f   : > { %4889 = vmatmul.mubr.msk.f32.gmra.mxu0 %vm620_vm1, %v550_v7  ;;  %v6446_v7 = vsel %vm580_vm15, 1.0, %v6131_v2 }
  0x30   : > { %738 = vmatprep.mubr.f32.mxu0 %v6131_v2 }
  0x33   : > { %4890 = vmatmul.mubr.msk.f32.gmra.mxu0 %vm620_vm1, %v551_v8  ;;  %v1395_v8 = vld [vmem:[%s8490_s3 + $0x78] sm:$0xff] }
  0x34   : > { %1106 = vmatprep.mubr.f32.mxu0 %v6131_v2 }
  0x37   : > { %4907 = vmatmul.mubr.msk.f32.vlgmr.msra.gmra.mxu0 %vm620_vm1, %v552_v9  ;;  %v1394_v9 = vld [vmem:[%s8490_s3 + $0x70] sm:$0xff] }
  0x38   : > { %1112 = vmatprep.mubr.f32.mxu0 %v6131_v2 }
  0x3b   : > { %4908 = vmatmul.mubr.msk.f32.gmra.mxu0 %vm620_vm1, %v553_v10  ;;  %v1393_v10 = vld [vmem:[%s8490_s3 + $0x68] sm:$0xff] }
  0x3c   : > { %1118 = vmatprep.mubr.f32.mxu0 %v6131_v2 }
  0x3f   : > { %4909 = vmatmul.mubr.msk.f32.gmra.mxu0 %vm620_vm1, %v554_v11  ;;  %v1392_v11 = vld [vmem:[%s8490_s3 + $0x60] sm:$0xff] }
  0x40   : > { %1124 = vmatprep.mubr.f32.mxu0 %v6131_v2 }
  0x43   : > { %4910 = vmatmul.mubr.msk.f32.gmra.mxu0 %vm620_vm1, %v555_v12  ;;  %v1391_v12 = vld [vmem:[%s8490_s3 + $0x58] sm:$0xff] }
  0x44   : > { %1130 = vmatprep.mubr.f32.mxu0 %v6131_v2 }
  0x47   : > { %4911 = vmatmul.mubr.msk.f32.gmra.mxu0 %vm620_vm1, %v556_v13  ;;  %v1390_v13 = vld [vmem:[%s8490_s3 + $0x50] sm:$0xff] }
  0x48   : > { %1136 = vmatprep.mubr.f32.mxu0 %v6131_v2 }
  0x4b   : > { %4912 = vmatmul.mubr.msk.f32.gmra.mxu0 %vm620_vm1, %v557_v14  ;;  %v1389_v14 = vld [vmem:[%s8490_s3 + $0x48] sm:$0xff]  ;;  %vm2188_vm1 = vcmask 261120  }
  0x4c   : > { %1495 = vmatprep.mubr.f32.mxu0 %v6131_v2 }
  0xdf   : > { %v6322_v20 = vpop.f32.mrf.mxu0 }
  0xe0   : > { %869 = vrot.lane.b32.xlu0 %v6322_v20, %s8476_s2 }
  0xe1   : > { %v712_v21 = vpop.f32.mrf.mxu0 }
  0xe3   : > { %v6326_v22 = vpop.f32.mrf.mxu0 }
  0xe4   : > { %871 = vrot.lane.b32.xlu1 %v6326_v22, %s8476_s2 }
  0xe5   : > { %v718_v23 = vpop.f32.mrf.mxu0 }
  0xe7   : > { %v6330_v24 = vpop.f32.mrf.mxu0 }
  0xe9   : > { %v724_v25 = vpop.f32.mrf.mxu0 }
  0xeb   : > { %v6332_v26 = vpop.f32.mrf.mxu0 }
  0xed   : > { %v730_v27 = vpop.f32.mrf.mxu0 }
  0xef   : > { %v734_v28 = vpop.f32.mrf.mxu0 }
  0xf1   : > { %v736_v29 = vpop.f32.mrf.mxu0 }
  0xf3   : > { %v740_v30 = vpop.f32.mrf.mxu0 }
  0xf5   : > { %v742_v31 = vpop.f32.mrf.mxu0 }
  0xf6   : > { %5564 = vmatprep.subr.msk.mxu1 %vm764_vm4, %v742_v31 }
  0xf7   : > { %5565 = vmatpush3.msk.msra.mxu1 %vm764_vm4, %v742_v31  ;;  %v6337_v33 = vpop.f32.mrf.mxu0  ;;  %v1406_v31 = vld [vmem:[%s8463_s4 + $0x50] sm:$0xff] }
  0xf8   : > { %1247 = vrot.lane.b32.xlu0 %v6337_v33, %s8476_s2  ;;  %5566 = vmatprep.subr.mxu1 %v736_v29 }
  0xf9   : > { %5567 = vmatpush3.msra.mxu1 %v736_v29  ;;  %v6342_v35 = vpop.f32.mrf.mxu0  ;;  %v1408_v29 = vld [vmem:[%s8463_s4 + $0x60] sm:$0xff] }
  0xfa   : > { %5568 = vmatprep.subr.mxu1 %v730_v27 }
  0xfb   : > { %5569 = vmatpush3.msra.mxu1 %v730_v27  ;;  %v6345_v38 = vpop.f32.mrf.mxu0  ;;  %v1410_v27 = vld [vmem:[%s8463_s4 + $0x70] sm:$0xff] }
  0xfc   : > { %873 = vrot.lane.b32.xlu0 %v6330_v24, %s8476_s2  ;;  %1249 = vrot.lane.b32.xlu1 %v6345_v38, %s8476_s2 }
  0xfd   : > { %5570 = vmatprep.subr.mxu1 %v724_v25  ;;  %v6352_v41 = vpop.f32.mrf.mxu0 }
  0xfe   : > { %5571 = vmatpush3.msra.mxu1 %v724_v25  ;;  %v1380_v25 = vld [vmem:[%s8490_s3] sm:$0xff] }
  0xff   : > { %5572 = vmatprep.subr.mxu1 %v718_v23  ;;  %v6356_v44 = vpop.f32.mrf.mxu0 }
 0x100   : > { %5573 = vmatpush3.msra.mxu1 %v718_v23  ;;  %875 = vrot.lane.b32.xlu0 %v6332_v26, %s8476_s2  ;;  %v1382_v23 = vld [vmem:[%s8490_s3 + $0x10] sm:$0xff] }
 0x101   : > { %1251 = vrot.lane.b32.xlu1 %v6356_v44, %s8476_s2  ;;  %5574 = vmatprep.subr.mxu1 %v712_v21  ;;  %v6366_v47 = vpop.f32.mrf.mxu0 }
 0x102   : > { %5575 = vmatpush3.msra.mxu1 %v712_v21  ;;  %v1384_v21 = vld [vmem:[%s8490_s3 + $0x20] sm:$0xff] }
 0x103   : > { %5577 = vmatmul.mubr.msk.f32.vlgmr.msra.gmra.mxu1 %vm745_vm3, %v6361_v45  ;;  %5585 = vmatprep.subr.msk.mxu1 %vm764_vm4, %v740_v30  ;;  %v6373_v50 = vpop.f32.mrf.mxu0 }
 0x104   : > { %5586 = vmatpush3.msk.msra.mxu1 %vm764_vm4, %v740_v30  ;;  %877 = vrot.lane.b32.xlu0 %v734_v28, %s8476_s2 }
 0x105   : > { %1253 = vrot.lane.b32.xlu1 %v6373_v50, %s8476_s2  ;;  %5587 = vmatprep.subr.mxu1 %v734_v28  ;;  %v1128_v54 = vpop.f32.mrf.mxu0 }
 0x106   : > { %5579 = vmatprep.mubr.msk.f32.mxu1 %vm745_vm3, %v6376_v51  ;;  %5588 = vmatpush3.msra.mxu1 %v734_v28  ;;  %v1409_v28 = vld [vmem:[%s8463_s4 + $0x68] sm:$0xff] }
 0x107   : > { %5580 = vmatmul.mubr.msk.f32.gmra.mxu1 %vm745_vm3, %v6381_v52  ;;  %5589 = vmatprep.subr.mxu1 %v6332_v26  ;;  %v1132_v56 = vpop.f32.mrf.mxu0 }
 0x108   : > { %5590 = vmatpush3.msra.mxu1 %v6332_v26  ;;  %879 = vrot.lane.b32.xlu0 %v740_v30, %s8476_s2  ;;  %v1411_v26 = vld [vmem:[%s8463_s4 + $0x78] sm:$0xff] }
 0x109   : > { %1255 = vrot.lane.b32.xlu1 %v1132_v56, %s8476_s2  ;;  %5591 = vmatprep.subr.mxu1 %v6330_v24  ;;  %v1134_v59 = vpop.f32.mrf.mxu0  ;;  %v1407_v30 = vld [vmem:[%s8463_s4 + $0x58] sm:$0xff] }
 0x10a   : > { %5582 = vmatprep.mubr.msk.f32.mxu1 %vm745_vm3, %v6394_v57  ;;  %5592 = vmatpush3.msra.mxu1 %v6330_v24  ;;  %v1381_v24 = vld [vmem:[%s8490_s3 + $0x8] sm:$0xff] }
 0x10b   : > { %5583 = vmatmul.mubr.msk.f32.gmra.mxu1 %vm745_vm3, %v6399_v58  ;;  %5593 = vmatprep.subr.mxu1 %v6326_v22  ;;  %v1138_v63 = vpop.f32.mrf.mxu0 }
 0x10c   : > { %5594 = vmatpush3.msra.mxu1 %v6326_v22  ;;  %5597 = vmatprep.mubr.msk.f32.mxu1 %vm745_vm3, %v6404_v60  ;;  %v1383_v22 = vld [vmem:[%s8490_s3 + $0x18] sm:$0xff] }
 0x10d   : > { %1257 = vrot.lane.b32.xlu1 %v1138_v63, %s8476_s2  ;;  %5595 = vmatprep.subr.mxu1 %v6322_v20  ;;  %v1140_v1 = vpop.f32.mrf.mxu0 }
 0x10e   : > { %5596 = vmatpush3.msra.mxu1 %v6322_v20  ;;  %v1385_v20 = vld [vmem:[%s8490_s3 + $0x28] sm:$0xff]  ;;  %1447 = vmatprep.subr.mxu0 %v1411_v26  ;;  %s6133_s3 = smov 32  }
 0x10f   : > { %5598 = vmatmul.mubr.msk.f32.vlgmr.msra.gmra.mxu1 %vm745_vm3, %v6418_v0  ;;  %5606 = vmatprep.subr.msk.mxu1 %vm764_vm4, %v1140_v1 }
 0x110   : > { %5607 = vmatpush3.msk.msra.mxu1 %vm764_vm4, %v1140_v1  ;;  %5600 = vmatprep.mubr.msk.f32.mxu1 %vm745_vm3, %v6423_v3 }
 0x111   : > { %5608 = vmatprep.subr.mxu1 %v1134_v59  ;;  %1448 = vmatpush1.msra.mxu0 %v1410_v27 }
 0x112   : > { %5609 = vmatpush3.msra.mxu1 %v1134_v59  ;;  %1449 = vmatprep.subr.mxu0 %v1409_v28  ;;  %v6588_v59 = vsub.s32 0, %v6311_v16 }
 0x113   : > { %5601 = vmatmul.mubr.msk.f32.gmra.mxu1 %vm745_vm3, %v6435_v5  ;;  %5610 = vmatprep.subr.mxu1 %v1128_v54 }
 0x114   : > { %5611 = vmatpush3.msra.mxu1 %v1128_v54  ;;  %5603 = vmatprep.mubr.msk.f32.mxu1 %vm745_vm3, %v6438_v6 }
 0x115   : > { %5612 = vmatprep.subr.mxu1 %v6366_v47  ;;  %1450 = vmatpush1.msra.mxu0 %v1408_v29 }
 0x116   : > { %5613 = vmatpush3.msra.mxu1 %v6366_v47  ;;  %1451 = vmatprep.subr.mxu0 %v1407_v30 }
 0x117   : > { %5604 = vmatmul.mubr.msk.f32.gmra.mxu1 %vm745_vm3, %v6446_v7  ;;  %5614 = vmatprep.subr.mxu1 %v6352_v41 }
 0x118   : > { %5615 = vmatpush3.msra.mxu1 %v6352_v41  ;;  %5618 = vmatprep.mubr.msk.f32.mxu1 %vm745_vm3, %v6318_v19  ;;  %v1396_v41 = vld [vmem:[%s8463_s4] sm:$0xff] }
 0x119   : > { %5616 = vmatprep.subr.mxu1 %v6342_v35  ;;  %1452 = vmatpush1.msra.mxu0 %v1406_v31 }
 0x11a   : > { %5617 = vmatpush3.msra.mxu1 %v6342_v35  ;;  %1453 = vmatprep.subr.mxu0 %v1405_v32  ;;  %v1402_v35 = vld [vmem:[%s8463_s4 + $0x30] sm:$0xff] }
 0x11b   : > { %5619 = vmatmul.mubr.msk.f32.vlgmr.msra.gmra.mxu1 %vm745_vm3, %v6361_v45  ;;  %5627 = vmatprep.subr.msk.mxu1 %vm764_vm4, %v1138_v63 }
 0x11c   : > { %5628 = vmatpush3.msk.msra.mxu1 %vm764_vm4, %v1138_v63  ;;  %5621 = vmatprep.mubr.msk.f32.mxu1 %vm745_vm3, %v6376_v51 }
 0x11d   : > { %5629 = vmatprep.subr.mxu1 %v1132_v56 }
 0x11e   : > { %5630 = vmatpush3.msra.mxu1 %v1132_v56 }
 0x11f   : > { %5622 = vmatmul.mubr.msk.f32.gmra.mxu1 %vm745_vm3, %v6381_v52  ;;  %5631 = vmatprep.subr.mxu1 %v6373_v50 }
 0x120   : > { %5632 = vmatpush3.msra.mxu1 %v6373_v50  ;;  %5624 = vmatprep.mubr.msk.f32.mxu1 %vm745_vm3, %v6394_v57 }
 0x121   : > { %5633 = vmatprep.subr.mxu1 %v6356_v44 }
 0x122   : > { %5634 = vmatpush3.msra.mxu1 %v6356_v44 }
 0x123   : > { %5625 = vmatmul.mubr.msk.f32.gmra.mxu1 %vm745_vm3, %v6399_v58  ;;  %5635 = vmatprep.subr.mxu1 %v6345_v38 }
 0x124   : > { %5636 = vmatpush3.msra.mxu1 %v6345_v38  ;;  %5639 = vmatprep.mubr.msk.f32.mxu1 %vm745_vm3, %v6404_v60  ;;  %v1399_v38 = vld [vmem:[%s8463_s4 + $0x18] sm:$0xff] }
 0x125   : > { %5637 = vmatprep.subr.mxu1 %v6337_v33 }
 0x126   : > { %5638 = vmatpush3.msra.mxu1 %v6337_v33  ;;  %v1404_v33 = vld [vmem:[%s8463_s4 + $0x40] sm:$0xff] }
 0x127   : > { %5640 = vmatmul.mubr.msk.f32.vlgmr.msra.gmra.mxu1 %vm745_vm3, %v6418_v0  ;;  %1566 = vmatprep.subr.mxu1 %v1395_v8 }
 0x128   : > { %5642 = vmatprep.mubr.msk.f32.mxu1 %vm745_vm3, %v6423_v3  ;;  %1567 = vmatpush1.msra.mxu1 %v1394_v9  ;;  %v6597_v9 = vrot.slane %v6593_v61, %v6588_v59 }
 0x129   : > { %1568 = vmatprep.subr.mxu1 %v1393_v10  ;;  %1454 = vmatpush1.msra.mxu0 %v1404_v33 }
 0x12a   : > { %1569 = vmatpush1.msra.mxu1 %v1392_v11  ;;  %1455 = vmatprep.subr.mxu0 %v1403_v34 }
 0x12b   : > { %5643 = vmatmul.mubr.msk.f32.gmra.mxu1 %vm745_vm3, %v6435_v5  ;;  %1570 = vmatprep.subr.mxu1 %v1391_v12 }
 0x12c   : > { %5645 = vmatprep.mubr.msk.f32.mxu1 %vm745_vm3, %v6438_v6  ;;  %1571 = vmatpush1.msra.mxu1 %v1390_v13 }
 0x12d   : > { %1572 = vmatprep.subr.mxu1 %v1389_v14  ;;  %1456 = vmatpush1.msra.mxu0 %v1402_v35 }
 0x12e   : > { %1573 = vmatpush1.msra.mxu1 %v1388_v15  ;;  %1457 = vmatprep.subr.mxu0 %v1401_v36 }
 0x12f   : > { %5646 = vmatmul.mubr.msk.f32.gmra.mxu1 %vm745_vm3, %v6446_v7  ;;  %1574 = vmatprep.subr.mxu1 %v1387_v17 }
 0x130   : > { %1614 = vmatprep.mubr.f32.mxu1 %v6131_v2  ;;  %1575 = vmatpush1.msra.mxu1 %v1386_v18 }
 0x131   : > { %1576 = vmatprep.subr.mxu1 %v1385_v20  ;;  %1458 = vmatpush1.msra.mxu0 %v1400_v37 }
 0x132   : > { %1577 = vmatpush1.msra.mxu1 %v1384_v21  ;;  %1459 = vmatprep.subr.mxu0 %v1399_v38 }
 0x133   : > { %1578 = vmatprep.subr.mxu1 %v1383_v22  ;;  %1460 = vmatpush1.msra.mxu0 %v1398_v39 }
 0x134   : > { %1579 = vmatpush1.msra.mxu1 %v1382_v23  ;;  %1461 = vmatprep.subr.mxu0 %v1397_v40 }
 0x135   : > { %1580 = vmatprep.subr.mxu1 %v1381_v24  ;;  %1462 = vmatpush1.msra.mxu0 %v1396_v41 }
 0x136   : > { %1581 = vmatpush1.msra.mxu1 %v1380_v25 }
 0x152   : > { %v870_v42 = vpop.permute.xlu0 %869 }
 0x156   : > { %v872_v54 = vpop.permute.xlu1 %871 }
 0x16a   : > { %v1248_v46 = vpop.permute.xlu0 %1247 }
 0x16e   : > { %v874_v50 = vpop.permute.xlu0 %873  ;;  %v1250_v29 = vpop.permute.xlu1 %1249 }
 0x172   : > { %v876_v1 = vpop.permute.xlu0 %875 }
 0x173   : > { %v1252_v41 = vpop.permute.xlu1 %1251 }
 0x176   : > { %v878_v21 = vpop.permute.xlu0 %877 }
 0x17a   : > { %v880_v30 = vpop.permute.xlu0 %879 }
 0x1c3   : > { %v5578_v43 = vpop.f32.mrf.mxu1 }
 0x1c5   : > { %v834_v44 = vpop.f32.mrf.mxu1 }
 0x1c7   : > { %v5581_v47 = vpop.f32.mrf.mxu1 }
 0x1c9   : > { %v844_v48 = vpop.f32.mrf.mxu1 }
 0x1cb   : > { %v5584_v49 = vpop.f32.mrf.mxu1 }
 0x1cd   : > { %v854_v53 = vpop.f32.mrf.mxu1 }
 0x1cf   : > { %v5599_v55 = vpop.f32.mrf.mxu1 }
 0x1d0   : > { %v979_v56 = vadd.f32 %v5599_v55, %v872_v54  ;;  %v1254_v54 = vpop.permute.xlu1 %1253 }
 0x1d1   : > { %v973_v62 = vpop.f32.mrf.mxu1 }
 0x1d2   : > { %v974_v63 = vadd.f32 %v973_v62, %v870_v42  ;;  %v1003_v8 = vadd.f32 %v5578_v43, %v979_v56 }
 0x1d3   : > { %v5602_v4 = vpop.f32.mrf.mxu1 }
 0x1d4   : > { %v1002_v10 = vadd.f32 %v974_v63, %v834_v44  ;;  %v1013_v15 = vadd.f32 %v6597_v9, %v1003_v8  ;;  %v989_v18 = vadd.f32 %v5602_v4, %v876_v1 }
 0x1d5   : > { %v983_v11 = vpop.f32.mrf.mxu1 }
 0x1d6   : > { %v1012_v12 = vadd.f32 %v6597_v9, %v1002_v10  ;;  %v984_v13 = vadd.f32 %v983_v11, %v874_v50  ;;  %v1019_v24 = vmax.f32 %v1013_v15, 0.0  ;;  %v1005_v25 = vadd.f32 %v5581_v47, %v989_v18 }
 0x1d7   : > { %v5605_v14 = vpop.f32.mrf.mxu1 }
 0x1d8   : > { %v1018_v17 = vmax.f32 %v1012_v12, 0.0  ;;  %v1004_v20 = vadd.f32 %v984_v13, %v844_v48  ;;  %v1015_v32 = vadd.f32 %v6597_v9, %v1005_v25  ;;  %v999_v34 = vadd.f32 %v5605_v14, %v880_v30  ;;  %v1256_v13 = vpop.permute.xlu1 %1255 }
 0x1d9   : > { %v993_v22 = vpop.f32.mrf.mxu1 }
 0x1da   : > { %4933 = vmatmul.mubr.msk.f32.vlgmr.msra.gmra.mxu1 %vm1412_vm0, %v1018_v17  ;;  %v1014_v26 = vadd.f32 %v6597_v9, %v1004_v20  ;;  %v994_v27 = vadd.f32 %v993_v22, %v878_v21  ;;  %v1021_v38 = vmax.f32 %v1015_v32, 0.0  ;;  %v1007_v39 = vadd.f32 %v5584_v49, %v999_v34 }
 0x1db   : > { %v5620_v23 = vpop.f32.mrf.mxu1  ;;  %1620 = vmatprep.mubr.f32.mxu1 %v6131_v2 }
 0x1dc   : > { %v1020_v33 = vmax.f32 %v1014_v26, 0.0  ;;  %v1006_v35 = vadd.f32 %v994_v27, %v854_v53  ;;  %v1017_v44 = vadd.f32 %v6597_v9, %v1007_v39  ;;  %v1258_v21 = vpop.permute.xlu1 %1257 }
 0x1dd   : > { %v1212_v28 = vpop.f32.mrf.mxu1 }
 0x1de   : > { %4934 = vmatmul.mubr.msk.f32.gmra.mxu1 %vm1412_vm0, %v1019_v24  ;;  %v1016_v40 = vadd.f32 %v6597_v9, %v1006_v35  ;;  %v1023_v49 = vmax.f32 %v1017_v44, 0.0 }
 0x1df   : > { %v5623_v31 = vpop.f32.mrf.mxu1  ;;  %1626 = vmatprep.mubr.f32.mxu1 %v6131_v2 }
 0x1e0   : > { %v1022_v47 = vmax.f32 %v1016_v40, 0.0 }
 0x1e1   : > { %v1222_v36 = vpop.f32.mrf.mxu1 }
 0x1e2   : > { %4935 = vmatmul.mubr.msk.f32.gmra.mxu1 %vm1412_vm0, %v1020_v33 }
 0x1e3   : > { %v5626_v37 = vpop.f32.mrf.mxu1  ;;  %1632 = vmatprep.mubr.f32.mxu1 %v6131_v2 }
 0x1e5   : > { %v1232_v42 = vpop.f32.mrf.mxu1 }
 0x1e6   : > { %4936 = vmatmul.mubr.msk.f32.gmra.mxu1 %vm1412_vm0, %v1021_v38 }
 0x1e7   : > { %v5641_v43 = vpop.f32.mrf.mxu1  ;;  %1638 = vmatprep.mubr.f32.mxu1 %v6131_v2 }
 0x1e8   : > { %v1339_v48 = vadd.f32 %v5641_v43, %v1250_v29 }
 0x1e9   : > { %v1333_v50 = vpop.f32.mrf.mxu1 }
 0x1ea   : > { %v1334_v53 = vadd.f32 %v1333_v50, %v1248_v46  ;;  %4937 = vmatmul.mubr.msk.f32.gmra.mxu1 %vm1412_vm0, %v1022_v47  ;;  %v1363_v56 = vadd.f32 %v5620_v23, %v1339_v48 }
 0x1eb   : > { %v5644_v55 = vpop.f32.mrf.mxu1  ;;  %1644 = vmatprep.mubr.f32.mxu1 %v6131_v2 }
 0x1ec   : > { %v1362_v62 = vadd.f32 %v1334_v53, %v1212_v28  ;;  %v1369_v10 = vadd.f32 %v1363_v56, %v6597_v9  ;;  %v1349_v46 = vadd.f32 %v5644_v55, %v1254_v54 }
 0x1ed   : > { %v1343_v63 = vpop.f32.mrf.mxu1 }
 0x1ee   : > { %v1368_v1 = vadd.f32 %v1362_v62, %v6597_v9  ;;  %v1344_v4 = vadd.f32 %v1343_v63, %v1252_v41  ;;  %4938 = vmatmul.mubr.msk.f32.gmra.mxu1 %vm1412_vm0, %v1023_v49  ;;  %v1375_v15 = vmax.f32 %v1369_v10, 0.0  ;;  %v1365_v17 = vadd.f32 %v5623_v31, %v1349_v46 }
 0x1ef   : > { %v5647_v8 = vpop.f32.mrf.mxu1 }
 0x1f0   : > { %v1374_v11 = vmax.f32 %v1368_v1, 0.0  ;;  %v1364_v12 = vadd.f32 %v1344_v4, %v1222_v36  ;;  %v1371_v22 = vadd.f32 %v1365_v17, %v6597_v9  ;;  %v1359_v24 = vadd.f32 %v5647_v8, %v1258_v21  ;;  %v2033_v21 = vld [vmem:[%s8465_s6 + $0x50] sm:$0xff] }
 0x1f1   : > { %v1353_v14 = vpop.f32.mrf.mxu1 }
 0x1f2   : > { %4927 = vmatmul.mubr.msk.f32.vlgmr.msra.gmra.mxu0 %vm1412_vm0, %v1374_v11  ;;  %v1370_v18 = vadd.f32 %v1364_v12, %v6597_v9  ;;  %v1354_v20 = vadd.f32 %v1353_v14, %v1256_v13  ;;  %v1377_v26 = vmax.f32 %v1371_v22, 0.0  ;;  %v1367_v27 = vadd.f32 %v5626_v37, %v1359_v24  ;;  %v2032_v22 = vld [vmem:[%s8465_s6 + $0x48] sm:$0xff]  ;;  %v2030_v24 = vld [vmem:[%s8465_s6 + $0x38] sm:$0xff] }
 0x1f3   : > { %1501 = vmatprep.mubr.f32.mxu0 %v6131_v2 }
 0x1f4   : > { %v1376_v23 = vmax.f32 %v1370_v18, 0.0  ;;  %v1366_v25 = vadd.f32 %v1354_v20, %v1232_v42  ;;  %v1373_v29 = vadd.f32 %v1367_v27, %v6597_v9  ;;  %v2035_v18 = vld [vmem:[%s8465_s6 + $0x60] sm:$0xff]  ;;  %v2034_v20 = vld [vmem:[%s8465_s6 + $0x58] sm:$0xff] }
 0x1f6   : > { %4928 = vmatmul.mubr.msk.f32.gmra.mxu0 %vm1412_vm0, %v1375_v15  ;;  %v1372_v28 = vadd.f32 %v1366_v25, %v6597_v9  ;;  %v1379_v31 = vmax.f32 %v1373_v29, 0.0 }
 0x1f7   : > { %1507 = vmatprep.mubr.f32.mxu0 %v6131_v2 }
 0x1f8   : > { %v1378_v30 = vmax.f32 %v1372_v28, 0.0 }
 0x1fa   : > { %4929 = vmatmul.mubr.msk.f32.gmra.mxu0 %vm1412_vm0, %v1376_v23  ;;  %v2031_v23 = vld [vmem:[%s8465_s6 + $0x40] sm:$0xff] }
 0x1fb   : > { %1513 = vmatprep.mubr.f32.mxu0 %v6131_v2 }
 0x1fe   : > { %4930 = vmatmul.mubr.msk.f32.gmra.mxu0 %vm1412_vm0, %v1377_v26 }
 0x1ff   : > { %1519 = vmatprep.mubr.f32.mxu0 %v6131_v2 }
 0x202   : > { %4931 = vmatmul.mubr.msk.f32.gmra.mxu0 %vm1412_vm0, %v1378_v30 }
 0x203   : > { %1525 = vmatprep.mubr.f32.mxu0 %v6131_v2 }
 0x206   : > { %4932 = vmatmul.mubr.msk.f32.gmra.mxu0 %vm1412_vm0, %v1379_v31  ;;  %v1878_v31 = vsub.s32 1, %v6311_v16 }
 0x207   : > { %5660 = vmatprep.mubr.msk.f32.mxu0 %vm745_vm3, %v6318_v19 }
 0x29a   : > { %v1616_v32 = vpop.f32.mrf.mxu1 }
 0x29c   : > { %v1618_v33 = vpop.f32.mrf.mxu1 }
 0x29e   : > { %v1622_v34 = vpop.f32.mrf.mxu1 }
 0x2a0   : > { %v1624_v35 = vpop.f32.mrf.mxu1 }
 0x2a2   : > { %v1628_v36 = vpop.f32.mrf.mxu1 }
 0x2a4   : > { %v1630_v37 = vpop.f32.mrf.mxu1 }
 0x2a6   : > { %v1634_v9 = vpop.f32.mrf.mxu1 }
 0x2a8   : > { %v1636_v43 = vpop.f32.mrf.mxu1 }
 0x2aa   : > { %v1640_v48 = vpop.f32.mrf.mxu1 }
 0x2ac   : > { %v1642_v55 = vpop.f32.mrf.mxu1 }
 0x2ae   : > { %v1646_v63 = vpop.f32.mrf.mxu1 }
 0x2b0   : > { %v1648_v10 = vpop.f32.mrf.mxu1 }
 0x2b2   : > { %v1497_v38 = vpop.f32.mrf.mxu0 }
 0x2b3   : > { %v6635_v39 = vadd.f32 %v1616_v32, %v1497_v38 }
 0x2b4   : > { %v1499_v40 = vpop.f32.mrf.mxu0 }
 0x2b5   : > { %1755 = vrot.lane.b32.xlu0 %v6635_v39, %s8491_s1  ;;  %v1619_v17 = vadd.f32 %v1618_v33, %v1499_v40 }
 0x2b6   : > { %v1503_v41 = vpop.f32.mrf.mxu0 }
 0x2b7   : > { %v1623_v42 = vadd.f32 %v1622_v34, %v1503_v41 }
 0x2b8   : > { %v1505_v44 = vpop.f32.mrf.mxu0 }
 0x2b9   : > { %1757 = vrot.lane.b32.xlu1 %v1623_v42, %s8491_s1  ;;  %v1625_v15 = vadd.f32 %v1624_v35, %v1505_v44 }
 0x2ba   : > { %v1509_v19 = vpop.f32.mrf.mxu0 }
 0x2bb   : > { %v1629_v47 = vadd.f32 %v1628_v36, %v1509_v19  ;;  %v1879_v36 = vrot.slane %v6593_v61, %v1878_v31 }
 0x2bc   : > { %v1511_v50 = vpop.f32.mrf.mxu0 }
 0x2bd   : > { %1759 = vrot.lane.b32.xlu0 %v1629_v47, %s8491_s1  ;;  %v1631_v14 = vadd.f32 %v1630_v37, %v1511_v50 }
 0x2be   : > { %v1515_v53 = vpop.f32.mrf.mxu0 }
 0x2bf   : > { %v1635_v54 = vadd.f32 %v1634_v9, %v1515_v53 }
 0x2c0   : > { %v1517_v49 = vpop.f32.mrf.mxu0 }
 0x2c1   : > { %1761 = vrot.lane.b32.xlu1 %v1635_v54, %s8491_s1  ;;  %v1637_v13 = vadd.f32 %v1636_v43, %v1517_v49 }
 0x2c2   : > { %v1521_v56 = vpop.f32.mrf.mxu0 }
 0x2c3   : > { %v1641_v62 = vadd.f32 %v1640_v48, %v1521_v56 }
 0x2c4   : > { %v1523_v1 = vpop.f32.mrf.mxu0 }
 0x2c5   : > { %1763 = vrot.lane.b32.xlu0 %v1641_v62, %s8491_s1  ;;  %v1643_v12 = vadd.f32 %v1642_v55, %v1523_v1 }
 0x2c6   : > { %v1527_v4 = vpop.f32.mrf.mxu0 }
 0x2c7   : > { %v1647_v8 = vadd.f32 %v1646_v63, %v1527_v4 }
 0x2c8   : > { %v1529_v11 = vpop.f32.mrf.mxu0 }
 0x2c9   : > { %v1649_v46 = vadd.f32 %v1648_v10, %v1529_v11  ;;  %1765 = vrot.lane.b32.xlu1 %v1647_v8, %s8491_s1 }
 0x2cb   : > { %5648 = vmatprep.subr.msk.mxu0 %vm764_vm4, %v1649_v46 }
 0x2cc   : > { %5649 = vmatpush3.msk.msra.mxu0 %vm764_vm4, %v1649_v46 }
 0x2cd   : > { %5650 = vmatprep.subr.mxu0 %v1643_v12 }
 0x2ce   : > { %5651 = vmatpush3.msra.mxu0 %v1643_v12 }
 0x2cf   : > { %5652 = vmatprep.subr.mxu0 %v1637_v13 }
 0x2d0   : > { %5653 = vmatpush3.msra.mxu0 %v1637_v13 }
 0x2d1   : > { %5654 = vmatprep.subr.mxu0 %v1631_v14 }
 0x2d2   : > { %5655 = vmatpush3.msra.mxu0 %v1631_v14 }
 0x2d3   : > { %5656 = vmatprep.subr.mxu0 %v1625_v15 }
 0x2d4   : > { %5657 = vmatpush3.msra.mxu0 %v1625_v15 }
 0x2d5   : > { %5658 = vmatprep.subr.mxu0 %v1619_v17 }
 0x2d6   : > { %5659 = vmatpush3.msra.mxu0 %v1619_v17 }
 0x2d7   : > { %5661 = vmatmul.mubr.msk.f32.vlgmr.msra.gmra.mxu0 %vm745_vm3, %v6361_v45  ;;  %5669 = vmatprep.subr.msk.mxu0 %vm764_vm4, %v1647_v8  ;;  %v1899_v45 = vld [vmem:[%s8464_s5 + $0x38] sm:$0xff] }
 0x2d8   : > { %5670 = vmatpush3.msk.msra.mxu0 %vm764_vm4, %v1647_v8  ;;  %5663 = vmatprep.mubr.msk.f32.mxu0 %vm745_vm3, %v6376_v51  ;;  %v1898_v51 = vld [vmem:[%s8464_s5 + $0x30] sm:$0xff] }
 0x2d9   : > { %5671 = vmatprep.subr.mxu0 %v1641_v62  ;;  %5690 = vmatprep.subr.mxu1 %v1899_v45 }
 0x2da   : > { %5672 = vmatpush3.msra.mxu0 %v1641_v62  ;;  %5691 = vmatpush3.msra.mxu1 %v1899_v45 }
 0x2db   : > { %5664 = vmatmul.mubr.msk.f32.gmra.mxu0 %vm745_vm3, %v6381_v52  ;;  %5673 = vmatprep.subr.mxu0 %v1635_v54  ;;  %v1897_v52 = vld [vmem:[%s8464_s5 + $0x28] sm:$0xff] }
 0x2dc   : > { %5674 = vmatpush3.msra.mxu0 %v1635_v54  ;;  %5666 = vmatprep.mubr.msk.f32.mxu0 %vm745_vm3, %v6394_v57  ;;  %v1896_v57 = vld [vmem:[%s8464_s5 + $0x20] sm:$0xff] }
 0x2dd   : > { %5675 = vmatprep.subr.mxu0 %v1629_v47  ;;  %5692 = vmatprep.subr.mxu1 %v1898_v51 }
 0x2de   : > { %5676 = vmatpush3.msra.mxu0 %v1629_v47  ;;  %5693 = vmatpush3.msra.mxu1 %v1898_v51  ;;  %v2029_v51 = vld [vmem:[%s8465_s6 + $0x30] sm:$0xff] }
 0x2df   : > { %5667 = vmatmul.mubr.msk.f32.gmra.mxu0 %vm745_vm3, %v6399_v58  ;;  %5677 = vmatprep.subr.mxu0 %v1623_v42  ;;  %v1895_v58 = vld [vmem:[%s8464_s5 + $0x18] sm:$0xff] }
 0x2e0   : > { %5678 = vmatpush3.msra.mxu0 %v1623_v42  ;;  %5681 = vmatprep.mubr.msk.f32.mxu0 %vm745_vm3, %v6404_v60  ;;  %v1894_v60 = vld [vmem:[%s8464_s5 + $0x10] sm:$0xff] }
 0x2e1   : > { %5679 = vmatprep.subr.mxu0 %v6635_v39  ;;  %5694 = vmatprep.subr.mxu1 %v1897_v52 }
 0x2e2   : > { %5680 = vmatpush3.msra.mxu0 %v6635_v39  ;;  %5695 = vmatpush3.msra.mxu1 %v1897_v52  ;;  %v2028_v52 = vld [vmem:[%s8465_s6 + $0x28] sm:$0xff] }
 0x2e3   : > { %5682 = vmatmul.mubr.msk.f32.vlgmr.msra.gmra.mxu0 %vm745_vm3, %v6418_v0  ;;  %5696 = vmatprep.subr.mxu1 %v1896_v57  ;;  %v1893_v0 = vld [vmem:[%s8464_s5 + $0x8] sm:$0xff] }
 0x2e4   : > { %5684 = vmatprep.mubr.msk.f32.mxu0 %vm745_vm3, %v6423_v3  ;;  %5697 = vmatpush3.msra.mxu1 %v1896_v57  ;;  %v1892_v3 = vld [vmem:[%s8464_s5] sm:$0xff] }
 0x2e5   : > { %5698 = vmatprep.subr.mxu1 %v1895_v58  ;;  %v2027_v57 = vld [vmem:[%s8465_s6 + $0x20] sm:$0xff] }
 0x2e6   : > { %5699 = vmatpush3.msra.mxu1 %v1895_v58  ;;  %v2026_v58 = vld [vmem:[%s8465_s6 + $0x18] sm:$0xff] }
 0x2e7   : > { %5685 = vmatmul.mubr.msk.f32.gmra.mxu0 %vm745_vm3, %v6435_v5  ;;  %5700 = vmatprep.subr.mxu1 %v1894_v60  ;;  %v2038_v5 = vld [vmem:[%s8465_s6 + $0x78] sm:$0xff] }
 0x2e8   : > { %5687 = vmatprep.mubr.msk.f32.mxu0 %vm745_vm3, %v6438_v6  ;;  %5701 = vmatpush3.msra.mxu1 %v1894_v60  ;;  %v2037_v6 = vld [vmem:[%s8465_s6 + $0x70] sm:$0xff] }
 0x2e9   : > { %5702 = vmatprep.subr.mxu1 %v1893_v0  ;;  %2085 = vmatprep.subr.mxu0 %v2038_v5  ;;  %v2025_v60 = vld [vmem:[%s8465_s6 + $0x10] sm:$0xff]  ;;  %v1902_v5 = vsub.s32 2, %v6311_v16 }
 0x2ea   : > { %5703 = vmatpush3.msra.mxu1 %v1893_v0  ;;  %2086 = vmatpush1.msra.mxu0 %v2037_v6  ;;  %v2024_v0 = vld [vmem:[%s8465_s6 + $0x8] sm:$0xff] }
 0x2eb   : > { %5688 = vmatmul.mubr.msk.f32.gmra.mxu0 %vm745_vm3, %v6446_v7  ;;  %5704 = vmatprep.subr.mxu1 %v1892_v3  ;;  %v2036_v7 = vld [vmem:[%s8465_s6 + $0x68] sm:$0xff] }
 0x2ec   : > { %2133 = vmatprep.mubr.f32.mxu0 %v6131_v2  ;;  %5705 = vmatpush3.msra.mxu1 %v1892_v3  ;;  %v2023_v3 = vld [vmem:[%s8465_s6] sm:$0xff] }
 0x2ed   : > { %2087 = vmatprep.subr.mxu0 %v2036_v7  ;;  %v1903_v7 = vrot.slane %v6593_v61, %v1902_v5 }
 0x2ee   : > { %2088 = vmatpush1.msra.mxu0 %v2035_v18 }
 0x2ef   : > { %2089 = vmatprep.subr.mxu0 %v2034_v20 }
 0x2f0   : > { %2090 = vmatpush1.msra.mxu0 %v2033_v21 }
 0x2f1   : > { %2091 = vmatprep.subr.mxu0 %v2032_v22 }
 0x2f2   : > { %2092 = vmatpush1.msra.mxu0 %v2031_v23 }
 0x2f3   : > { %2093 = vmatprep.subr.mxu0 %v2030_v24 }
 0x2f4   : > { %2094 = vmatpush1.msra.mxu0 %v2029_v51 }
 0x2f5   : > { %2095 = vmatprep.subr.mxu0 %v2028_v52 }
 0x2f6   : > { %2096 = vmatpush1.msra.mxu0 %v2027_v57 }
 0x2f7   : > { %2097 = vmatprep.subr.mxu0 %v2026_v58 }
 0x2f8   : > { %2098 = vmatpush1.msra.mxu0 %v2025_v60 }
 0x2f9   : > { %2099 = vmatprep.subr.mxu0 %v2024_v0 }
 0x2fa   : > { %2100 = vmatpush1.msra.mxu0 %v2023_v3 }
 0x327   : > { %v1756_v35 = vpop.permute.xlu0 %1755 }
 0x32b   : > { %v1758_v32 = vpop.permute.xlu1 %1757 }
 0x32f   : > { %v1760_v43 = vpop.permute.xlu0 %1759 }
 0x333   : > { %v1762_v9 = vpop.permute.xlu1 %1761 }
 0x337   : > { %v1764_v62 = vpop.permute.xlu0 %1763 }
 0x33b   : > { %v1766_v53 = vpop.permute.xlu1 %1765 }
 0x397   : > { %v5662_v25 = vpop.f32.mrf.mxu0 }
 0x399   : > { %v1720_v26 = vpop.f32.mrf.mxu0 }
 0x39b   : > { %v5665_v27 = vpop.f32.mrf.mxu0 }
 0x39d   : > { %v1730_v28 = vpop.f32.mrf.mxu0 }
 0x39f   : > { %v5668_v29 = vpop.f32.mrf.mxu0 }
 0x3a1   : > { %v1740_v30 = vpop.f32.mrf.mxu0 }
 0x3a3   : > { %v5683_v33 = vpop.f32.mrf.mxu0 }
 0x3a4   : > { %v1847_v34 = vadd.f32 %v5683_v33, %v1758_v32 }
 0x3a5   : > { %v1841_v37 = vpop.f32.mrf.mxu0 }
 0x3a6   : > { %v1871_v38 = vadd.f32 %v5662_v25, %v1847_v34  ;;  %v1842_v39 = vadd.f32 %v1841_v37, %v1756_v35 }
 0x3a7   : > { %v5686_v40 = vpop.f32.mrf.mxu0 }
 0x3a8   : > { %v1870_v41 = vadd.f32 %v1842_v39, %v1720_v26  ;;  %v1857_v42 = vadd.f32 %v5686_v40, %v1762_v9  ;;  %v1881_v44 = vadd.f32 %v1879_v36, %v1871_v38 }
 0x3a9   : > { %v1851_v19 = vpop.f32.mrf.mxu0 }
 0x3aa   : > { %v1880_v47 = vadd.f32 %v1879_v36, %v1870_v41  ;;  %v1873_v48 = vadd.f32 %v5665_v27, %v1857_v42  ;;  %v1852_v50 = vadd.f32 %v1851_v19, %v1760_v43  ;;  %v1887_v63 = vmax.f32 %v1881_v44, 0.0 }
 0x3ab   : > { %v5689_v54 = vpop.f32.mrf.mxu0 }
 0x3ac   : > { %v1886_v55 = vmax.f32 %v1880_v47, 0.0  ;;  %v1872_v49 = vadd.f32 %v1852_v50, %v1730_v28  ;;  %v1867_v56 = vadd.f32 %v5689_v54, %v1766_v53  ;;  %v1883_v1 = vadd.f32 %v1879_v36, %v1873_v48 }
 0x3ad   : > { %v1861_v4 = vpop.f32.mrf.mxu0 }
 0x3ae   : > { %v1882_v8 = vadd.f32 %v1879_v36, %v1872_v49  ;;  %v1875_v10 = vadd.f32 %v5668_v29, %v1867_v56  ;;  %v1862_v11 = vadd.f32 %v1861_v4, %v1764_v62  ;;  %5706 = vmatprep.mubr.msk.f32.mxu1 %vm1412_vm0, %v1886_v55  ;;  %v1889_v13 = vmax.f32 %v1883_v1, 0.0 }
 0x3af   : > { %5707 = vmatmul.mubr.msk.f32.vlgmr.msra.gmra.mxu1 %vm1412_vm0, %v1887_v63 }
 0x3b0   : > { %v1888_v46 = vmax.f32 %v1882_v8, 0.0  ;;  %v1874_v12 = vadd.f32 %v1862_v11, %v1740_v30  ;;  %v1885_v14 = vadd.f32 %v1879_v36, %v1875_v10 }
 0x3b2   : > { %v1884_v15 = vadd.f32 %v1879_v36, %v1874_v12  ;;  %5709 = vmatprep.mubr.msk.f32.mxu1 %vm1412_vm0, %v1888_v46  ;;  %v1891_v45 = vmax.f32 %v1885_v14, 0.0  ;;  %v6801_v36 = vld [vmem:[%s8466_s7] sm:$0x3] }
 0x3b3   : > { %5710 = vmatmul.mubr.msk.f32.gmra.mxu1 %vm1412_vm0, %v1889_v13  ;;  %v2044_v37 = vrot.slane %v6801_v36, %v6588_v59 }
 0x3b4   : > { %v1890_v17 = vmax.f32 %v1884_v15, 0.0  ;;  %v2048_v15 = vrot.slane %v6801_v36, %v1878_v31 }
 0x3b6   : > { %5712 = vmatprep.mubr.msk.f32.mxu1 %vm1412_vm0, %v1890_v17 }
 0x3b7   : > { %5713 = vmatmul.mubr.msk.f32.gmra.mxu1 %vm1412_vm0, %v1891_v45 }
 0x46f   : > { %v5708_v6 = vpop.f32.mrf.mxu1 }
 0x470   : > { %v6759_v22 = vadd.f32 %v5708_v6, %v1903_v7 }
 0x471   : > { %v1988_v18 = vpop.f32.mrf.mxu1 }
 0x472   : > { %v6757_v20 = vadd.f32 %v1988_v18, %v1903_v7  ;;  %v2018_v25 = vmax.f32 %v6759_v22, 0.0 }
 0x473   : > { %v5711_v21 = vpop.f32.mrf.mxu1 }
 0x474   : > { %v2017_v23 = vmax.f32 %v6757_v20, 0.0  ;;  %v6773_v27 = vadd.f32 %v5711_v21, %v1903_v7 }
 0x475   : > { %v1998_v24 = vpop.f32.mrf.mxu1 }
 0x476   : > { %4959 = vmatmul.mubr.msk.f32.vlgmr.msra.gmra.mxu0 %vm1412_vm0, %v2017_v23  ;;  %v6767_v26 = vadd.f32 %v1998_v24, %v1903_v7  ;;  %v2020_v30 = vmax.f32 %v6773_v27, 0.0 }
 0x477   : > { %2139 = vmatprep.mubr.f32.mxu0 %v6131_v2  ;;  %v5714_v61 = vpop.f32.mrf.mxu1 }
 0x478   : > { %v2019_v28 = vmax.f32 %v6767_v26, 0.0  ;;  %v6787_v33 = vadd.f32 %v5714_v61, %v1903_v7 }
 0x479   : > { %v2008_v29 = vpop.f32.mrf.mxu1 }
 0x47a   : > { %4960 = vmatmul.mubr.msk.f32.gmra.mxu0 %vm1412_vm0, %v2018_v25  ;;  %v6781_v32 = vadd.f32 %v2008_v29, %v1903_v7  ;;  %v2022_v35 = vmax.f32 %v6787_v33, 0.0 }
 0x47b   : > { %2145 = vmatprep.mubr.f32.mxu0 %v6131_v2 }
 0x47c   : > { %v2021_v34 = vmax.f32 %v6781_v32, 0.0 }
 0x47e   : > { %4961 = vmatmul.mubr.msk.f32.gmra.mxu0 %vm1412_vm0, %v2019_v28 }
 0x47f   : > { %2151 = vmatprep.mubr.f32.mxu0 %v6131_v2 }
 0x482   : > { %4962 = vmatmul.mubr.msk.f32.gmra.mxu0 %vm1412_vm0, %v2020_v30 }
 0x483   : > { %2157 = vmatprep.mubr.f32.mxu0 %v6131_v2 }
 0x486   : > { %4963 = vmatmul.mubr.msk.f32.gmra.mxu0 %vm1412_vm0, %v2021_v34 }
 0x487   : > { %2163 = vmatprep.mubr.f32.mxu0 %v6131_v2 }
 0x48a   : > { %4964 = vmatmul.mubr.msk.f32.gmra.mxu0 %vm1412_vm0, %v2022_v35 }
 0x536   : > { %v2135_v38 = vpop.f32.mrf.mxu0 }
 0x537   : > { %v2136_v39 = vadd.f32 %v2135_v38, %v2044_v37 }
 0x538   : > { %v6805_v9 = vpop.f32.mrf.mxu0 }
 0x539   : > { %5727 = vmatprep.mubr.msk.f32.mxu1 %vm2188_vm1, %v2136_v39  ;;  %v6906_v5 = vadd.f32 %v6805_v9, %v2048_v15 }
 0x53a   : > { %v2141_v40 = vpop.f32.mrf.mxu0 }
 0x53b   : > { %v2142_v49 = vadd.f32 %v2141_v40, %v2044_v37 }
 0x53c   : > { %v6808_v41 = vpop.f32.mrf.mxu0 }
 0x53d   : > { %v6902_v0 = vadd.f32 %v6808_v41, %v2048_v15 }
 0x53e   : > { %v2147_v42 = vpop.f32.mrf.mxu0 }
 0x53f   : > { %v6820_v54 = vadd.f32 %v2147_v42, %v2044_v37 }
 0x540   : > { %v6810_v43 = vpop.f32.mrf.mxu0 }
 0x541   : > { %v2150_v58 = vadd.f32 %v6810_v43, %v2048_v15 }
 0x542   : > { %v2153_v44 = vpop.f32.mrf.mxu0 }
 0x543   : > { %v6828_v56 = vadd.f32 %v2153_v44, %v2044_v37 }
 0x544   : > { %v6812_v19 = vpop.f32.mrf.mxu0 }
 0x545   : > { %v2156_v57 = vadd.f32 %v6812_v19, %v2048_v15 }
 0x546   : > { %v2159_v47 = vpop.f32.mrf.mxu0 }
 0x547   : > { %v6814_v48 = vadd.f32 %v2159_v47, %v2044_v37 }
 0x548   : > { %v6816_v50 = vpop.f32.mrf.mxu0 }
 0x549   : > { %2184 = vrot.lane.b32.xlu1 %v6814_v48, %s8491_s1  ;;  %v6883_v31 = vadd.f32 %v6816_v50, %v2048_v15 }
 0x54a   : > { %v2165_v53 = vpop.f32.mrf.mxu0 }
 0x54b   : > { %v6822_v55 = vadd.f32 %v2165_v53, %v2044_v37 }
 0x54c   : > { %v2167_v14 = vpop.f32.mrf.mxu0 }
 0x54d   : > { %2186 = vrot.lane.b32.xlu0 %v6822_v55, %s8491_s1  ;;  %2180 = vrot.lane.b32.xlu1 %v6820_v54, %s8491_s1  ;;  %v6875_v45 = vadd.f32 %v2167_v14, %v2048_v15 }
 0x551   : > { %2182 = vrot.lane.b32.xlu0 %v6828_v56, %s8491_s1  ;;  %2178 = vrot.lane.b32.xlu1 %v2142_v49, %s8491_s1 }
 0x555   : > { %2513 = vrot.lane.b32.xlu0 %v6822_v55, %s6133_s3  ;;  %2176 = vrot.lane.b32.xlu1 %v2136_v39, %s8491_s1 }
 0x559   : > { %2511 = vrot.lane.b32.xlu0 %v6814_v48, %s6133_s3  ;;  %2507 = vrot.lane.b32.xlu1 %v6820_v54, %s6133_s3 }
 0x55d   : > { %2509 = vrot.lane.b32.xlu0 %v6828_v56, %s6133_s3  ;;  %2503 = vrot.lane.b32.xlu1 %v2136_v39, %s6133_s3 }
 0x561   : > { %2505 = vrot.lane.b32.xlu0 %v2142_v49, %s6133_s3  ;;  %2493 = vrot.lane.b32.xlu1 %v2142_v49, %s6134_s30 }
 0x565   : > { %2491 = vrot.lane.b32.xlu0 %v2136_v39, %s6134_s30  ;;  %2497 = vrot.lane.b32.xlu1 %v6828_v56, %s6134_s30 }
 0x569   : > { %2495 = vrot.lane.b32.xlu0 %v6820_v54, %s6134_s30  ;;  %2501 = vrot.lane.b32.xlu1 %v6822_v55, %s6134_s30 }
 0x56d   : > { %2499 = vrot.lane.b32.xlu0 %v6814_v48, %s6134_s30 }
 0x5bb   : > { %v2185_v62 = vpop.permute.xlu1 %2184 }
 0x5bf   : > { %v2187_v63 = vpop.permute.xlu0 %2186  ;;  %v2181_v1 = vpop.permute.xlu1 %2180 }
 0x5c0   : > { %5715 = vmatprep.subr.msk.mxu1 %vm2188_vm1, %v2187_v63 }
 0x5c1   : > { %5716 = vmatpush3.xpose.msk.msra.mxu1 %vm2188_vm1, %v2187_v63 }
 0x5c2   : > { %5717 = vmatprep.subr.msk.mxu1 %vm2188_vm1, %v2185_v62 }
 0x5c3   : > { %v2183_v4 = vpop.permute.xlu0 %2182  ;;  %v2179_v8 = vpop.permute.xlu1 %2178 }
 0x5c5   : > { %5718 = vmatpush3.xpose.msk.msra.mxu1 %vm2188_vm1, %v2185_v62 }
 0x5c6   : > { %5719 = vmatprep.subr.msk.mxu1 %vm2188_vm1, %v2183_v4 }
 0x5c7   : > { %v2514_v10 = vpop.permute.xlu0 %2513  ;;  %v2177_v11 = vpop.permute.xlu1 %2176 }
 0x5c8   : > { %5757 = vmatprep.subr.msk.mxu0 %vm2188_vm1, %v2514_v10 }
 0x5c9   : > { %5720 = vmatpush3.xpose.msk.msra.mxu1 %vm2188_vm1, %v2183_v4  ;;  %5758 = vmatpush3.xpose.msk.msra.mxu0 %vm2188_vm1, %v2514_v10 }
 0x5ca   : > { %5721 = vmatprep.subr.msk.mxu1 %vm2188_vm1, %v2181_v1 }
 0x5cb   : > { %v2512_v46 = vpop.permute.xlu0 %2511  ;;  %v2508_v13 = vpop.permute.xlu1 %2507 }
 0x5cc   : > { %5759 = vmatprep.subr.msk.mxu0 %vm2188_vm1, %v2512_v46 }
 0x5cd   : > { %5722 = vmatpush3.xpose.msk.msra.mxu1 %vm2188_vm1, %v2181_v1  ;;  %5760 = vmatpush3.xpose.msk.msra.mxu0 %vm2188_vm1, %v2512_v46 }
 0x5ce   : > { %5723 = vmatprep.subr.msk.mxu1 %vm2188_vm1, %v2179_v8 }
 0x5cf   : > { %v2510_v12 = vpop.permute.xlu0 %2509  ;;  %v2504_v51 = vpop.permute.xlu1 %2503 }
 0x5d0   : > { %5761 = vmatprep.subr.msk.mxu0 %vm2188_vm1, %v2510_v12 }
 0x5d1   : > { %5724 = vmatpush3.xpose.msk.msra.mxu1 %vm2188_vm1, %v2179_v8  ;;  %5762 = vmatpush3.xpose.msk.msra.mxu0 %vm2188_vm1, %v2510_v12 }
 0x5d2   : > { %5725 = vmatprep.subr.msk.mxu1 %vm2188_vm1, %v2177_v11  ;;  %5763 = vmatprep.subr.msk.mxu0 %vm2188_vm1, %v2508_v13 }
 0x5d3   : > { %v2506_v17 = vpop.permute.xlu0 %2505  ;;  %v2494_v60 = vpop.permute.xlu1 %2493 }
 0x5d5   : > { %5726 = vmatpush3.xpose.msk.msra.mxu1 %vm2188_vm1, %v2177_v11  ;;  %5764 = vmatpush3.xpose.msk.msra.mxu0 %vm2188_vm1, %v2508_v13 }
 0x5d6   : > { %5736 = vmatprep.subr.msk.mxu1 %vm764_vm4, %v6875_v45  ;;  %5765 = vmatprep.subr.msk.mxu0 %vm2188_vm1, %v2506_v17 }
 0x5d7   : > { %v2492_v52 = vpop.permute.xlu0 %2491  ;;  %v2498_v6 = vpop.permute.xlu1 %2497 }
 0x5d8   : > { %5728 = vmatmul.mubr.msk.f32.vlgmr.msra.gmra.mxu1 %vm2188_vm1, %v2142_v49  ;;  %5769 = vmatprep.mubr.msk.f32.mxu0 %vm2188_vm1, %v2492_v52 }
 0x5d9   : > { %5730 = vmatprep.mubr.msk.f32.mxu1 %vm2188_vm1, %v6820_v54  ;;  %5737 = vmatpush3.msk.msra.mxu1 %vm764_vm4, %v6875_v45 }
 0x5da   : > { %5766 = vmatpush3.xpose.msk.msra.mxu0 %vm2188_vm1, %v2506_v17  ;;  %5738 = vmatprep.subr.mxu1 %v6883_v31 }
 0x5db   : > { %5767 = vmatprep.subr.msk.mxu0 %vm2188_vm1, %v2504_v51  ;;  %5739 = vmatpush3.msra.mxu1 %v6883_v31  ;;  %v2496_v3 = vpop.permute.xlu0 %2495  ;;  %v2502_v18 = vpop.permute.xlu1 %2501 }
 0x5dc   : > { %5731 = vmatmul.mubr.msk.f32.gmra.mxu1 %vm2188_vm1, %v6828_v56  ;;  %5740 = vmatprep.subr.mxu1 %v2156_v57 }
 0x5dd   : > { %5733 = vmatprep.mubr.msk.f32.mxu1 %vm2188_vm1, %v6814_v48  ;;  %5741 = vmatpush3.msra.mxu1 %v2156_v57 }
 0x5de   : > { %5768 = vmatpush3.xpose.msk.msra.mxu0 %vm2188_vm1, %v2504_v51  ;;  %5742 = vmatprep.subr.mxu1 %v2150_v58 }
 0x5df   : > { %5743 = vmatpush3.msra.mxu1 %v2150_v58  ;;  %v2500_v7 = vpop.permute.xlu0 %2499 }
 0x5e0   : > { %5734 = vmatmul.mubr.msk.f32.gmra.mxu1 %vm2188_vm1, %v6822_v55  ;;  %5744 = vmatprep.subr.mxu1 %v6902_v0 }
 0x5e1   : > { %5770 = vmatmul.mubr.msk.f32.vlgmr.msra.gmra.mxu0 %vm2188_vm1, %v2494_v60  ;;  %5745 = vmatpush3.msra.mxu1 %v6902_v0 }
 0x5e2   : > { %5772 = vmatprep.mubr.msk.f32.mxu0 %vm2188_vm1, %v2496_v3  ;;  %5746 = vmatprep.subr.mxu1 %v6906_v5 }
 0x5e3   : > { %5747 = vmatpush3.msra.mxu1 %v6906_v5 }
 0x5e5   : > { %5773 = vmatmul.mubr.msk.f32.gmra.mxu0 %vm2188_vm1, %v2498_v6 }
 0x5e6   : > { %5775 = vmatprep.mubr.msk.f32.mxu0 %vm2188_vm1, %v2500_v7 }
 0x5e9   : > { %5776 = vmatmul.mubr.msk.f32.gmra.mxu0 %vm2188_vm1, %v2502_v18 }
 0x698   : > { %v5729_v21 = vpop.f32.mrf.mxu1 }
 0x699   : > { %v2311_v24 = vsel %vm745_vm3, %v5729_v21, -inf }
 0x69a   : > { %2312 = vmax.xlane.f32.xlu1 %v2311_v24  ;;  %v2279_v61 = vpop.f32.mrf.mxu1 }
 0x69b   : > { %v2308_v29 = vsel %vm745_vm3, %v2279_v61, -inf }
 0x69c   : > { %2309 = vmax.xlane.f32.xlu0 %v2308_v29  ;;  %v5732_v36 = vpop.f32.mrf.mxu1 }
 0x69d   : > { %v2317_v42 = vsel %vm745_vm3, %v5732_v36, -inf }
 0x69e   : > { %v2289_v37 = vpop.f32.mrf.mxu1 }
 0x69f   : > { %v2314_v38 = vsel %vm745_vm3, %v2289_v37, -inf }
 0x6a0   : > { %2315 = vmax.xlane.f32.xlu0 %v2314_v38  ;;  %v6922_v39 = vpop.f32.mrf.mxu1 }
 0x6a1   : > { %v5771_v9 = vpop.f32.mrf.mxu0  ;;  %v2324_v19 = vsel %vm2323_vm2, %v6922_v39, -inf }
 0x6a2   : > { %v2299_v40 = vpop.f32.mrf.mxu1  ;;  %v2637_v50 = vsel %vm745_vm3, %v5771_v9, -inf }
 0x6a3   : > { %v2605_v41 = vpop.f32.mrf.mxu0  ;;  %v2320_v43 = vsel %vm745_vm3, %v2299_v40, -inf }
 0x6a4   : > { %2318 = vmax.xlane.f32.xlu0 %v2317_v42  ;;  %2321 = vmax.xlane.f32.xlu1 %v2320_v43  ;;  %v2634_v47 = vsel %vm745_vm3, %v2605_v41, -inf }
 0x6a5   : > { %v6926_v44 = vpop.f32.mrf.mxu0 }
 0x6a6   : > { %v2643_v54 = vsel %vm745_vm3, %v6926_v44, -inf }
 0x6a7   : > { %v6931_v48 = vpop.f32.mrf.mxu0 }
 0x6a8   : > { %2325 = vmax.xlane.f32.xlu0 %v2324_v19  ;;  %2635 = vmax.xlane.f32.xlu1 %v2634_v47  ;;  %v2640_v53 = vsel %vm745_vm3, %v6931_v48, -inf }
 0x6ac   : > { %2638 = vmax.xlane.f32.xlu0 %v2637_v50  ;;  %2641 = vmax.xlane.f32.xlu1 %v2640_v53 }
 0x6b0   : > { %2644 = vmax.xlane.f32.xlu0 %v2643_v54 }
 0x6bd   : > { %2715 = vrot.lane.b32.xlu1 %v6875_v45, %s6134_s30 }
 0x6c1   : > { %2711 = vrot.lane.b32.xlu1 %v2156_v57, %s6134_s30 }
 0x6c5   : > { %2709 = vrot.lane.b32.xlu1 %v2150_v58, %s6134_s30 }
 0x6c6   : > { %2713 = vrot.lane.b32.xlu0 %v6883_v31, %s6134_s30 }
 0x723   : > { %v2313_v55 = vpop.xlane.xlu1 %2312 }
 0x724   : > { %v2328_v49 = vsub.f32 %v5729_v21, %v2313_v55 }
 0x725   : > { %v2310_v56 = vpop.xlane.xlu0 %2309 }
 0x726   : > { %v2335_v62 = vmul.f32 1.442695, %v2328_v49  ;;  %v2327_v63 = vsub.f32 %v2279_v61, %v2310_v56  ;;  %v6987_v56 = vpop.f32.mrf.mxu0 }
 0x728   : > { %5995 = vpow2.f32 %v2335_v62  ;;  %v2333_v1 = vmul.f32 1.442695, %v2327_v63  ;;  %v6989_v62 = vpop.f32.mrf.mxu0  ;;  %v2649_v63 = vsel %vm2323_vm2, %v6987_v56, -inf }
 0x729   : > { %v2316_v4 = vpop.xlane.xlu0 %2315 }
 0x72a   : > { %5997 = vpow2.f32 %v2333_v1  ;;  %v2329_v11 = vsub.f32 %v2289_v37, %v2316_v4 }
 0x72c   : > { %v2337_v45 = vmul.f32 1.442695, %v2329_v11 }
 0x72d   : > { %v2319_v8 = vpop.xlane.xlu0 %2318  ;;  %v2322_v10 = vpop.xlane.xlu1 %2321 }
 0x72e   : > { %v2330_v14 = vsub.f32 %v5732_v36, %v2319_v8  ;;  %v2331_v51 = vsub.f32 %v2299_v40, %v2322_v10 }
 0x730   : > { %v2339_v3 = vmul.f32 1.442695, %v2330_v14  ;;  %v2341_v21 = vmul.f32 1.442695, %v2331_v51 }
 0x731   : > { %v2326_v46 = vpop.xlane.xlu0 %2325  ;;  %v2636_v12 = vpop.xlane.xlu1 %2635 }
 0x732   : > { %v2652_v13 = vsub.f32 %v2605_v41, %v2636_v12  ;;  %v2332_v6 = vsub.f32 %v6922_v39, %v2326_v46 }
 0x734   : > { %v2658_v15 = vmul.f32 1.442695, %v2652_v13  ;;  %v2343_v61 = vmul.f32 1.442695, %v2332_v6 }
 0x735   : > { %v6944_v17 = vpop.eup %5995  ;;  %v2639_v52 = vpop.xlane.xlu0 %2638 }
 0x736   : > { %v2642_v31 = vpop.xlane.xlu1 %2641  ;;  %v2653_v57 = vsub.f32 %v5771_v9, %v2639_v52  ;;  %v2348_v58 = vsel %vm745_vm3, %v6944_v17, 0.0  ;;  %5999 = vpow2.f32 %v2658_v15 }
 0x737   : > { %v6948_v60 = vpop.eup %5997  ;;  %2349 = vadd.xlane.f32.xlu0 %v2348_v58  ;;  %6001 = vpow2.f32 %v2337_v45  ;;  %v2654_v50 = vsub.f32 %v6931_v48, %v2642_v31 }
 0x738   : > { %v2660_v7 = vmul.f32 1.442695, %v2653_v57  ;;  %v2345_v18 = vsel %vm745_vm3, %v6948_v60, 0.0 }
 0x739   : > { %2346 = vadd.xlane.f32.xlu1 %v2345_v18  ;;  %v2645_v53 = vpop.xlane.xlu0 %2644  ;;  %v2662_v54 = vmul.f32 1.442695, %v2654_v50 }
 0x73a   : > { %v6953_v24 = vpop.permute.xlu1 %2715  ;;  %6003 = vpow2.f32 %v2660_v7  ;;  %v2655_v55 = vsub.f32 %v6926_v44, %v2645_v53 }
 0x73b   : > { %5778 = vmatprep.subr.msk.mxu1 %vm764_vm4, %v6953_v24  ;;  %6005 = vpow2.f32 %v2339_v3 }
 0x73c   : > { %6007 = vpow2.f32 %v2341_v21  ;;  %v2664_v49 = vmul.f32 1.442695, %v2655_v55 }
 0x73d   : > { %6009 = vpow2.f32 %v2343_v61  ;;  %v2714_v8 = vpop.permute.xlu0 %2713 }
 0x73e   : > { %6011 = vpow2.f32 %v2662_v54  ;;  %v2712_v4 = vpop.permute.xlu1 %2711 }
 0x73f   : > { %6013 = vpow2.f32 %v2664_v49 }
 0x742   : > { %v2710_v10 = vpop.permute.xlu1 %2709 }
 0x743   : > { %v6957_v29 = vpop.eup %5999 }
 0x744   : > { %v2670_v36 = vsel %vm745_vm3, %v6957_v29, 0.0  ;;  %v6961_v37 = vpop.eup %6001 }
 0x745   : > { %2671 = vadd.xlane.f32.xlu1 %v2670_v36  ;;  %v2351_v40 = vsel %vm745_vm3, %v6961_v37, 0.0 }
 0x747   : > { %v6963_v38 = vpop.eup %6003 }
 0x748   : > { %v2673_v39 = vsel %vm745_vm3, %v6963_v38, 0.0  ;;  %v6967_v9 = vpop.eup %6005 }
 0x749   : > { %2674 = vadd.xlane.f32.xlu0 %v2673_v39  ;;  %v6971_v41 = vpop.eup %6007  ;;  %2352 = vadd.xlane.f32.xlu1 %v2351_v40  ;;  %v2354_v42 = vsel %vm745_vm3, %v6967_v9, 0.0 }
 0x74a   : > { %v6975_v43 = vpop.eup %6009  ;;  %v2357_v19 = vsel %vm745_vm3, %v6971_v41, 0.0 }
 0x74b   : > { %v2360_v47 = vsel %vm2323_vm2, %v6975_v43, 0.0 }
 0x74d   : > { %2355 = vadd.xlane.f32.xlu0 %v2354_v42  ;;  %2358 = vadd.xlane.f32.xlu1 %v2357_v19 }
 0x751   : > { %2361 = vadd.xlane.f32.xlu0 %v2360_v47 }
 0x75e   : > { %2705 = vrot.lane.b32.xlu1 %v6906_v5, %s6134_s30  ;;  %v6995_v5 = vpop.eup %6011 }
 0x75f   : > { %v2676_v44 = vsel %vm745_vm3, %v6995_v5, 0.0  ;;  %v6999_v48 = vpop.eup %6013 }
 0x760   : > { %v2679_v1 = vsel %vm745_vm3, %v6999_v48, 0.0 }
 0x767   : > { %2707 = vrot.lane.b32.xlu0 %v6902_v0, %s6134_s30  ;;  %v2646_v0 = vsel %vm745_vm3, %v6989_v62, -inf  ;;  %s532_s30 = sand.u32 1, %s6121_s22  }
 0x768   : > { %s533_s20 = scalar_lea.vmem [#allocation2], %s532_s30  ;;  %s4780_s2 = scalar_lea.sflag [#allocation3], %s532_s30 }
 0x782   : > { %2650 = vmax.xlane.f32.xlu1 %v2649_v63 }
 0x786   : > { %2647 = vmax.xlane.f32.xlu0 %v2646_v0 }
 0x78a   : > { %2677 = vadd.xlane.f32.xlu0 %v2676_v44  ;;  %v2874_v44 = vld [vmem:[%s8467_s8 + $0x38] sm:$0xff] }
 0x78b   : > { %5799 = vmatprep.subr.mxu0 %v2874_v44 }
 0x78c   : > { %5800 = vmatpush3.msra.mxu0 %v2874_v44 }
 0x78e   : > { %2680 = vadd.xlane.f32.xlu0 %v2679_v1  ;;  %v2873_v1 = vld [vmem:[%s8467_s8 + $0x30] sm:$0xff] }
 0x78f   : > { %5801 = vmatprep.subr.mxu0 %v2873_v1 }
 0x790   : > { %5802 = vmatpush3.msra.mxu0 %v2873_v1 }
 0x7c0   : > { %v2350_v11 = vpop.xlane.xlu0 %2349 }
 0x7c1   : > { %6015 = vrcp.f32 %v2350_v11  ;;  %v2868_v11 = vld [vmem:[%s8467_s8 + $0x8] sm:$0xff] }
 0x7c2   : > { %v2347_v46 = vpop.xlane.xlu1 %2346 }
 0x7c3   : > { %6017 = vrcp.f32 %v2347_v46 }
 0x7ce   : > { %v6016_v12 = vpop.eup %6015  ;;  %v2672_v13 = vpop.xlane.xlu1 %2671 }
 0x7cf   : > { %v2370_v45 = vmul.f32 %v6016_v12, %v6944_v17  ;;  %v2867_v12 = vld [vmem:[%s8467_s8] sm:$0xff] }
 0x7d0   : > { %v6018_v14 = vpop.eup %6017 }
 0x7d1   : > { %v2369_v15 = vmul.f32 %v6018_v14, %v6948_v60 }
 0x7d2   : > { %v2675_v51 = vpop.xlane.xlu0 %2674  ;;  %v2353_v52 = vpop.xlane.xlu1 %2352 }
 0x7d3   : > { %5748 = vmatprep.mubr.msk.f32.mxu1 %vm745_vm3, %v2369_v15  ;;  %6019 = vrcp.f32 %v2353_v52 }
 0x7d4   : > { %5749 = vmatmul.mubr.msk.f32.vlgmr.msra.gmra.mxu1 %vm745_vm3, %v2370_v45 }
 0x7d5   : > { %5779 = vmatpush3.msk.msra.mxu1 %vm764_vm4, %v6953_v24  ;;  %vm3237_vm4 = vcmask 64512  }
 0x7d6   : > { %5780 = vmatprep.subr.mxu1 %v2714_v8  ;;  %v2356_v31 = vpop.xlane.xlu0 %2355  ;;  %v2359_v57 = vpop.xlane.xlu1 %2358 }
 0x7d7   : > { %6021 = vrcp.f32 %v2356_v31  ;;  %5781 = vmatpush3.msra.mxu1 %v2714_v8  ;;  %v2869_v8 = vld [vmem:[%s8467_s8 + $0x10] sm:$0xff] }
 0x7d8   : > { %6023 = vrcp.f32 %v2359_v57  ;;  %5782 = vmatprep.subr.mxu1 %v2712_v4 }
 0x7d9   : > { %5783 = vmatpush3.msra.mxu1 %v2712_v4  ;;  %6025 = vrcp.f32 %v2672_v13  ;;  %v2870_v4 = vld [vmem:[%s8467_s8 + $0x18] sm:$0xff] }
 0x7da   : > { %5784 = vmatprep.subr.mxu1 %v2710_v10  ;;  %v2362_v17 = vpop.xlane.xlu0 %2361  ;;  %v2706_v60 = vpop.permute.xlu1 %2705 }
 0x7db   : > { %6027 = vrcp.f32 %v2362_v17  ;;  %5785 = vmatpush3.msra.mxu1 %v2710_v10 }
 0x7dc   : > { %6029 = vrcp.f32 %v2675_v51 }
 0x7de   : > { %v2708_v58 = vpop.permute.xlu0 %2707 }
 0x7df   : > { %5786 = vmatprep.subr.mxu1 %v2708_v58 }
 0x7e0   : > { %5787 = vmatpush3.msra.mxu1 %v2708_v58  ;;  %v6020_v3 = vpop.eup %6019 }
 0x7e1   : > { %5788 = vmatprep.subr.mxu1 %v2706_v60  ;;  %v2371_v6 = vmul.f32 %v6020_v3, %v6961_v37 }
 0x7e2   : > { %5789 = vmatpush3.msra.mxu1 %v2706_v60 }
 0x7e3   : > { %5751 = vmatprep.mubr.msk.f32.mxu1 %vm745_vm3, %v2371_v6 }
 0x7e4   : > { %v6022_v7 = vpop.eup %6021 }
 0x7e5   : > { %v6024_v18 = vpop.eup %6023  ;;  %v2372_v21 = vmul.f32 %v6022_v7, %v6967_v9 }
 0x7e6   : > { %v2373_v24 = vmul.f32 %v6024_v18, %v6971_v41  ;;  %v6026_v61 = vpop.eup %6025 }
 0x7e7   : > { %5752 = vmatmul.mubr.msk.f32.gmra.mxu1 %vm745_vm3, %v2372_v21  ;;  %v2694_v42 = vmul.f32 %v6026_v61, %v6957_v29 }
 0x7e8   : > { %v6028_v36 = vpop.eup %6027  ;;  %5754 = vmatprep.mubr.msk.f32.mxu1 %vm745_vm3, %v2373_v24 }
 0x7e9   : > { %v2374_v39 = vmul.f32 %v6028_v36, %v6975_v43  ;;  %v6030_v40 = vpop.eup %6029 }
 0x7ea   : > { %v2695_v37 = vmul.f32 %v6030_v40, %v6963_v38 }
 0x7eb   : > { %5755 = vmatmul.mubr.msk.f32.gmra.mxu1 %vm745_vm3, %v2374_v39 }
 0x7ec   : > { %5790 = vmatprep.mubr.msk.f32.mxu1 %vm745_vm3, %v2694_v42 }
 0x7ef   : > { %5791 = vmatmul.mubr.msk.f32.vlgmr.msra.gmra.mxu1 %vm745_vm3, %v2695_v37 }
 0x80b   : > { %v2651_v9 = vpop.xlane.xlu1 %2650 }
 0x80c   : > { %v2657_v41 = vsub.f32 %v6987_v56, %v2651_v9 }
 0x80e   : > { %v2668_v19 = vmul.f32 1.442695, %v2657_v41  ;;  %v2877_v41 = vsub.s32 3, %v6311_v16 }
 0x80f   : > { %v2648_v47 = vpop.xlane.xlu0 %2647 }
 0x810   : > { %v2656_v50 = vsub.f32 %v6989_v62, %v2648_v47  ;;  %6031 = vpow2.f32 %v2668_v19  ;;  %v7073_v19 = vld [vmem:[%s8474_s15] sm:$0xff] }
 0x811   : > { %v7076_v47 = vrot.slane %v7073_v19, %v2877_v41 }
 0x812   : > { %v2666_v43 = vmul.f32 1.442695, %v2656_v50 }
 0x813   : > { %v2678_v53 = vpop.xlane.xlu0 %2677 }
 0x814   : > { %6033 = vpow2.f32 %v2666_v43 }
 0x815   : > { %6035 = vrcp.f32 %v2678_v53 }
 0x817   : > { %v2681_v29 = vpop.xlane.xlu0 %2680 }
 0x818   : > { %6037 = vrcp.f32 %v2681_v29 }
 0x81d   : > { %v6032_v54 = vpop.eup %6031 }
 0x81e   : > { %v2685_v55 = vsel %vm2323_vm2, %v6032_v54, 0.0 }
 0x81f   : > { %2686 = vadd.xlane.f32.xlu0 %v2685_v55 }
 0x821   : > { %v6034_v38 = vpop.eup %6033 }
 0x822   : > { %v6036_v49 = vpop.eup %6035  ;;  %v2682_v63 = vsel %vm745_vm3, %v6034_v38, 0.0 }
 0x823   : > { %2683 = vadd.xlane.f32.xlu1 %v2682_v63  ;;  %v2696_v56 = vmul.f32 %v6036_v49, %v6995_v5  ;;  %v2872_v5 = vld [vmem:[%s8467_s8 + $0x28] sm:$0xff] }
 0x824   : > { %5803 = vmatprep.subr.mxu0 %v2872_v5 }
 0x825   : > { %v6038_v0 = vpop.eup %6037  ;;  %5793 = vmatprep.mubr.msk.f32.mxu1 %vm745_vm3, %v2696_v56  ;;  %5804 = vmatpush3.msra.mxu0 %v2872_v5 }
 0x826   : > { %v2697_v62 = vmul.f32 %v6038_v0, %v6999_v48  ;;  %v2871_v48 = vld [vmem:[%s8467_s8 + $0x20] sm:$0xff] }
 0x827   : > { %5805 = vmatprep.subr.mxu0 %v2871_v48 }
 0x828   : > { %5794 = vmatmul.mubr.msk.f32.gmra.mxu1 %vm745_vm3, %v2697_v62  ;;  %5806 = vmatpush3.msra.mxu0 %v2871_v48 }
 0x829   : > { %5807 = vmatprep.subr.mxu0 %v2870_v4 }
 0x82a   : > { %5808 = vmatpush3.msra.mxu0 %v2870_v4 }
 0x82b   : > { %5809 = vmatprep.subr.mxu0 %v2869_v8 }
 0x82c   : > { %5810 = vmatpush3.msra.mxu0 %v2869_v8 }
 0x82d   : > { %5811 = vmatprep.subr.mxu0 %v2868_v11 }
 0x82e   : > { %5812 = vmatpush3.msra.mxu0 %v2868_v11 }
 0x82f   : > { %5813 = vmatprep.subr.mxu0 %v2867_v12 }
 0x830   : > { %5814 = vmatpush3.msra.mxu0 %v2867_v12 }
 0x894   : > { %v5750_v10 = vpop.f32.mrf.mxu1 }
 0x896   : > { %v2462_v46 = vpop.f32.mrf.mxu1 }
 0x8a7   : > { %v5753_v13 = vpop.f32.mrf.mxu1 }
 0x8a8   : > { %v2687_v14 = vpop.xlane.xlu0 %2686 }
 0x8a9   : > { %v2472_v15 = vpop.f32.mrf.mxu1  ;;  %6039 = vrcp.f32 %v2687_v14  ;;  %v3104_v14 = vld [vmem:[%s8468_s9 + $0x30] sm:$0xff] }
 0x8ab   : > { %v5756_v45 = vpop.f32.mrf.mxu1 }
 0x8ac   : > { %v2684_v51 = vpop.xlane.xlu1 %2683 }
 0x8ad   : > { %6041 = vrcp.f32 %v2684_v51  ;;  %v2482_v52 = vpop.f32.mrf.mxu1  ;;  %v3101_v51 = vld [vmem:[%s8468_s9 + $0x18] sm:$0xff] }
 0x8af   : > { %v5792_v31 = vpop.f32.mrf.mxu1 }
 0x8b0   : > { %2845 = vrot.lane.b32.xlu0 %v5792_v31, %s6133_s3  ;;  %v3099_v31 = vld [vmem:[%s8468_s9 + $0x8] sm:$0xff] }
 0x8b1   : > { %v2808_v57 = vpop.f32.mrf.mxu1 }
 0x8b2   : > { %2843 = vrot.lane.b32.xlu1 %v2808_v57, %s6133_s3  ;;  %v3098_v57 = vld [vmem:[%s8468_s9] sm:$0xff] }
 0x8b6   : > { %v6040_v17 = vpop.eup %6039 }
 0x8b7   : > { %v2699_v3 = vmul.f32 %v6040_v17, %v6032_v54 }
 0x8ba   : > { %v6042_v58 = vpop.eup %6041 }
 0x8bb   : > { %v2698_v60 = vmul.f32 %v6042_v58, %v6034_v38 }
 0x8bd   : > { %5796 = vmatprep.mubr.msk.f32.mxu1 %vm745_vm3, %v2698_v60 }
 0x8be   : > { %5797 = vmatmul.mubr.msk.f32.gmra.mxu1 %vm745_vm3, %v2699_v3  ;;  %vm3013_vm3 = vcmask 516096  }
 0x8e8   : > { %v5795_v6 = vpop.f32.mrf.mxu1 }
 0x8ea   : > { %v2818_v7 = vpop.f32.mrf.mxu1 }
 0x8eb   : > { %2847 = vrot.lane.b32.xlu1 %v2818_v7, %s6133_s3 }
 0x8ef   : > { %2849 = vrot.lane.b32.xlu1 %v5795_v6, %s6133_s3 }
 0x922   : > { %v2846_v18 = vpop.permute.xlu0 %2845 }
 0x923   : > { %v2862_v61 = vsel %vm2188_vm1, %v5750_v10, %v2846_v18 }
 0x924   : > { %v2844_v21 = vpop.permute.xlu1 %2843 }
 0x925   : > { %v2861_v24 = vsel %vm2188_vm1, %v2462_v46, %v2844_v21 }
 0x926   : > { %5815 = vmatprep.mubr.msk.f32.mxu0 %vm1412_vm0, %v2861_v24 }
 0x927   : > { %5816 = vmatmul.mubr.msk.f32.vlgmr.msra.gmra.mxu0 %vm1412_vm0, %v2862_v61 }
 0x95d   : > { %v2848_v36 = vpop.permute.xlu1 %2847 }
 0x95e   : > { %v2863_v39 = vsel %vm2188_vm1, %v2472_v15, %v2848_v36  ;;  %v3103_v15 = vld [vmem:[%s8468_s9 + $0x28] sm:$0xff] }
 0x95f   : > { %5818 = vmatprep.mubr.msk.f32.mxu0 %vm1412_vm0, %v2863_v39 }
 0x961   : > { %v2850_v40 = vpop.permute.xlu1 %2849 }
 0x962   : > { %v2864_v42 = vsel %vm2188_vm1, %v5753_v13, %v2850_v40  ;;  %v3105_v13 = vld [vmem:[%s8468_s9 + $0x38] sm:$0xff] }
 0x963   : > { %5819 = vmatmul.mubr.msk.f32.gmra.mxu0 %vm1412_vm0, %v2864_v42  ;;  %5824 = vmatprep.subr.mxu1 %v3105_v13 }
 0x964   : > { %5825 = vmatpush3.msra.mxu1 %v3105_v13 }
 0x965   : > { %5826 = vmatprep.subr.mxu1 %v3104_v14 }
 0x966   : > { %5827 = vmatpush3.msra.mxu1 %v3104_v14 }
 0x967   : > { %5828 = vmatprep.subr.mxu1 %v3103_v15 }
 0x968   : > { %5829 = vmatpush3.msra.mxu1 %v3103_v15 }
 0x97e   : > { %v5798_v37 = vpop.f32.mrf.mxu1 }
 0x97f   : > { %2853 = vrot.lane.b32.xlu1 %v5798_v37, %s6133_s3 }
 0x980   : > { %v2828_v9 = vpop.f32.mrf.mxu1 }
 0x981   : > { %2851 = vrot.lane.b32.xlu0 %v2828_v9, %s6133_s3  ;;  %s6073_s3 = sshll.u32 %s6136_s25, 4  ;;  %s6074_s3 = int_to_ptr.vmem [resolvable:$false] %s6073_s3 }
 0x982   : > { %s6075_s18 = scalar_lea.vmem %s6074_s3, 32 }
 0x9e7   : > { %v5817_v50 = vpop.f32.mrf.mxu0 }
 0x9e8   : > { %v2969_v43 = vadd.f32 %v5817_v50, %v7076_v47 }
 0x9e9   : > { %v2963_v53 = vpop.f32.mrf.mxu0 }
 0x9ea   : > { %v2964_v29 = vadd.f32 %v2963_v53, %v7076_v47  ;;  %v2993_v54 = vadd.f32 %v2969_v43, %v2018_v25 }
 0x9ec   : > { %v3001_v55 = vsel %vm1412_vm0, %v2993_v54, 0.0  ;;  %v2992_v38 = vadd.f32 %v2964_v29, %v2017_v23 }
 0x9ed   : > { %3002 = vadd.xlane.f32.xlu1 %v3001_v55  ;;  %v3090_v55 = vsub.s32 5, %v6311_v16 }
 0x9ee   : > { %v2998_v49 = vsel %vm1412_vm0, %v2992_v38, 0.0 }
 0x9ef   : > { %2999 = vadd.xlane.f32.xlu0 %v2998_v49 }
 0x9f1   : > { %v2854_v63 = vpop.permute.xlu1 %2853 }
 0x9f2   : > { %v2866_v62 = vsel %vm2188_vm1, %v5756_v45, %v2854_v63  ;;  %v3102_v45 = vld [vmem:[%s8468_s9 + $0x20] sm:$0xff] }
 0x9f3   : > { %v2852_v56 = vpop.permute.xlu0 %2851  ;;  %5830 = vmatprep.subr.mxu1 %v3102_v45 }
 0x9f4   : > { %v2865_v0 = vsel %vm2188_vm1, %v2482_v52, %v2852_v56  ;;  %5831 = vmatpush3.msra.mxu1 %v3102_v45  ;;  %v3100_v52 = vld [vmem:[%s8468_s9 + $0x10] sm:$0xff] }
 0x9f5   : > { %5821 = vmatprep.mubr.msk.f32.mxu0 %vm1412_vm0, %v2865_v0  ;;  %5832 = vmatprep.subr.mxu1 %v3101_v51  ;;  %v7151_v0 = vrot.slane %v7073_v19, %v3090_v55 }
 0x9f6   : > { %5822 = vmatmul.mubr.msk.f32.gmra.mxu0 %vm1412_vm0, %v2866_v62  ;;  %5833 = vmatpush3.msra.mxu1 %v3101_v51 }
 0x9f7   : > { %5834 = vmatprep.subr.mxu1 %v3100_v52 }
 0x9f8   : > { %5835 = vmatpush3.msra.mxu1 %v3100_v52 }
 0x9f9   : > { %5836 = vmatprep.subr.mxu1 %v3099_v31 }
 0x9fa   : > { %5837 = vmatpush3.msra.mxu1 %v3099_v31 }
 0x9fb   : > { %5838 = vmatprep.subr.mxu1 %v3098_v57 }
 0x9fc   : > { %5839 = vmatpush3.msra.mxu1 %v3098_v57 }
 0xa23   : > { %v5820_v22 = vpop.f32.mrf.mxu0 }
 0xa24   : > { %v2979_v44 = vadd.f32 %v5820_v22, %v7076_v47 }
 0xa25   : > { %v2973_v25 = vpop.f32.mrf.mxu0 }
 0xa26   : > { %v2974_v20 = vadd.f32 %v2973_v25, %v7076_v47  ;;  %v2995_v5 = vadd.f32 %v2979_v44, %v2020_v30 }
 0xa28   : > { %v2994_v23 = vadd.f32 %v2974_v20, %v2019_v28  ;;  %v3007_v48 = vsel %vm1412_vm0, %v2995_v5, 0.0 }
 0xa2a   : > { %v3004_v1 = vsel %vm1412_vm0, %v2994_v23, 0.0 }
 0xa2b   : > { %3005 = vadd.xlane.f32.xlu0 %v3004_v1 }
 0xa2f   : > { %3008 = vadd.xlane.f32.xlu0 %v3007_v48 }
 0xa76   : > { %v3003_v4 = vpop.xlane.xlu1 %3002 }
 0xa77   : > { %v3019_v8 = vmul.f32 0.015625, %v3003_v4 }
 0xa78   : > { %v3000_v10 = vpop.xlane.xlu0 %2999 }
 0xa79   : > { %v7098_v11 = vsub.f32 %v2993_v54, %v3019_v8  ;;  %v3018_v46 = vmul.f32 0.015625, %v3000_v10 }
 0xa7b   : > { %v7100_v12 = vsub.f32 %v2992_v38, %v3018_v46  ;;  %v3031_v26 = vmul.f32 %v7098_v11, %v7098_v11 }
 0xa7d   : > { %v3039_v28 = vsel %vm1412_vm0, %v3031_v26, 0.0  ;;  %v3030_v27 = vmul.f32 %v7100_v12, %v7100_v12 }
 0xa7e   : > { %3040 = vadd.xlane.f32.xlu0 %v3039_v28 }
 0xa7f   : > { %v3036_v30 = vsel %vm1412_vm0, %v3030_v27, 0.0 }
 0xa80   : > { %3037 = vadd.xlane.f32.xlu1 %v3036_v30 }
 0xab4   : > { %v3006_v17 = vpop.xlane.xlu0 %3005 }
 0xab5   : > { %v3020_v58 = vmul.f32 0.015625, %v3006_v17  ;;  %v3232_v17 = vld [vmem:[%s8470_s11] sm:$0xff] }
 0xab6   : > { %v5823_v60 = vpop.f32.mrf.mxu0  ;;  %5849 = vmatprep.subr.mxu0 %v3232_v17 }
 0xab7   : > { %v2989_v3 = vadd.f32 %v5823_v60, %v7076_v47  ;;  %v3026_v18 = vsub.f32 %v2994_v23, %v3020_v58  ;;  %5850 = vmatpush3.msra.mxu0 %v3232_v17 }
 0xab8   : > { %v3009_v6 = vpop.xlane.xlu0 %3008  ;;  %v2983_v7 = vpop.f32.mrf.mxu0 }
 0xab9   : > { %v3021_v21 = vmul.f32 0.015625, %v3009_v6  ;;  %v2984_v24 = vadd.f32 %v2983_v7, %v7076_v47  ;;  %v2997_v61 = vadd.f32 %v2989_v3, %v2022_v35  ;;  %v3032_v9 = vmul.f32 %v3026_v18, %v3026_v18 }
 0xabb   : > { %v3027_v36 = vsub.f32 %v2995_v5, %v3021_v21  ;;  %v3014_v39 = vsel %vm3013_vm3, %v2997_v61, 0.0  ;;  %v2996_v40 = vadd.f32 %v2984_v24, %v2021_v34  ;;  %v3042_v47 = vsel %vm1412_vm0, %v3032_v9, 0.0  ;;  %v5009_v21 = vld [vmem:[%s8469_s10] ss:$0 sm:$0xff] }
 0xabc   : > { %3015 = vadd.xlane.f32.xlu0 %v3014_v39  ;;  %v3080_v34 = vsub.s32 4, %v6311_v16 }
 0xabd   : > { %v3010_v42 = vsel %vm1412_vm0, %v2996_v40, 0.0  ;;  %v3033_v37 = vmul.f32 %v3027_v36, %v3027_v36 }
 0xabe   : > { %3011 = vadd.xlane.f32.xlu1 %v3010_v42  ;;  %v7144_v54 = vrot.slane %v7073_v19, %v3080_v34 }
 0xabf   : > { %v3045_v41 = vsel %vm1412_vm0, %v3033_v37, 0.0 }
 0xac0   : > { %3046 = vadd.xlane.f32.xlu0 %v3045_v41 }
 0xac2   : > { %3043 = vadd.xlane.f32.xlu1 %v3042_v47 }
 0xb07   : > { %v3041_v33 = vpop.xlane.xlu0 %3040 }
 0xb08   : > { %v3055_v35 = vmul.f32 0.015625, %v3041_v33 }
 0xb09   : > { %v3038_v50 = vpop.xlane.xlu1 %3037 }
 0xb0a   : > { %v3061_v43 = vadd.f32 1e-05, %v3055_v35  ;;  %v3054_v53 = vmul.f32 0.015625, %v3038_v50 }
 0xb0c   : > { %6043 = vrsqrt.f32 %v3061_v43  ;;  %v3060_v32 = vadd.f32 1e-05, %v3054_v53 }
 0xb0e   : > { %6045 = vrsqrt.f32 %v3060_v32 }
 0xb19   : > { %v6044_v29 = vpop.eup %6043 }
 0xb1a   : > { %v3073_v38 = vmul.f32 %v6044_v29, %v7098_v11 }
 0xb1b   : > { %v6046_v49 = vpop.eup %6045 }
 0xb1c   : > { %v3072_v63 = vmul.f32 %v6046_v49, %v7100_v12  ;;  %v3083_v56 = vmul.f32 %v7144_v54, %v3073_v38 }
 0xb1e   : > { %v3082_v62 = vmul.f32 %v7144_v54, %v3072_v63  ;;  %v7158_v25 = vadd.f32 %v7151_v0, %v3083_v56 }
 0xb20   : > { %v7155_v22 = vadd.f32 %v7151_v0, %v3082_v62 }
 0xb22   : > { %5840 = vmatprep.mubr.msk.f32.mxu1 %vm1412_vm0, %v7155_v22 }
 0xb23   : > { %5841 = vmatmul.mubr.msk.f32.vlgmr.msra.gmra.mxu1 %vm1412_vm0, %v7158_v25 }
 0xb45   : > { %v3016_v44 = vpop.xlane.xlu0 %3015 }
 0xb46   : > { %v3023_v20 = vmul.f32 0.015625, %v3016_v44 }
 0xb47   : > { %v3012_v23 = vpop.xlane.xlu1 %3011 }
 0xb48   : > { %v3029_v1 = vsub.f32 %v2997_v61, %v3023_v20  ;;  %v3022_v5 = vmul.f32 0.015625, %v3012_v23 }
 0xb49   : > { %v3047_v48 = vpop.xlane.xlu0 %3046 }
 0xb4a   : > { %v3028_v4 = vsub.f32 %v2996_v40, %v3022_v5  ;;  %v3057_v8 = vmul.f32 0.015625, %v3047_v48  ;;  %v3035_v10 = vmul.f32 %v3029_v1, %v3029_v1 }
 0xb4b   : > { %v3044_v11 = vpop.xlane.xlu1 %3043 }
 0xb4c   : > { %v3063_v46 = vadd.f32 1e-05, %v3057_v8  ;;  %v3056_v12 = vmul.f32 0.015625, %v3044_v11  ;;  %v3051_v26 = vsel %vm3013_vm3, %v3035_v10, 0.0  ;;  %v3034_v28 = vmul.f32 %v3028_v4, %v3028_v4 }
 0xb4d   : > { %3052 = vadd.xlane.f32.xlu0 %v3051_v26 }
 0xb4e   : > { %6047 = vrsqrt.f32 %v3063_v46  ;;  %v3062_v27 = vadd.f32 1e-05, %v3056_v12  ;;  %v3048_v30 = vsel %vm1412_vm0, %v3034_v28, 0.0 }
 0xb4f   : > { %3049 = vadd.xlane.f32.xlu1 %v3048_v30 }
 0xb50   : > { %6049 = vrsqrt.f32 %v3062_v27 }
 0xb5b   : > { %v6048_v13 = vpop.eup %6047 }
 0xb5c   : > { %v3075_v14 = vmul.f32 %v6048_v13, %v3027_v36 }
 0xb5d   : > { %v6050_v15 = vpop.eup %6049 }
 0xb5e   : > { %v3074_v45 = vmul.f32 %v6050_v15, %v3026_v18  ;;  %v3085_v51 = vmul.f32 %v7144_v54, %v3075_v14 }
 0xb60   : > { %v3084_v52 = vmul.f32 %v7144_v54, %v3074_v45  ;;  %v7172_v57 = vadd.f32 %v7151_v0, %v3085_v51 }
 0xb62   : > { %v7169_v31 = vadd.f32 %v7151_v0, %v3084_v52 }
 0xb64   : > { %5843 = vmatprep.mubr.msk.f32.mxu1 %vm1412_vm0, %v7169_v31 }
 0xb65   : > { %5844 = vmatmul.mubr.msk.f32.gmra.mxu1 %vm1412_vm0, %v7172_v57 }
 0xbd6   : > { %v3053_v58 = vpop.xlane.xlu0 %3052 }
 0xbd7   : > { %v3059_v60 = vmul.f32 0.015625, %v3053_v58 }
 0xbd8   : > { %v3050_v3 = vpop.xlane.xlu1 %3049 }
 0xbd9   : > { %v3065_v6 = vadd.f32 1e-05, %v3059_v60  ;;  %v3058_v7 = vmul.f32 0.015625, %v3050_v3 }
 0xbdb   : > { %6051 = vrsqrt.f32 %v3065_v6  ;;  %v3064_v18 = vadd.f32 1e-05, %v3058_v7 }
 0xbdd   : > { %6053 = vrsqrt.f32 %v3064_v18 }
 0xbe3   : > { %v5842_v24 = vpop.f32.mrf.mxu1 }
 0xbe4   : > { %v3203_v61 = vadd.f32 %v5842_v24, %v5009_v21 }
 0xbe5   : > { %v3197_v36 = vpop.f32.mrf.mxu1 }
 0xbe6   : > { %v3198_v39 = vadd.f32 %v5009_v21, %v3197_v36  ;;  %v3227_v37 = vmax.f32 %v3203_v61, 0.0 }
 0xbe8   : > { %v6052_v40 = vpop.eup %6051  ;;  %v3226_v42 = vmax.f32 %v3198_v39, 0.0 }
 0xbe9   : > { %v3077_v9 = vmul.f32 %v6052_v40, %v3029_v1 }
 0xbea   : > { %v6054_v41 = vpop.eup %6053  ;;  %5851 = vmatprep.mubr.msk.f32.mxu0 %vm3237_vm4, %v3226_v42 }
 0xbeb   : > { %5852 = vmatmul.mubr.msk.f32.vlgmr.msra.gmra.mxu0 %vm3237_vm4, %v3227_v37  ;;  %v3076_v47 = vmul.f32 %v6054_v41, %v3028_v4  ;;  %v3087_v33 = vmul.f32 %v7144_v54, %v3077_v9 }
 0xbed   : > { %v3086_v35 = vmul.f32 %v7144_v54, %v3076_v47  ;;  %v7190_v43 = vadd.f32 %v7151_v0, %v3087_v33  ;;  %v3235_v54 = vsub.s32 6, %v6311_v16  ;;  %v3621_v47 = vld [vmem:[%s8471_s12 + $0xf8] sm:$0xff] }
 0xbee   : > { %v3653_v33 = vld [vmem:[%s8471_s12 + $0x1f8] sm:$0xff]  ;;  %5196 = vmatprep.subr.mxu1 %v3621_v47  ;;  %v3608_v47 = vld [vmem:[%s8471_s12 + $0x90] sm:$0xff] }
 0xbef   : > { %v3096_v50 = vadd.f32 %v7151_v0, %v3086_v35  ;;  %v7199_v49 = vrot.slane %v7073_v19, %v3235_v54  ;;  %v3605_v35 = vld [vmem:[%s8471_s12 + $0x78] sm:$0xff]  ;;  %5231 = vmatprep.subr.mxu0 %v3653_v33  ;;  %v3603_v54 = vld [vmem:[%s8471_s12 + $0x68] sm:$0xff]  ;;  %v3640_v33 = vld [vmem:[%s8471_s12 + $0x190] sm:$0xff] }
 0xbf0   : > { %5197 = vmatpush3.msra.mxu1 %v3605_v35  ;;  %v3592_v35 = vld [vmem:[%s8471_s12 + $0x10] sm:$0xff] }
 0xbf1   : > { %5846 = vmatprep.mubr.msk.f32.mxu1 %vm1412_vm0, %v3096_v50 }
 0xbf2   : > { %5847 = vmatmul.mubr.msk.f32.gmra.mxu1 %vm1412_vm0, %v7190_v43 }
 0xc25   : > { %v5845_v53 = vpop.f32.mrf.mxu1 }
 0xc26   : > { %v3213_v32 = vadd.f32 %v5845_v53, %v5009_v21  ;;  %v3620_v53 = vld [vmem:[%s8471_s12 + $0xf0] sm:$0xff] }
 0xc27   : > { %v3207_v34 = vpop.f32.mrf.mxu1  ;;  %5198 = vmatprep.subr.mxu1 %v3620_v53 }
 0xc28   : > { %v3208_v29 = vadd.f32 %v5009_v21, %v3207_v34  ;;  %v3229_v38 = vmax.f32 %v3213_v32, 0.0  ;;  %v3652_v32 = vld [vmem:[%s8471_s12 + $0x1f0] sm:$0xff] }
 0xc29   : > { %v3604_v34 = vld [vmem:[%s8471_s12 + $0x70] sm:$0xff] }
 0xc2a   : > { %v3228_v55 = vmax.f32 %v3208_v29, 0.0  ;;  %v3636_v29 = vld [vmem:[%s8471_s12 + $0x170] sm:$0xff]  ;;  %5199 = vmatpush3.msra.mxu1 %v3604_v34 }
 0xc2c   : > { %5854 = vmatprep.mubr.msk.f32.mxu0 %vm3237_vm4, %v3228_v55  ;;  %v3619_v55 = vld [vmem:[%s8471_s12 + $0xe8] sm:$0xff] }
 0xc2d   : > { %5855 = vmatmul.mubr.msk.f32.gmra.mxu0 %vm3237_vm4, %v3229_v38  ;;  %v3651_v38 = vld [vmem:[%s8471_s12 + $0x1e8] sm:$0xff]  ;;  %5200 = vmatprep.subr.mxu1 %v3619_v55 }
 0xc2e   : > { %5201 = vmatpush3.msra.mxu1 %v3603_v54  ;;  %v559_v55 = vld [vmem:[%s8474_s15 + $0x8] sm:$0x3] }
 0xc2f   : > { %v3639_v54 = vld [vmem:[%s8471_s12 + $0x188] sm:$0xff] }
 0xcab   : > { %v5853_v63 = vpop.f32.mrf.mxu0 }
 0xcac   : > { %v3328_v56 = vadd.f32 %v5853_v63, %v7199_v49  ;;  %v3635_v63 = vld [vmem:[%s8471_s12 + $0x168] sm:$0xff] }
 0xcad   : > { %v3322_v0 = vpop.f32.mrf.mxu0 }
 0xcae   : > { %v3323_v62 = vadd.f32 %v3322_v0, %v7199_v49  ;;  %v3352_v44 = vadd.f32 %v3328_v56, %v7158_v25  ;;  %v3618_v56 = vld [vmem:[%s8471_s12 + $0xe0] sm:$0xff] }
 0xcaf   : > { %v3650_v0 = vld [vmem:[%s8471_s12 + $0x1e0] sm:$0xff]  ;;  %5202 = vmatprep.subr.mxu1 %v3618_v56  ;;  %v3623_v56 = vld [vmem:[%s8471_s12 + $0x108] sm:$0xff] }
 0xcb0   : > { %v3360_v20 = vsel %vm1412_vm0, %v3352_v44, 0.0  ;;  %v3351_v23 = vadd.f32 %v3323_v62, %v7155_v22  ;;  %v3602_v62 = vld [vmem:[%s8471_s12 + $0x60] sm:$0xff] }
 0xcb1   : > { %3361 = vadd.xlane.f32.xlu0 %v3360_v20  ;;  %v3617_v20 = vld [vmem:[%s8471_s12 + $0xd8] sm:$0xff]  ;;  %5203 = vmatpush3.msra.mxu1 %v3602_v62 }
 0xcb2   : > { %v5848_v1 = vpop.f32.mrf.mxu1  ;;  %v3357_v5 = vsel %vm1412_vm0, %v3351_v23, 0.0  ;;  %5204 = vmatprep.subr.mxu1 %v3617_v20  ;;  %v7439_v20 = vrot.slane %v559_v55, %v6588_v59 }
 0xcb3   : > { %3358 = vadd.xlane.f32.xlu1 %v3357_v5  ;;  %v3223_v48 = vadd.f32 %v5848_v1, %v5009_v21  ;;  %v3601_v1 = vld [vmem:[%s8471_s12 + $0x58] sm:$0xff] }
 0xcb4   : > { %v3217_v4 = vpop.f32.mrf.mxu1  ;;  %v3633_v5 = vld [vmem:[%s8471_s12 + $0x158] sm:$0xff]  ;;  %5205 = vmatpush3.msra.mxu1 %v3601_v1  ;;  %v3622_v1 = vld [vmem:[%s8471_s12 + $0x100] sm:$0xff] }
 0xcb5   : > { %v3218_v8 = vadd.f32 %v5009_v21, %v3217_v4  ;;  %v3231_v11 = vmax.f32 %v3223_v48, 0.0  ;;  %v3616_v48 = vld [vmem:[%s8471_s12 + $0xd0] sm:$0xff] }
 0xcb6   : > { %v3648_v4 = vld [vmem:[%s8471_s12 + $0x1d0] sm:$0xff]  ;;  %5206 = vmatprep.subr.mxu1 %v3616_v48  ;;  %v3717_v48 = vld [vmem:[%s8471_s12 + $0x3f8] sm:$0xff] }
 0xcb7   : > { %v3230_v10 = vmax.f32 %v3218_v8, 0.0  ;;  %v3600_v8 = vld [vmem:[%s8471_s12 + $0x50] sm:$0xff] }
 0xcb8   : > { %5207 = vmatpush3.msra.mxu1 %v3600_v8 }
 0xcb9   : > { %5857 = vmatprep.mubr.msk.f32.mxu0 %vm3237_vm4, %v3230_v10  ;;  %v3632_v10 = vld [vmem:[%s8471_s12 + $0x150] sm:$0xff] }
 0xcba   : > { %5858 = vmatmul.mubr.msk.f32.gmra.mxu0 %vm3237_vm4, %v3231_v11  ;;  %v3615_v11 = vld [vmem:[%s8471_s12 + $0xc8] sm:$0xff] }
 0xcbb   : > { %5208 = vmatprep.subr.mxu1 %v3615_v11 }
 0xced   : > { %v5856_v46 = vpop.f32.mrf.mxu0 }
 0xcee   : > { %v3338_v12 = vadd.f32 %v5856_v46, %v7199_v49  ;;  %v3647_v46 = vld [vmem:[%s8471_s12 + $0x1c8] sm:$0xff] }
 0xcef   : > { %v3332_v25 = vpop.f32.mrf.mxu0 }
 0xcf0   : > { %v3333_v22 = vadd.f32 %v3332_v25, %v7199_v49  ;;  %v3354_v27 = vadd.f32 %v3338_v12, %v7172_v57  ;;  %v3599_v25 = vld [vmem:[%s8471_s12 + $0x48] sm:$0xff] }
 0xcf1   : > { %v3631_v12 = vld [vmem:[%s8471_s12 + $0x148] sm:$0xff]  ;;  %5209 = vmatpush3.msra.mxu1 %v3599_v25 }
 0xcf2   : > { %v3353_v26 = vadd.f32 %v3333_v22, %v7169_v31  ;;  %v3366_v30 = vsel %vm1412_vm0, %v3354_v27, 0.0  ;;  %v3614_v22 = vld [vmem:[%s8471_s12 + $0xc0] sm:$0xff] }
 0xcf3   : > { %5210 = vmatprep.subr.mxu1 %v3614_v22 }
 0xcf4   : > { %v3363_v28 = vsel %vm1412_vm0, %v3353_v26, 0.0 }
 0xcf5   : > { %3364 = vadd.xlane.f32.xlu1 %v3363_v28  ;;  %v3598_v28 = vld [vmem:[%s8471_s12 + $0x40] sm:$0xff] }
 0xcf6   : > { %5211 = vmatpush3.msra.mxu1 %v3598_v28 }
 0xcf9   : > { %3367 = vadd.xlane.f32.xlu1 %v3366_v30  ;;  %v3613_v30 = vld [vmem:[%s8471_s12 + $0xb8] sm:$0xff] }
 0xcfa   : > { %5212 = vmatprep.subr.mxu1 %v3613_v30 }
 0xd3a   : > { %v3362_v13 = vpop.xlane.xlu0 %3361 }
 0xd3b   : > { %v3376_v14 = vmul.f32 0.015625, %v3362_v13  ;;  %v3645_v13 = vld [vmem:[%s8471_s12 + $0x1b8] sm:$0xff] }
 0xd3c   : > { %v3359_v15 = vpop.xlane.xlu1 %3358 }
 0xd3d   : > { %v3375_v45 = vmul.f32 0.015625, %v3359_v15  ;;  %v7215_v51 = vsub.f32 %v3352_v44, %v3376_v14  ;;  %v3634_v44 = vld [vmem:[%s8471_s12 + $0x160] sm:$0xff]  ;;  %v3597_v14 = vld [vmem:[%s8471_s12 + $0x38] sm:$0xff] }
 0xd3e   : > { %v3629_v15 = vld [vmem:[%s8471_s12 + $0x138] sm:$0xff]  ;;  %5213 = vmatpush3.msra.mxu1 %v3597_v14 }
 0xd3f   : > { %v7217_v52 = vsub.f32 %v3351_v23, %v3375_v45  ;;  %v3388_v57 = vmul.f32 %v7215_v51, %v7215_v51  ;;  %v3649_v23 = vld [vmem:[%s8471_s12 + $0x1d8] sm:$0xff]  ;;  %v3612_v45 = vld [vmem:[%s8471_s12 + $0xb0] sm:$0xff] }
 0xd40   : > { %5214 = vmatprep.subr.mxu1 %v3612_v45 }
 0xd41   : > { %v3387_v17 = vmul.f32 %v7217_v52, %v7217_v52  ;;  %v3396_v58 = vsel %vm1412_vm0, %v3388_v57, 0.0  ;;  %v3628_v57 = vld [vmem:[%s8471_s12 + $0x130] sm:$0xff] }
 0xd43   : > { %v3393_v31 = vsel %vm1412_vm0, %v3387_v17, 0.0  ;;  %v3644_v17 = vld [vmem:[%s8471_s12 + $0x1b0] sm:$0xff] }
 0xd44   : > { %3394 = vadd.xlane.f32.xlu0 %v3393_v31  ;;  %v3596_v31 = vld [vmem:[%s8471_s12 + $0x30] sm:$0xff] }
 0xd45   : > { %5215 = vmatpush3.msra.mxu1 %v3596_v31 }
 0xd48   : > { %3397 = vadd.xlane.f32.xlu0 %v3396_v58  ;;  %v3611_v58 = vld [vmem:[%s8471_s12 + $0xa8] sm:$0xff] }
 0xd49   : > { %5216 = vmatprep.subr.mxu1 %v3611_v58 }
 0xd7a   : > { %v7225_v60 = vpop.f32.mrf.mxu0 }
 0xd7b   : > { %v3348_v28 = vadd.f32 %v7225_v60, %v7199_v49 }
 0xd7c   : > { %v3342_v3 = vpop.f32.mrf.mxu0 }
 0xd7d   : > { %v3343_v6 = vadd.f32 %v3342_v3, %v7199_v49  ;;  %v3643_v3 = vld [vmem:[%s8471_s12 + $0x1a8] sm:$0xff] }
 0xd7e   : > { %v3365_v7 = vpop.xlane.xlu1 %3364 }
 0xd7f   : > { %v3377_v18 = vmul.f32 0.015625, %v3365_v7  ;;  %v7228_v21 = vadd.f32 %v3343_v6, %v3096_v50  ;;  %v3637_v50 = vld [vmem:[%s8471_s12 + $0x178] sm:$0xff]  ;;  %v3595_v6 = vld [vmem:[%s8471_s12 + $0x28] sm:$0xff] }
 0xd80   : > { %5232 = vmatpush3.msra.mxu0 %v3637_v50  ;;  %v3627_v7 = vld [vmem:[%s8471_s12 + $0x128] sm:$0xff]  ;;  %5217 = vmatpush3.msra.mxu1 %v3595_v6  ;;  %v3624_v50 = vld [vmem:[%s8471_s12 + $0x110] sm:$0xff] }
 0xd81   : > { %v7230_v24 = vsub.f32 %v3353_v26, %v3377_v18  ;;  %v3369_v61 = vsel %vm1412_vm0, %v7228_v21, 0.0  ;;  %5233 = vmatprep.subr.mxu0 %v3652_v32  ;;  %v3646_v26 = vld [vmem:[%s8471_s12 + $0x1c0] sm:$0xff] }
 0xd82   : > { %3370 = vadd.xlane.f32.xlu1 %v3369_v61  ;;  %v3368_v36 = vpop.xlane.xlu1 %3367  ;;  %5234 = vmatpush3.msra.mxu0 %v3636_v29  ;;  %v3610_v18 = vld [vmem:[%s8471_s12 + $0xa0] sm:$0xff]  ;;  %v3437_v29 = vsub.s32 7, %v6311_v16  ;;  %v3591_v16 = vld [vmem:[%s8471_s12 + $0x8] sm:$0xff] }
 0xd83   : > { %v3378_v39 = vmul.f32 0.015625, %v3368_v36  ;;  %v3389_v40 = vmul.f32 %v7230_v24, %v7230_v24  ;;  %5235 = vmatprep.subr.mxu0 %v3651_v38  ;;  %v3642_v61 = vld [vmem:[%s8471_s12 + $0x1a0] sm:$0xff]  ;;  %5218 = vmatprep.subr.mxu1 %v3610_v18  ;;  %v3607_v38 = vld [vmem:[%s8471_s12 + $0x88] sm:$0xff] }
 0xd84   : > { %5236 = vmatpush3.msra.mxu0 %v3635_v63  ;;  %v3594_v36 = vld [vmem:[%s8471_s12 + $0x20] sm:$0xff]  ;;  %v7421_v63 = vrot.slane %v7073_v19, %v3437_v29 }
 0xd85   : > { %v7236_v42 = vsub.f32 %v3354_v27, %v3378_v39  ;;  %v3399_v37 = vsel %vm1412_vm0, %v3389_v40, 0.0  ;;  %5237 = vmatprep.subr.mxu0 %v3650_v0  ;;  %v3630_v27 = vld [vmem:[%s8471_s12 + $0x140] sm:$0xff]  ;;  %v3609_v40 = vld [vmem:[%s8471_s12 + $0x98] sm:$0xff]  ;;  %5219 = vmatpush3.msra.mxu1 %v3594_v36 }
 0xd86   : > { %3400 = vadd.xlane.f32.xlu0 %v3399_v37  ;;  %5238 = vmatpush3.msra.mxu0 %v3634_v44  ;;  %v3626_v39 = vld [vmem:[%s8471_s12 + $0x120] sm:$0xff]  ;;  %v3641_v37 = vld [vmem:[%s8471_s12 + $0x198] sm:$0xff] }
 0xd87   : > { %v3390_v9 = vmul.f32 %v7236_v42, %v7236_v42  ;;  %5239 = vmatprep.subr.mxu0 %v3649_v23  ;;  %5220 = vmatprep.subr.mxu1 %v3609_v40  ;;  %v3606_v0 = vld [vmem:[%s8471_s12 + $0x80] sm:$0xff] }
 0xd88   : > { %5240 = vmatpush3.msra.mxu0 %v3633_v5  ;;  %v3638_v19 = vld [vmem:[%s8471_s12 + $0x180] sm:$0xff] }
 0xd89   : > { %v3402_v41 = vsel %vm1412_vm0, %v3390_v9, 0.0  ;;  %5241 = vmatprep.subr.mxu0 %v3648_v4  ;;  %v3593_v9 = vld [vmem:[%s8471_s12 + $0x18] sm:$0xff]  ;;  %v3590_v44 = vld [vmem:[%s8471_s12] sm:$0xff] }
 0xd8a   : > { %3403 = vadd.xlane.f32.xlu1 %v3402_v41  ;;  %5242 = vmatpush3.msra.mxu0 %v3632_v10  ;;  %v3625_v41 = vld [vmem:[%s8471_s12 + $0x118] sm:$0xff] }
 0xd8b   : > { %5243 = vmatprep.subr.mxu0 %v3647_v46  ;;  %5221 = vmatpush3.msra.mxu1 %v3593_v9  ;;  %v3685_v10 = vld [vmem:[%s8471_s12 + $0x2f8] sm:$0xff] }
 0xd8c   : > { %5244 = vmatpush3.msra.mxu0 %v3631_v12  ;;  %5222 = vmatprep.subr.mxu1 %v3608_v47 }
 0xd8d   : > { %5245 = vmatprep.subr.mxu0 %v3646_v26  ;;  %5223 = vmatpush3.msra.mxu1 %v3592_v35 }
 0xd8e   : > { %5246 = vmatpush3.msra.mxu0 %v3630_v27  ;;  %5224 = vmatprep.subr.mxu1 %v3607_v38  ;;  %v7464_v27 = vadd.f32 %v3348_v28, %v7190_v43  ;;  %v3668_v28 = vld [vmem:[%s8471_s12 + $0x270] sm:$0xff] }
 0xd8f   : > { %5247 = vmatprep.subr.mxu0 %v3645_v13  ;;  %5225 = vmatpush3.msra.mxu1 %v3591_v16 }
 0xd90   : > { %5248 = vmatpush3.msra.mxu0 %v3629_v15  ;;  %5226 = vmatprep.subr.mxu1 %v3606_v0 }
 0xd91   : > { %5249 = vmatprep.subr.mxu0 %v3644_v17  ;;  %5227 = vmatpush3.msra.mxu1 %v3590_v44  ;;  %v3372_v17 = vsel %vm3013_vm3, %v7464_v27, 0.0 }
 0xd92   : > { %5250 = vmatpush3.msra.mxu0 %v3628_v57  ;;  %5266 = vmatprep.subr.mxu1 %v3685_v10 }
 0xd93   : > { %5251 = vmatprep.subr.mxu0 %v3643_v3 }
 0xd94   : > { %5252 = vmatpush3.msra.mxu0 %v3627_v7 }
 0xd95   : > { %5253 = vmatprep.subr.mxu0 %v3642_v61 }
 0xd96   : > { %5254 = vmatpush3.msra.mxu0 %v3626_v39 }
 0xd97   : > { %5255 = vmatprep.subr.mxu0 %v3641_v37 }
 0xd98   : > { %5256 = vmatpush3.msra.mxu0 %v3625_v41 }
 0xd99   : > { %5257 = vmatprep.subr.mxu0 %v3640_v33 }
 0xd9a   : > { %5258 = vmatpush3.msra.mxu0 %v3624_v50 }
 0xd9b   : > { %5259 = vmatprep.subr.mxu0 %v3639_v54 }
 0xd9c   : > { %5260 = vmatpush3.msra.mxu0 %v3623_v56 }
 0xd9d   : > { %5261 = vmatprep.subr.mxu0 %v3638_v19 }
 0xd9e   : > { %5262 = vmatpush3.msra.mxu0 %v3622_v1 }
 0xd9f   : > { %5301 = vmatprep.subr.mxu0 %v3717_v48 }
 0xdcd   : > { %v3395_v53 = vpop.xlane.xlu0 %3394 }
 0xdce   : > { %v3411_v32 = vmul.f32 0.015625, %v3395_v53 }
 0xdd0   : > { %v3417_v34 = vadd.f32 1e-05, %v3411_v32 }
 0xdd1   : > { %v3398_v12 = vpop.xlane.xlu0 %3397 }
 0xdd2   : > { %6055 = vrsqrt.f32 %v3417_v34  ;;  %v3412_v22 = vmul.f32 0.015625, %v3398_v12 }
 0xdd4   : > { %v3418_v26 = vadd.f32 1e-05, %v3412_v22  ;;  %v3701_v22 = vld [vmem:[%s8471_s12 + $0x378] sm:$0xff] }
 0xdd6   : > { %6057 = vrsqrt.f32 %v3418_v26  ;;  %v3684_v26 = vld [vmem:[%s8471_s12 + $0x2f0] sm:$0xff] }
 0xddf   : > { %v6056_v62 = vpop.eup %6055 }
 0xde0   : > { %v3429_v23 = vmul.f32 %v6056_v62, %v7217_v52 }
 0xde2   : > { %v3439_v5 = vmul.f32 %v7421_v63, %v3429_v23 }
 0xde3   : > { %v6058_v30 = vpop.eup %6057 }
 0xde4   : > { %v7450_v59 = vadd.f32 %v7439_v20, %v3439_v5  ;;  %v3430_v15 = vmul.f32 %v6058_v30, %v7215_v51  ;;  %v3700_v30 = vld [vmem:[%s8471_s12 + $0x370] sm:$0xff] }
 0xde6   : > { %v3456_v52 = vrot.slane %v7450_v59, 1  ;;  %v3462_v4 = vrot.slane %v7450_v59, 3  ;;  %v3468_v8 = vrot.slane %v7450_v59, 5  ;;  %v3474_v11 = vrot.slane %v7450_v59, 7 }
 0xde7   : > { %v3440_v43 = vmul.f32 %v7421_v63, %v3430_v15  ;;  %v3460_v5 = vrot.slane %v7450_v59, 2  ;;  %v3667_v15 = vld [vmem:[%s8471_s12 + $0x268] sm:$0xff] }
 0xde8   : > { %v5944_v46 = vpack.i.bf16 %v3456_v52, %v3462_v4  ;;  %v5949_v25 = vpack.i.bf16 %v3468_v8, %v3474_v11  ;;  %v3472_v4 = vrot.slane %v7450_v59, 6  ;;  %v3466_v8 = vrot.slane %v7450_v59, 4 }
 0xdea   : > { %5945 = vrot.lane.b32.xlu0 %v5944_v46, %s8491_s1  ;;  %5950 = vrot.lane.b32.xlu1 %v5949_v25, %s8491_s1  ;;  %v3669_v46 = vld [vmem:[%s8471_s12 + $0x278] sm:$0xff] }
 0xe0b   : > { %v3371_v13 = vpop.xlane.xlu1 %3370 }
 0xe0c   : > { %v3379_v14 = vmul.f32 0.015625, %v3371_v13  ;;  %v3683_v13 = vld [vmem:[%s8471_s12 + $0x2e8] sm:$0xff] }
 0xe0e   : > { %v7468_v45 = vsub.f32 %v7228_v21, %v3379_v14  ;;  %3373 = vadd.xlane.f32.xlu1 %v3372_v17  ;;  %v7477_v21 = vadd.f32 %v7439_v20, %v3440_v43  ;;  %v3715_v14 = vld [vmem:[%s8471_s12 + $0x3e8] sm:$0xff]  ;;  %v3698_v43 = vld [vmem:[%s8471_s12 + $0x360] sm:$0xff] }
 0xe0f   : > { %v3401_v31 = vpop.xlane.xlu0 %3400  ;;  %v3699_v17 = vld [vmem:[%s8471_s12 + $0x368] sm:$0xff] }
 0xe10   : > { %v3413_v57 = vmul.f32 0.015625, %v3401_v31  ;;  %v3391_v49 = vmul.f32 %v7468_v45, %v7468_v45  ;;  %v3491_v7 = vrot.slane %v7477_v21, 5  ;;  %v3497_v18 = vrot.slane %v7477_v21, 7  ;;  %v3682_v31 = vld [vmem:[%s8471_s12 + $0x2e0] sm:$0xff] }
 0xe11   : > { %v3479_v40 = vrot.slane %v7477_v21, 1  ;;  %v3485_v37 = vrot.slane %v7477_v21, 3 }
 0xe12   : > { %v3419_v60 = vadd.f32 1e-05, %v3413_v57  ;;  %v3405_v58 = vsel %vm1412_vm0, %v3391_v49, 0.0  ;;  %v5959_v61 = vpack.i.bf16 %v3491_v7, %v3497_v18  ;;  %v3714_v57 = vld [vmem:[%s8471_s12 + $0x3e0] sm:$0xff]  ;;  %v3712_v7 = vld [vmem:[%s8471_s12 + $0x3d0] sm:$0xff] }
 0xe13   : > { %3406 = vadd.xlane.f32.xlu0 %v3405_v58  ;;  %v3404_v3 = vpop.xlane.xlu1 %3403  ;;  %v5954_v35 = vpack.i.bf16 %v3479_v40, %v3485_v37  ;;  %v3666_v49 = vld [vmem:[%s8471_s12 + $0x260] sm:$0xff]  ;;  %v3713_v58 = vld [vmem:[%s8471_s12 + $0x3d8] sm:$0xff]  ;;  %v3664_v18 = vld [vmem:[%s8471_s12 + $0x250] sm:$0xff] }
 0xe14   : > { %6059 = vrsqrt.f32 %v3419_v60  ;;  %v3414_v51 = vmul.f32 0.015625, %v3404_v3  ;;  %v3681_v60 = vld [vmem:[%s8471_s12 + $0x2d8] sm:$0xff]  ;;  %v3663_v40 = vld [vmem:[%s8471_s12 + $0x248] sm:$0xff] }
 0xe15   : > { %v3665_v3 = vld [vmem:[%s8471_s12 + $0x258] sm:$0xff]  ;;  %v3695_v37 = vld [vmem:[%s8471_s12 + $0x348] sm:$0xff] }
 0xe16   : > { %v3420_v6 = vadd.f32 1e-05, %v3414_v51  ;;  %v3697_v51 = vld [vmem:[%s8471_s12 + $0x358] sm:$0xff] }
 0xe18   : > { %6061 = vrsqrt.f32 %v3420_v6  ;;  %v3680_v6 = vld [vmem:[%s8471_s12 + $0x2d0] sm:$0xff] }
 0xe1f   : > { %5960 = vrot.lane.b32.xlu1 %v5959_v61, %s8491_s1  ;;  %v3696_v61 = vld [vmem:[%s8471_s12 + $0x350] sm:$0xff] }
 0xe21   : > { %v6060_v36 = vpop.eup %6059 }
 0xe22   : > { %v3431_v39 = vmul.f32 %v6060_v36, %v7230_v24  ;;  %v3679_v36 = vld [vmem:[%s8471_s12 + $0x2c8] sm:$0xff] }
 0xe24   : > { %v3441_v9 = vmul.f32 %v7421_v63, %v3431_v39  ;;  %v3711_v39 = vld [vmem:[%s8471_s12 + $0x3c8] sm:$0xff] }
 0xe25   : > { %v6062_v41 = vpop.eup %6061 }
 0xe26   : > { %v7487_v47 = vadd.f32 %v7439_v20, %v3441_v9  ;;  %v3432_v33 = vmul.f32 %v6062_v41, %v7236_v42  ;;  %v3678_v9 = vld [vmem:[%s8471_s12 + $0x2c0] sm:$0xff] }
 0xe27   : > { %v3710_v41 = vld [vmem:[%s8471_s12 + $0x3c0] sm:$0xff] }
 0xe28   : > { %v3442_v50 = vmul.f32 %v7421_v63, %v3432_v33  ;;  %v3510_v53 = vrot.slane %v7487_v47, 1  ;;  %v3516_v32 = vrot.slane %v7487_v47, 3  ;;  %v3522_v24 = vrot.slane %v7487_v47, 5  ;;  %v3662_v33 = vld [vmem:[%s8471_s12 + $0x240] sm:$0xff] }
 0xe29   : > { %5955 = vrot.lane.b32.xlu0 %v5954_v35, %s8491_s1  ;;  %v3528_v34 = vrot.slane %v7487_v47, 7  ;;  %v3694_v35 = vld [vmem:[%s8471_s12 + $0x340] sm:$0xff] }
 0xe2a   : > { %v7497_v29 = vadd.f32 %v7439_v20, %v3442_v50  ;;  %v5964_v55 = vpack.i.bf16 %v3510_v53, %v3516_v32  ;;  %v3677_v50 = vld [vmem:[%s8471_s12 + $0x2b8] sm:$0xff] }
 0xe2b   : > { %v5969_v38 = vpack.i.bf16 %v3522_v24, %v3528_v34  ;;  %v3709_v53 = vld [vmem:[%s8471_s12 + $0x3b8] sm:$0xff]  ;;  %v3676_v34 = vld [vmem:[%s8471_s12 + $0x2b0] sm:$0xff] }
 0xe2c   : > { %5965 = vrot.lane.b32.xlu1 %v5964_v55, %s8491_s1  ;;  %v3533_v42 = vrot.slane %v7497_v29, 1  ;;  %v3539_v54 = vrot.slane %v7497_v29, 3  ;;  %v3545_v16 = vrot.slane %v7497_v29, 5  ;;  %v3551_v56 = vrot.slane %v7497_v29, 7  ;;  %v3661_v32 = vld [vmem:[%s8471_s12 + $0x238] sm:$0xff]  ;;  %v3708_v55 = vld [vmem:[%s8471_s12 + $0x3b0] sm:$0xff] }
 0xe2d   : > { %5970 = vrot.lane.b32.xlu0 %v5969_v38, %s8491_s1  ;;  %v3693_v24 = vld [vmem:[%s8471_s12 + $0x338] sm:$0xff]  ;;  %v3660_v38 = vld [vmem:[%s8471_s12 + $0x230] sm:$0xff] }
 0xe2e   : > { %v5974_v0 = vpack.i.bf16 %v3533_v42, %v3539_v54  ;;  %v5979_v62 = vpack.i.bf16 %v3545_v16, %v3551_v56  ;;  %v3692_v42 = vld [vmem:[%s8471_s12 + $0x330] sm:$0xff]  ;;  %v3675_v54 = vld [vmem:[%s8471_s12 + $0x2a8] sm:$0xff] }
 0xe2f   : > { %v3707_v16 = vld [vmem:[%s8471_s12 + $0x3a8] sm:$0xff] }
 0xe30   : > { %5975 = vrot.lane.b32.xlu1 %v5974_v0, %s8491_s1  ;;  %v3659_v56 = vld [vmem:[%s8471_s12 + $0x228] sm:$0xff] }
 0xe31   : > { %5980 = vrot.lane.b32.xlu0 %v5979_v62, %s8491_s1  ;;  %v3691_v0 = vld [vmem:[%s8471_s12 + $0x328] sm:$0xff]  ;;  %v3674_v62 = vld [vmem:[%s8471_s12 + $0x2a0] sm:$0xff] }
 0xe5c   : > { %v5946_v19 = vpop.permute.xlu0 %5945  ;;  %v5951_v1 = vpop.permute.xlu1 %5950 }
 0xe5d   : > { %v5948_v44 = vunpack.i.h.bf16 %v5946_v19  ;;  %v5947_v23 = vunpack.i.l.bf16 %v5946_v19  ;;  %v5953_v48 = vunpack.i.h.bf16 %v5951_v1  ;;  %v5952_v52 = vunpack.i.l.bf16 %v5951_v1  ;;  %v3706_v19 = vld [vmem:[%s8471_s12 + $0x3a0] sm:$0xff]  ;;  %v3673_v1 = vld [vmem:[%s8471_s12 + $0x298] sm:$0xff] }
 0xe5f   : > { %v3502_v10 = vsel %vm1412_vm0, %v3460_v5, %v5947_v23  ;;  %v3501_v11 = vsel %vm1412_vm0, %v7450_v59, %v5948_v44  ;;  %v3504_v25 = vsel %vm1412_vm0, %v3472_v4, %v5952_v52  ;;  %v3503_v12 = vsel %vm1412_vm0, %v3466_v8, %v5953_v48  ;;  %v3716_v59 = vld [vmem:[%s8471_s12 + $0x3f0] sm:$0xff]  ;;  %v3658_v44 = vld [vmem:[%s8471_s12 + $0x220] sm:$0xff]  ;;  %v3705_v5 = vld [vmem:[%s8471_s12 + $0x398] sm:$0xff] }
 0xe60   : > { %3988 = vmatprep.mubr.f32.mxu1 %v3502_v10  ;;  %4058 = vmatprep.mubr.f32.mxu0 %v3504_v25  ;;  %v3690_v23 = vld [vmem:[%s8471_s12 + $0x320] sm:$0xff]  ;;  %v3657_v48 = vld [vmem:[%s8471_s12 + $0x218] sm:$0xff]  ;;  %v3672_v4 = vld [vmem:[%s8471_s12 + $0x290] sm:$0xff] }
 0xe61   : > { %3989 = vmatmul.mubr.f32.vlgmr.msra.gmra.mxu1 %v3501_v11  ;;  %4059 = vmatmul.mubr.f32.vlgmr.msra.gmra.mxu0 %v3503_v12  ;;  %v3689_v52 = vld [vmem:[%s8471_s12 + $0x318] sm:$0xff]  ;;  %v3704_v8 = vld [vmem:[%s8471_s12 + $0x390] sm:$0xff]  ;;  %v3703_v25 = vld [vmem:[%s8471_s12 + $0x388] sm:$0xff] }
 0xe62   : > { %5267 = vmatpush3.msra.mxu1 %v3669_v46  ;;  %5302 = vmatpush3.msra.mxu0 %v3701_v22  ;;  %v3656_v10 = vld [vmem:[%s8471_s12 + $0x210] sm:$0xff]  ;;  %v3671_v46 = vld [vmem:[%s8471_s12 + $0x288] sm:$0xff] }
 0xe63   : > { %5268 = vmatprep.subr.mxu1 %v3684_v26  ;;  %5303 = vmatprep.subr.mxu0 %v3716_v59  ;;  %v3688_v11 = vld [vmem:[%s8471_s12 + $0x310] sm:$0xff]  ;;  %v3655_v12 = vld [vmem:[%s8471_s12 + $0x208] sm:$0xff]  ;;  %v3670_v26 = vld [vmem:[%s8471_s12 + $0x280] sm:$0xff] }
 0xe64   : > { %5269 = vmatpush3.msra.mxu1 %v3668_v28  ;;  %5304 = vmatpush3.msra.mxu0 %v3700_v30  ;;  %v3687_v22 = vld [vmem:[%s8471_s12 + $0x308] sm:$0xff]  ;;  %v3702_v59 = vld [vmem:[%s8471_s12 + $0x380] sm:$0xff] }
 0xe65   : > { %5270 = vmatprep.subr.mxu1 %v3683_v13  ;;  %5305 = vmatprep.subr.mxu0 %v3715_v14  ;;  %v3654_v28 = vld [vmem:[%s8471_s12 + $0x200] sm:$0xff]  ;;  %v3749_v13 = vld [vmem:[%s8471_s12 + $0x4f8] sm:$0xff] }
 0xe66   : > { %5271 = vmatpush3.msra.mxu1 %v3667_v15  ;;  %5306 = vmatpush3.msra.mxu0 %v3699_v17  ;;  %v3686_v30 = vld [vmem:[%s8471_s12 + $0x300] sm:$0xff]  ;;  %v3781_v14 = vld [vmem:[%s8471_s12 + $0x5f8] sm:$0xff] }
 0xe67   : > { %5272 = vmatprep.subr.mxu1 %v3682_v31  ;;  %5307 = vmatprep.subr.mxu0 %v3714_v57 }
 0xe68   : > { %5273 = vmatpush3.msra.mxu1 %v3666_v49  ;;  %5308 = vmatpush3.msra.mxu0 %v3698_v43  ;;  %v3495_v43 = vrot.slane %v7477_v21, 6 }
 0xe69   : > { %5274 = vmatprep.subr.mxu1 %v3681_v60  ;;  %5309 = vmatprep.subr.mxu0 %v3713_v58  ;;  %v3489_v60 = vrot.slane %v7477_v21, 4 }
 0xe6a   : > { %5275 = vmatpush3.msra.mxu1 %v3665_v3  ;;  %5310 = vmatpush3.msra.mxu0 %v3697_v51 }
 0xe6b   : > { %5276 = vmatprep.subr.mxu1 %v3680_v6  ;;  %5311 = vmatprep.subr.mxu0 %v3712_v7 }
 0xe6c   : > { %5277 = vmatpush3.msra.mxu1 %v3664_v18  ;;  %5312 = vmatpush3.msra.mxu0 %v3696_v61 }
 0xe6d   : > { %5278 = vmatprep.subr.mxu1 %v3679_v36  ;;  %5313 = vmatprep.subr.mxu0 %v3711_v39  ;;  %v3765_v36 = vld [vmem:[%s8471_s12 + $0x578] sm:$0xff] }
 0xe6e   : > { %5279 = vmatpush3.msra.mxu1 %v3663_v40  ;;  %5314 = vmatpush3.msra.mxu0 %v3695_v37  ;;  %v3780_v37 = vld [vmem:[%s8471_s12 + $0x5f0] sm:$0xff] }
 0xe6f   : > { %5280 = vmatprep.subr.mxu1 %v3678_v9  ;;  %5315 = vmatprep.subr.mxu0 %v3710_v41  ;;  %v3764_v41 = vld [vmem:[%s8471_s12 + $0x570] sm:$0xff] }
 0xe70   : > { %5281 = vmatpush3.msra.mxu1 %v3662_v33  ;;  %5316 = vmatpush3.msra.mxu0 %v3694_v35  ;;  %v3779_v35 = vld [vmem:[%s8471_s12 + $0x5e8] sm:$0xff] }
 0xe71   : > { %5282 = vmatprep.subr.mxu1 %v3677_v50  ;;  %5317 = vmatprep.subr.mxu0 %v3709_v53  ;;  %v3483_v50 = vrot.slane %v7477_v21, 2 }
 0xe72   : > { %5283 = vmatpush3.msra.mxu1 %v3661_v32  ;;  %5318 = vmatpush3.msra.mxu0 %v3693_v24  ;;  %v3763_v32 = vld [vmem:[%s8471_s12 + $0x568] sm:$0xff] }
 0xe73   : > { %5284 = vmatprep.subr.mxu1 %v3676_v34  ;;  %5319 = vmatprep.subr.mxu0 %v3708_v55 }
 0xe74   : > { %5285 = vmatpush3.msra.mxu1 %v3660_v38  ;;  %5320 = vmatpush3.msra.mxu0 %v3692_v42  ;;  %v3733_v38 = vld [vmem:[%s8471_s12 + $0x478] sm:$0xff]  ;;  %v3778_v42 = vld [vmem:[%s8471_s12 + $0x5e0] sm:$0xff] }
 0xe75   : > { %5286 = vmatprep.subr.mxu1 %v3675_v54  ;;  %5321 = vmatprep.subr.mxu0 %v3707_v16  ;;  %v3514_v16 = vrot.slane %v7487_v47, 2 }
 0xe76   : > { %5287 = vmatpush3.msra.mxu1 %v3659_v56  ;;  %5322 = vmatpush3.msra.mxu0 %v3691_v0  ;;  %v3762_v56 = vld [vmem:[%s8471_s12 + $0x560] sm:$0xff]  ;;  %v3732_v0 = vld [vmem:[%s8471_s12 + $0x470] sm:$0xff] }
 0xe77   : > { %5288 = vmatprep.subr.mxu1 %v3674_v62  ;;  %5323 = vmatprep.subr.mxu0 %v3706_v19  ;;  %v3526_v62 = vrot.slane %v7487_v47, 6 }
 0xe78   : > { %5289 = vmatpush3.msra.mxu1 %v3658_v44  ;;  %5324 = vmatpush3.msra.mxu0 %v3690_v23  ;;  %v3777_v44 = vld [vmem:[%s8471_s12 + $0x5d8] sm:$0xff]  ;;  %v3747_v23 = vld [vmem:[%s8471_s12 + $0x4e8] sm:$0xff] }
 0xe79   : > { %5290 = vmatprep.subr.mxu1 %v3673_v1  ;;  %5325 = vmatprep.subr.mxu0 %v3705_v5  ;;  %v3761_v1 = vld [vmem:[%s8471_s12 + $0x558] sm:$0xff] }
 0xe7a   : > { %5291 = vmatpush3.msra.mxu1 %v3657_v48  ;;  %5326 = vmatpush3.msra.mxu0 %v3689_v52  ;;  %v3731_v48 = vld [vmem:[%s8471_s12 + $0x468] sm:$0xff]  ;;  %v3776_v52 = vld [vmem:[%s8471_s12 + $0x5d0] sm:$0xff] }
 0xe7b   : > { %5292 = vmatprep.subr.mxu1 %v3672_v4  ;;  %5327 = vmatprep.subr.mxu0 %v3704_v8  ;;  %v3746_v4 = vld [vmem:[%s8471_s12 + $0x4e0] sm:$0xff]  ;;  %v3760_v8 = vld [vmem:[%s8471_s12 + $0x550] sm:$0xff] }
 0xe7c   : > { %5293 = vmatpush3.msra.mxu1 %v3656_v10  ;;  %5328 = vmatpush3.msra.mxu0 %v3688_v11  ;;  %v3730_v10 = vld [vmem:[%s8471_s12 + $0x460] sm:$0xff]  ;;  %v3775_v11 = vld [vmem:[%s8471_s12 + $0x5c8] sm:$0xff] }
 0xe7d   : > { %5294 = vmatprep.subr.mxu1 %v3671_v46  ;;  %5329 = vmatprep.subr.mxu0 %v3703_v25  ;;  %v3745_v46 = vld [vmem:[%s8471_s12 + $0x4d8] sm:$0xff]  ;;  %v3759_v25 = vld [vmem:[%s8471_s12 + $0x548] sm:$0xff] }
 0xe7e   : > { %5295 = vmatpush3.msra.mxu1 %v3655_v12  ;;  %5330 = vmatpush3.msra.mxu0 %v3687_v22  ;;  %v3729_v12 = vld [vmem:[%s8471_s12 + $0x458] sm:$0xff]  ;;  %v3774_v22 = vld [vmem:[%s8471_s12 + $0x5c0] sm:$0xff] }
 0xe7f   : > { %5296 = vmatprep.subr.mxu1 %v3670_v26  ;;  %5331 = vmatprep.subr.mxu0 %v3702_v59  ;;  %v3744_v59 = vld [vmem:[%s8471_s12 + $0x4d0] sm:$0xff] }
 0xe80   : > { %5297 = vmatpush3.msra.mxu1 %v3654_v28  ;;  %5332 = vmatpush3.msra.mxu0 %v3686_v30  ;;  %v3758_v28 = vld [vmem:[%s8471_s12 + $0x540] sm:$0xff] }
 0xe81   : > { %5336 = vmatprep.subr.mxu1 %v3749_v13  ;;  %5371 = vmatprep.subr.mxu0 %v3781_v14  ;;  %v3728_v13 = vld [vmem:[%s8471_s12 + $0x450] sm:$0xff]  ;;  %v3773_v14 = vld [vmem:[%s8471_s12 + $0x5b8] sm:$0xff] }
 0xe97   : > { %v3374_v15 = vpop.xlane.xlu1 %3373 }
 0xe98   : > { %v3380_v17 = vmul.f32 0.015625, %v3374_v15  ;;  %v3743_v15 = vld [vmem:[%s8471_s12 + $0x4c8] sm:$0xff] }
 0xe9a   : > { %v7708_v31 = vsub.f32 %v7464_v27, %v3380_v17 }
 0xe9b   : > { %v5961_v57 = vpop.permute.xlu1 %5960 }
 0xe9c   : > { %v3407_v49 = vpop.xlane.xlu0 %3406  ;;  %v5963_v58 = vunpack.i.h.bf16 %v5961_v57  ;;  %v5962_v3 = vunpack.i.l.bf16 %v5961_v57  ;;  %v3392_v6 = vmul.f32 %v7708_v31, %v7708_v31  ;;  %v3727_v57 = vld [vmem:[%s8471_s12 + $0x448] sm:$0xff] }
 0xe9d   : > { %v3415_v51 = vmul.f32 0.015625, %v3407_v49  ;;  %v3772_v49 = vld [vmem:[%s8471_s12 + $0x5b0] sm:$0xff] }
 0xe9e   : > { %v3408_v18 = vsel %vm3013_vm3, %v3392_v6, 0.0  ;;  %v3508_v61 = vsel %vm1412_vm0, %v3495_v43, %v5962_v3  ;;  %v3507_v27 = vsel %vm1412_vm0, %v3489_v60, %v5963_v58  ;;  %v3742_v43 = vld [vmem:[%s8471_s12 + $0x4c0] sm:$0xff]  ;;  %v3756_v60 = vld [vmem:[%s8471_s12 + $0x530] sm:$0xff]  ;;  %v3741_v6 = vld [vmem:[%s8471_s12 + $0x4b8] sm:$0xff] }
 0xe9f   : > { %v3421_v7 = vadd.f32 1e-05, %v3415_v51  ;;  %3409 = vadd.xlane.f32.xlu1 %v3408_v18  ;;  %v7720_v39 = vpop.permute.xlu1 %5965  ;;  %4198 = vmatprep.mubr.f32.mxu0 %v3508_v61  ;;  %v3726_v3 = vld [vmem:[%s8471_s12 + $0x440] sm:$0xff]  ;;  %v3771_v51 = vld [vmem:[%s8471_s12 + $0x5a8] sm:$0xff]  ;;  %v3725_v18 = vld [vmem:[%s8471_s12 + $0x438] sm:$0xff] }
 0xea0   : > { %v5956_v40 = vpop.permute.xlu0 %5955  ;;  %4199 = vmatmul.mubr.f32.vlgmr.msra.gmra.mxu0 %v3507_v27  ;;  %v5967_v53 = vunpack.i.l.bf16 %v7720_v39  ;;  %v3770_v61 = vld [vmem:[%s8471_s12 + $0x5a0] sm:$0xff] }
 0xea1   : > { %6063 = vrsqrt.f32 %v3421_v7  ;;  %v5958_v9 = vunpack.i.h.bf16 %v5956_v40  ;;  %v5957_v33 = vunpack.i.l.bf16 %v5956_v40  ;;  %5372 = vmatpush3.msra.mxu0 %v3765_v36  ;;  %v3755_v7 = vld [vmem:[%s8471_s12 + $0x528] sm:$0xff]  ;;  %v3740_v40 = vld [vmem:[%s8471_s12 + $0x4b0] sm:$0xff] }
 0xea2   : > { %5373 = vmatprep.subr.mxu0 %v3780_v37  ;;  %v3556_v19 = vsel %vm1412_vm0, %v3514_v16, %v5967_v53  ;;  %v3754_v37 = vld [vmem:[%s8471_s12 + $0x520] sm:$0xff]  ;;  %v3723_v53 = vld [vmem:[%s8471_s12 + $0x428] sm:$0xff]  ;;  %v3737_v16 = vld [vmem:[%s8471_s12 + $0x498] sm:$0xff] }
 0xea3   : > { %v3505_v24 = vsel %vm1412_vm0, %v7477_v21, %v5958_v9  ;;  %5374 = vmatpush3.msra.mxu0 %v3764_v41  ;;  %v3506_v55 = vsel %vm1412_vm0, %v3483_v50, %v5957_v33  ;;  %v3748_v21 = vld [vmem:[%s8471_s12 + $0x4f0] sm:$0xff]  ;;  %v3769_v41 = vld [vmem:[%s8471_s12 + $0x598] sm:$0xff]  ;;  %v3739_v33 = vld [vmem:[%s8471_s12 + $0x4a8] sm:$0xff] }
 0xea4   : > { %v7738_v34 = vpop.permute.xlu0 %5970  ;;  %5375 = vmatprep.subr.mxu0 %v3779_v35  ;;  %4128 = vmatprep.mubr.f32.mxu1 %v3506_v55  ;;  %v3724_v9 = vld [vmem:[%s8471_s12 + $0x430] sm:$0xff]  ;;  %v3753_v35 = vld [vmem:[%s8471_s12 + $0x518] sm:$0xff] }
 0xea5   : > { %v5972_v54 = vunpack.i.l.bf16 %v7738_v34  ;;  %5376 = vmatpush3.msra.mxu0 %v3763_v32  ;;  %4129 = vmatmul.mubr.f32.vlgmr.msra.gmra.mxu1 %v3505_v24  ;;  %v3768_v32 = vld [vmem:[%s8471_s12 + $0x590] sm:$0xff]  ;;  %v3738_v24 = vld [vmem:[%s8471_s12 + $0x4a0] sm:$0xff] }
 0xea6   : > { %5337 = vmatpush3.msra.mxu1 %v3733_v38  ;;  %5377 = vmatprep.subr.mxu0 %v3778_v42  ;;  %v3752_v55 = vld [vmem:[%s8471_s12 + $0x510] sm:$0xff]  ;;  %v3722_v38 = vld [vmem:[%s8471_s12 + $0x420] sm:$0xff] }
 0xea7   : > { %5338 = vmatprep.subr.mxu1 %v3748_v21  ;;  %4268 = vmatprep.mubr.f32.mxu1 %v3556_v19  ;;  %v3558_v5 = vsel %vm1412_vm0, %v3526_v62, %v5972_v54  ;;  %v3767_v21 = vld [vmem:[%s8471_s12 + $0x588] sm:$0xff]  ;;  %v3721_v62 = vld [vmem:[%s8471_s12 + $0x418] sm:$0xff]  ;;  %v5973_v19 = vunpack.i.h.bf16 %v7738_v34  ;;  %v3720_v34 = vld [vmem:[%s8471_s12 + $0x410] sm:$0xff] }
 0xea8   : > { %5378 = vmatpush3.msra.mxu0 %v3762_v56  ;;  %5339 = vmatpush3.msra.mxu1 %v3732_v0  ;;  %v7897_v56 = vpop.permute.xlu0 %5980  ;;  %v3751_v0 = vld [vmem:[%s8471_s12 + $0x508] sm:$0xff] }
 0xea9   : > { %5379 = vmatprep.subr.mxu0 %v3777_v44  ;;  %5340 = vmatprep.subr.mxu1 %v3747_v23  ;;  %v3766_v44 = vld [vmem:[%s8471_s12 + $0x580] sm:$0xff] }
 0xeaa   : > { %5380 = vmatpush3.msra.mxu0 %v3761_v1  ;;  %4338 = vmatprep.mubr.f32.mxu0 %v3558_v5  ;;  %v3736_v1 = vld [vmem:[%s8471_s12 + $0x490] sm:$0xff]  ;;  %v3750_v5 = vld [vmem:[%s8471_s12 + $0x500] sm:$0xff] }
 0xeab   : > { %5341 = vmatpush3.msra.mxu1 %v3731_v48  ;;  %5381 = vmatprep.subr.mxu0 %v3776_v52  ;;  %v5982_v48 = vunpack.i.l.bf16 %v7897_v56  ;;  %v3520_v52 = vrot.slane %v7487_v47, 4 }
 0xeac   : > { %5342 = vmatprep.subr.mxu1 %v3746_v4  ;;  %5382 = vmatpush3.msra.mxu0 %v3760_v8  ;;  %v3845_v4 = vld [vmem:[%s8471_s12 + $0x7f8] sm:$0xff]  ;;  %v3735_v8 = vld [vmem:[%s8471_s12 + $0x488] sm:$0xff] }
 0xead   : > { %5343 = vmatpush3.msra.mxu1 %v3730_v10  ;;  %5383 = vmatprep.subr.mxu0 %v3775_v11  ;;  %v3557_v10 = vsel %vm1412_vm0, %v3520_v52, %v5973_v19  ;;  %v3829_v11 = vld [vmem:[%s8471_s12 + $0x778] sm:$0xff]  ;;  %v3835_v19 = vld [vmem:[%s8471_s12 + $0x7a8] sm:$0xff]  ;;  %v3788_v52 = vld [vmem:[%s8471_s12 + $0x630] sm:$0xff] }
 0xeae   : > { %v6064_v26 = vpop.eup %6063  ;;  %5344 = vmatprep.subr.mxu1 %v3745_v46  ;;  %5384 = vmatpush3.msra.mxu0 %v3759_v25  ;;  %v3549_v46 = vrot.slane %v7497_v29, 6  ;;  %v7932_v25 = vpop.permute.xlu1 %5975 }
 0xeaf   : > { %v3433_v30 = vmul.f32 %v6064_v26, %v7468_v45  ;;  %5345 = vmatpush3.msra.mxu1 %v3729_v12  ;;  %5385 = vmatprep.subr.mxu0 %v3774_v22  ;;  %v3757_v45 = vld [vmem:[%s8471_s12 + $0x538] sm:$0xff]  ;;  %v3719_v12 = vld [vmem:[%s8471_s12 + $0x408] sm:$0xff]  ;;  %v3844_v22 = vld [vmem:[%s8471_s12 + $0x7f0] sm:$0xff]  ;;  %v5968_v26 = vunpack.i.h.bf16 %v7720_v39 }
 0xeb0   : > { %5346 = vmatprep.subr.mxu1 %v3744_v59  ;;  %5386 = vmatpush3.msra.mxu0 %v3758_v28  ;;  %v3562_v59 = vsel %vm1412_vm0, %v3549_v46, %v5982_v48  ;;  %v3734_v28 = vld [vmem:[%s8471_s12 + $0x480] sm:$0xff]  ;;  %v3843_v39 = vld [vmem:[%s8471_s12 + $0x7e8] sm:$0xff]  ;;  %v3804_v48 = vld [vmem:[%s8471_s12 + $0x6b0] sm:$0xff] }
 0xeb1   : > { %v3443_v17 = vmul.f32 %v7421_v63, %v3433_v30  ;;  %5347 = vmatpush3.msra.mxu1 %v3728_v13  ;;  %5387 = vmatprep.subr.mxu0 %v3773_v14  ;;  %v3828_v30 = vld [vmem:[%s8471_s12 + $0x770] sm:$0xff]  ;;  %v3718_v13 = vld [vmem:[%s8471_s12 + $0x400] sm:$0xff]  ;;  %v5977_v14 = vunpack.i.l.bf16 %v7932_v25 }
 0xeb2   : > { %5348 = vmatprep.subr.mxu1 %v3743_v15  ;;  %5388 = vmatpush3.msra.mxu0 %v3757_v45  ;;  %v3813_v15 = vld [vmem:[%s8471_s12 + $0x6f8] sm:$0xff]  ;;  %v3827_v45 = vld [vmem:[%s8471_s12 + $0x768] sm:$0xff]  ;;  %v3832_v46 = vld [vmem:[%s8471_s12 + $0x790] sm:$0xff] }
 0xeb3   : > { %v7833_v58 = vadd.f32 %v7439_v20, %v3443_v17  ;;  %5349 = vmatpush3.msra.mxu1 %v3727_v57  ;;  %5389 = vmatprep.subr.mxu0 %v3772_v49  ;;  %v3797_v17 = vld [vmem:[%s8471_s12 + $0x678] sm:$0xff]  ;;  %v3555_v57 = vsel %vm1412_vm0, %v7487_v47, %v5968_v26  ;;  %v3537_v49 = vrot.slane %v7497_v29, 2  ;;  %v3786_v26 = vld [vmem:[%s8471_s12 + $0x620] sm:$0xff] }
 0xeb4   : > { %5350 = vmatprep.subr.mxu1 %v3742_v43  ;;  %5390 = vmatpush3.msra.mxu0 %v3756_v60  ;;  %v3842_v43 = vld [vmem:[%s8471_s12 + $0x7e0] sm:$0xff]  ;;  %v3812_v60 = vld [vmem:[%s8471_s12 + $0x6f0] sm:$0xff] }
 0xeb5   : > { %v3564_v27 = vrot.slane %v7833_v58, 1  ;;  %v3570_v36 = vrot.slane %v7833_v58, 3  ;;  %5351 = vmatpush3.msra.mxu1 %v3726_v3  ;;  %5391 = vmatprep.subr.mxu0 %v3771_v51  ;;  %v3576_v42 = vrot.slane %v7833_v58, 5  ;;  %v3582_v54 = vrot.slane %v7833_v58, 7  ;;  %v3826_v3 = vld [vmem:[%s8471_s12 + $0x760] sm:$0xff]  ;;  %v3796_v51 = vld [vmem:[%s8471_s12 + $0x670] sm:$0xff] }
 0xeb6   : > { %5352 = vmatprep.subr.mxu1 %v3741_v6  ;;  %5392 = vmatpush3.msra.mxu0 %v3755_v7  ;;  %v3560_v47 = vsel %vm1412_vm0, %v3537_v49, %v5977_v14  ;;  %v3841_v6 = vld [vmem:[%s8471_s12 + $0x7d8] sm:$0xff]  ;;  %v3811_v7 = vld [vmem:[%s8471_s12 + $0x6e8] sm:$0xff]  ;;  %v3830_v14 = vld [vmem:[%s8471_s12 + $0x780] sm:$0xff] }
 0xeb7   : > { %5353 = vmatpush3.msra.mxu1 %v3725_v18  ;;  %5393 = vmatprep.subr.mxu0 %v3770_v61  ;;  %v5984_v50 = vpack.i.bf16 %v3564_v27, %v3570_v36  ;;  %v5989_v23 = vpack.i.bf16 %v3576_v42, %v3582_v54  ;;  %v3825_v18 = vld [vmem:[%s8471_s12 + $0x758] sm:$0xff]  ;;  %v3795_v61 = vld [vmem:[%s8471_s12 + $0x668] sm:$0xff]  ;;  %v3840_v27 = vld [vmem:[%s8471_s12 + $0x7d0] sm:$0xff] }
 0xeb8   : > { %5354 = vmatprep.subr.mxu1 %v3740_v40  ;;  %5394 = vmatpush3.msra.mxu0 %v3754_v37  ;;  %v3810_v36 = vld [vmem:[%s8471_s12 + $0x6e0] sm:$0xff]  ;;  %v3824_v40 = vld [vmem:[%s8471_s12 + $0x750] sm:$0xff]  ;;  %v3821_v42 = vld [vmem:[%s8471_s12 + $0x738] sm:$0xff] }
 0xeb9   : > { %5355 = vmatpush3.msra.mxu1 %v3724_v9  ;;  %5395 = vmatprep.subr.mxu0 %v3769_v41  ;;  %v3794_v37 = vld [vmem:[%s8471_s12 + $0x660] sm:$0xff]  ;;  %v3839_v9 = vld [vmem:[%s8471_s12 + $0x7c8] sm:$0xff]  ;;  %v3809_v41 = vld [vmem:[%s8471_s12 + $0x6d8] sm:$0xff] }
 0xeba   : > { %5356 = vmatprep.subr.mxu1 %v3739_v33  ;;  %5396 = vmatpush3.msra.mxu0 %v3753_v35  ;;  %v3823_v33 = vld [vmem:[%s8471_s12 + $0x748] sm:$0xff]  ;;  %v3793_v35 = vld [vmem:[%s8471_s12 + $0x658] sm:$0xff] }
 0xebb   : > { %5357 = vmatpush3.msra.mxu1 %v3723_v53  ;;  %5985 = vrot.lane.b32.xlu0 %v5984_v50, %s8491_s1  ;;  %v3838_v50 = vld [vmem:[%s8471_s12 + $0x7c0] sm:$0xff]  ;;  %v3808_v53 = vld [vmem:[%s8471_s12 + $0x6d0] sm:$0xff]  ;;  %v3791_v54 = vld [vmem:[%s8471_s12 + $0x648] sm:$0xff] }
 0xebc   : > { %5397 = vmatprep.subr.mxu0 %v3768_v32  ;;  %5358 = vmatprep.subr.mxu1 %v3738_v24  ;;  %v3822_v32 = vld [vmem:[%s8471_s12 + $0x740] sm:$0xff]  ;;  %v3792_v24 = vld [vmem:[%s8471_s12 + $0x650] sm:$0xff]  ;;  %v3909_v49 = vld [vmem:[%s8471_s12 + $0x9f8] sm:$0xff] }
 0xebd   : > { %5398 = vmatpush3.msra.mxu0 %v3752_v55  ;;  %5359 = vmatpush3.msra.mxu1 %v3722_v38  ;;  %v3837_v55 = vld [vmem:[%s8471_s12 + $0x7b8] sm:$0xff]  ;;  %v3807_v38 = vld [vmem:[%s8471_s12 + $0x6c8] sm:$0xff] }
 0xebe   : > { %5399 = vmatprep.subr.mxu0 %v3767_v21  ;;  %5360 = vmatprep.subr.mxu1 %v3737_v16  ;;  %v3836_v21 = vld [vmem:[%s8471_s12 + $0x7b0] sm:$0xff]  ;;  %v3806_v16 = vld [vmem:[%s8471_s12 + $0x6c0] sm:$0xff] }
 0xebf   : > { %5400 = vmatpush3.msra.mxu0 %v3751_v0  ;;  %5361 = vmatpush3.msra.mxu1 %v3721_v62  ;;  %v3820_v0 = vld [vmem:[%s8471_s12 + $0x730] sm:$0xff]  ;;  %v3790_v62 = vld [vmem:[%s8471_s12 + $0x640] sm:$0xff] }
 0xec0   : > { %5990 = vrot.lane.b32.xlu0 %v5989_v23, %s8491_s1  ;;  %5401 = vmatprep.subr.mxu0 %v3766_v44  ;;  %v3805_v44 = vld [vmem:[%s8471_s12 + $0x6b8] sm:$0xff]  ;;  %v3819_v23 = vld [vmem:[%s8471_s12 + $0x728] sm:$0xff]  ;;  %s4792_s1 = sshll.u32 %s533_s20, 4  ;;  %s4793_s1 = int_to_ptr.vmem [resolvable:$true] %s4792_s1 }
 0xec1   : > { %5362 = vmatprep.subr.mxu1 %v3736_v1  ;;  %5402 = vmatpush3.msra.mxu0 %v3750_v5  ;;  %v3789_v1 = vld [vmem:[%s8471_s12 + $0x638] sm:$0xff]  ;;  %v3834_v5 = vld [vmem:[%s8471_s12 + $0x7a0] sm:$0xff]  ;;  %s6069_s23 = scalar_lea.vmem %s4793_s1, 16  ;;  %p6076_p1 = scmp.lt.s32.totalorder %s4793_s1, %s6074_s3 }
 0xec2   : > { %5363 = vmatpush3.msra.mxu1 %v3720_v34  ;;  %4339 = vmatmul.mubr.f32.vlgmr.msra.gmra.mxu0 %v3557_v10  ;;  %v3818_v34 = vld [vmem:[%s8471_s12 + $0x720] sm:$0xff]  ;;  %v3817_v10 = vld [vmem:[%s8471_s12 + $0x718] sm:$0xff]  ;;  %p6070_p12 = scmp.ne.s32.totalorder %s4793_s1, %s6069_s23  ;;  %p6077_p2 = scmp.lt.s32.totalorder %s6075_s18, %s6069_s23 }
 0xec3   : > { %5441 = vmatprep.subr.mxu0 %v3845_v4  ;;  %5364 = vmatprep.subr.mxu1 %v3735_v8  ;;  %v3833_v4 = vld [vmem:[%s8471_s12 + $0x798] sm:$0xff]  ;;  %v3803_v8 = vld [vmem:[%s8471_s12 + $0x6a8] sm:$0xff] }
 0xec4   : > { %5442 = vmatpush3.msra.mxu0 %v3829_v11  ;;  %4478 = vmatprep.mubr.f32.mxu0 %v3562_v59  ;;  %v3787_v11 = vld [vmem:[%s8471_s12 + $0x628] sm:$0xff]  ;;  %p6071_p13 = pnand %p6070_p12, %p6260_p5  ;;  %p6078_p3 = por %p6077_p2, %p6076_p1 }
 0xec5   : > { %5365 = vmatpush3.msra.mxu1 %v3719_v12  ;;  %5443 = vmatprep.subr.mxu0 %v3844_v22  ;;  %v3802_v12 = vld [vmem:[%s8471_s12 + $0x6a0] sm:$0xff]  ;;  %v3816_v22 = vld [vmem:[%s8471_s12 + $0x710] sm:$0xff]  ;;  %v3831_v59 = vld [vmem:[%s8471_s12 + $0x788] sm:$0xff] }
 0xec6   : > { %5366 = vmatprep.subr.mxu1 %v3734_v28  ;;  %5444 = vmatpush3.msra.mxu0 %v3828_v30  ;;  %v3801_v28 = vld [vmem:[%s8471_s12 + $0x698] sm:$0xff]  ;;  %v3815_v30 = vld [vmem:[%s8471_s12 + $0x708] sm:$0xff]  ;;  %p6072_p0 = pneg %p6071_p13 }
 0xec7   : > { %5367 = vmatpush3.msra.mxu1 %v3718_v13  ;;  %5445 = vmatprep.subr.mxu0 %v3843_v39  ;;  %v5983_v13 = vunpack.i.h.bf16 %v7897_v56  ;;  %v3785_v39 = vld [vmem:[%s8471_s12 + $0x618] sm:$0xff]  ;;  %v3814_v56 = vld [vmem:[%s8471_s12 + $0x700] sm:$0xff] }
 0xec8   : > { %4269 = vmatmul.mubr.f32.vlgmr.msra.gmra.mxu1 %v3555_v57  ;;  %5406 = vmatprep.subr.mxu1 %v3813_v15  ;;  %v3800_v15 = vld [vmem:[%s8471_s12 + $0x690] sm:$0xff]  ;;  %v3799_v57 = vld [vmem:[%s8471_s12 + $0x688] sm:$0xff]  ;;  %p6079_p4 = pnand %p6078_p3, %p6072_p0 }
 0xec9   : > { %5446 = vmatpush3.msra.mxu0 %v3827_v45  ;;  %5407 = vmatpush3.msra.mxu1 %v3797_v17  ;;  %v3784_v45 = vld [vmem:[%s8471_s12 + $0x610] sm:$0xff]  ;;  %v3543_v17 = vrot.slane %v7497_v29, 4 }
 0xeca   : > { %4408 = vmatprep.mubr.f32.mxu1 %v3560_v47  ;;  %5447 = vmatprep.subr.mxu0 %v3842_v43  ;;  %v5978_v47 = vunpack.i.h.bf16 %v7932_v25  ;;  %v3892_v25 = vld [vmem:[%s8471_s12 + $0x970] sm:$0xff] }
 0xecb   : > { %5408 = vmatprep.subr.mxu1 %v3812_v60  ;;  %5448 = vmatpush3.msra.mxu0 %v3826_v3  ;;  %v3561_v43 = vsel %vm1412_vm0, %v3543_v17, %v5983_v13  ;;  %v3783_v60 = vld [vmem:[%s8471_s12 + $0x608] sm:$0xff]  ;;  %v3893_v3 = vld [vmem:[%s8471_s12 + $0x978] sm:$0xff] }
 0xecc   : > { %5409 = vmatpush3.msra.mxu1 %v3796_v51  ;;  %5449 = vmatprep.subr.mxu0 %v3841_v6  ;;  %v3798_v51 = vld [vmem:[%s8471_s12 + $0x680] sm:$0xff]  ;;  %v3908_v6 = vld [vmem:[%s8471_s12 + $0x9f0] sm:$0xff]  ;;  %v3851_v13 = vld [vmem:[%s8471_s12 + $0x828] sm:$0xff] }
 0xecd   : > { %5410 = vmatprep.subr.mxu1 %v3811_v7  ;;  %5450 = vmatpush3.msra.mxu0 %v3825_v18  ;;  %v3782_v7 = vld [vmem:[%s8471_s12 + $0x600] sm:$0xff]  ;;  %v3877_v18 = vld [vmem:[%s8471_s12 + $0x8f8] sm:$0xff] }
 0xece   : > { %5411 = vmatpush3.msra.mxu1 %v3795_v61  ;;  %5451 = vmatprep.subr.mxu0 %v3840_v27  ;;  %v3861_v61 = vld [vmem:[%s8471_s12 + $0x878] sm:$0xff]  ;;  %v3907_v27 = vld [vmem:[%s8471_s12 + $0x9e8] sm:$0xff] }
 0xecf   : > { %5412 = vmatprep.subr.mxu1 %v3810_v36  ;;  %5452 = vmatpush3.msra.mxu0 %v3824_v40  ;;  %v3559_v36 = vsel %vm1412_vm0, %v7497_v29, %v5978_v47  ;;  %v3876_v40 = vld [vmem:[%s8471_s12 + $0x8f0] sm:$0xff]  ;;  %v3875_v29 = vld [vmem:[%s8471_s12 + $0x8e8] sm:$0xff]  ;;  %v3865_v17 = vld [vmem:[%s8471_s12 + $0x898] sm:$0xff] }
 0xed0   : > { %5413 = vmatpush3.msra.mxu1 %v3794_v37  ;;  %5453 = vmatprep.subr.mxu0 %v3839_v9  ;;  %v3891_v37 = vld [vmem:[%s8471_s12 + $0x968] sm:$0xff]  ;;  %v3860_v9 = vld [vmem:[%s8471_s12 + $0x870] sm:$0xff] }
 0xed1   : > { %5414 = vmatprep.subr.mxu1 %v3809_v41  ;;  %5454 = vmatpush3.msra.mxu0 %v3823_v33  ;;  %v3906_v41 = vld [vmem:[%s8471_s12 + $0x9e0] sm:$0xff]  ;;  %v3848_v47 = vld [vmem:[%s8471_s12 + $0x810] sm:$0xff] }
 0xed2   : > { %5415 = vmatpush3.msra.mxu1 %v3793_v35  ;;  %5455 = vmatprep.subr.mxu0 %v3838_v50  ;;  %v3890_v33 = vld [vmem:[%s8471_s12 + $0x960] sm:$0xff]  ;;  %v3859_v35 = vld [vmem:[%s8471_s12 + $0x868] sm:$0xff]  ;;  %v3905_v50 = vld [vmem:[%s8471_s12 + $0x9d8] sm:$0xff] }
 0xed3   : > { %5416 = vmatprep.subr.mxu1 %v3808_v53  ;;  %5456 = vmatpush3.msra.mxu0 %v3822_v32  ;;  %v3874_v53 = vld [vmem:[%s8471_s12 + $0x8e0] sm:$0xff]  ;;  %v3889_v32 = vld [vmem:[%s8471_s12 + $0x958] sm:$0xff] }
 0xed4   : > { %5417 = vmatpush3.msra.mxu1 %v3792_v24  ;;  %5457 = vmatprep.subr.mxu0 %v3837_v55  ;;  %v3858_v24 = vld [vmem:[%s8471_s12 + $0x860] sm:$0xff]  ;;  %v3904_v55 = vld [vmem:[%s8471_s12 + $0x9d0] sm:$0xff] }
 0xed5   : > { %5418 = vmatprep.subr.mxu1 %v3807_v38  ;;  %5458 = vmatpush3.msra.mxu0 %v3821_v42  ;;  %v3873_v38 = vld [vmem:[%s8471_s12 + $0x8d8] sm:$0xff]  ;;  %v3888_v42 = vld [vmem:[%s8471_s12 + $0x950] sm:$0xff] }
 0xed6   : > { %5419 = vmatpush3.msra.mxu1 %v3791_v54  ;;  %5459 = vmatprep.subr.mxu0 %v3836_v21  ;;  %v3857_v54 = vld [vmem:[%s8471_s12 + $0x858] sm:$0xff]  ;;  %v3903_v21 = vld [vmem:[%s8471_s12 + $0x9c8] sm:$0xff] }
 0xed7   : > { %5420 = vmatprep.subr.mxu1 %v3806_v16  ;;  %5460 = vmatpush3.msra.mxu0 %v3820_v0  ;;  %v3872_v16 = vld [vmem:[%s8471_s12 + $0x8d0] sm:$0xff]  ;;  %v3887_v0 = vld [vmem:[%s8471_s12 + $0x948] sm:$0xff] }
 0xed8   : > { %5421 = vmatpush3.msra.mxu1 %v3790_v62  ;;  %5461 = vmatprep.subr.mxu0 %v3835_v19  ;;  %v3856_v62 = vld [vmem:[%s8471_s12 + $0x850] sm:$0xff]  ;;  %v3902_v19 = vld [vmem:[%s8471_s12 + $0x9c0] sm:$0xff] }
 0xed9   : > { %5422 = vmatprep.subr.mxu1 %v3805_v44  ;;  %5462 = vmatpush3.msra.mxu0 %v3819_v23  ;;  %v3871_v44 = vld [vmem:[%s8471_s12 + $0x8c8] sm:$0xff]  ;;  %v3886_v23 = vld [vmem:[%s8471_s12 + $0x940] sm:$0xff] }
 0xeda   : > { %5423 = vmatpush3.msra.mxu1 %v3789_v1  ;;  %5463 = vmatprep.subr.mxu0 %v3834_v5  ;;  %v3855_v1 = vld [vmem:[%s8471_s12 + $0x848] sm:$0xff]  ;;  %v3901_v5 = vld [vmem:[%s8471_s12 + $0x9b8] sm:$0xff] }
 0xedb   : > { %5424 = vmatprep.subr.mxu1 %v3804_v48  ;;  %5464 = vmatpush3.msra.mxu0 %v3818_v34  ;;  %v3870_v48 = vld [vmem:[%s8471_s12 + $0x8c0] sm:$0xff]  ;;  %v3885_v34 = vld [vmem:[%s8471_s12 + $0x938] sm:$0xff] }
 0xedc   : > { %5425 = vmatpush3.msra.mxu1 %v3788_v52  ;;  %5465 = vmatprep.subr.mxu0 %v3833_v4  ;;  %v3854_v52 = vld [vmem:[%s8471_s12 + $0x840] sm:$0xff]  ;;  %v3900_v4 = vld [vmem:[%s8471_s12 + $0x9b0] sm:$0xff] }
 0xedd   : > { %5426 = vmatprep.subr.mxu1 %v3803_v8  ;;  %5466 = vmatpush3.msra.mxu0 %v3817_v10  ;;  %v3869_v8 = vld [vmem:[%s8471_s12 + $0x8b8] sm:$0xff]  ;;  %v3884_v10 = vld [vmem:[%s8471_s12 + $0x930] sm:$0xff] }
 0xede   : > { %5427 = vmatpush3.msra.mxu1 %v3787_v11  ;;  %5467 = vmatprep.subr.mxu0 %v3832_v46  ;;  %v3853_v11 = vld [vmem:[%s8471_s12 + $0x838] sm:$0xff]  ;;  %v3899_v46 = vld [vmem:[%s8471_s12 + $0x9a8] sm:$0xff] }
 0xedf   : > { %5428 = vmatprep.subr.mxu1 %v3802_v12  ;;  %5468 = vmatpush3.msra.mxu0 %v3816_v22  ;;  %v3868_v12 = vld [vmem:[%s8471_s12 + $0x8b0] sm:$0xff]  ;;  %v3883_v22 = vld [vmem:[%s8471_s12 + $0x928] sm:$0xff] }
 0xee0   : > { %5429 = vmatpush3.msra.mxu1 %v3786_v26  ;;  %5469 = vmatprep.subr.mxu0 %v3831_v59  ;;  %v3852_v26 = vld [vmem:[%s8471_s12 + $0x830] sm:$0xff]  ;;  %v3898_v59 = vld [vmem:[%s8471_s12 + $0x9a0] sm:$0xff] }
 0xee1   : > { %5430 = vmatprep.subr.mxu1 %v3801_v28  ;;  %5470 = vmatpush3.msra.mxu0 %v3815_v30  ;;  %v3867_v28 = vld [vmem:[%s8471_s12 + $0x8a8] sm:$0xff]  ;;  %v3882_v30 = vld [vmem:[%s8471_s12 + $0x920] sm:$0xff] }
 0xee2   : > { %5431 = vmatpush3.msra.mxu1 %v3785_v39  ;;  %5471 = vmatprep.subr.mxu0 %v3830_v14  ;;  %v3897_v39 = vld [vmem:[%s8471_s12 + $0x998] sm:$0xff]  ;;  %v3866_v14 = vld [vmem:[%s8471_s12 + $0x8a0] sm:$0xff] }
 0xee3   : > { %5432 = vmatprep.subr.mxu1 %v3800_v15  ;;  %5472 = vmatpush3.msra.mxu0 %v3814_v56  ;;  %v3881_v15 = vld [vmem:[%s8471_s12 + $0x918] sm:$0xff]  ;;  %v3850_v56 = vld [vmem:[%s8471_s12 + $0x820] sm:$0xff] }
 0xee4   : > { %5433 = vmatpush3.msra.mxu1 %v3784_v45  ;;  %4479 = vmatmul.mubr.f32.vlgmr.msra.gmra.mxu0 %v3561_v43  ;;  %v3896_v45 = vld [vmem:[%s8471_s12 + $0x990] sm:$0xff]  ;;  %v3895_v43 = vld [vmem:[%s8471_s12 + $0x988] sm:$0xff] }
 0xee5   : > { %5434 = vmatprep.subr.mxu1 %v3799_v57  ;;  %5511 = vmatprep.subr.mxu0 %v3909_v49  ;;  %v3880_v57 = vld [vmem:[%s8471_s12 + $0x910] sm:$0xff]  ;;  %v3849_v49 = vld [vmem:[%s8471_s12 + $0x818] sm:$0xff] }
 0xee6   : > { %5435 = vmatpush3.msra.mxu1 %v3783_v60  ;;  %5512 = vmatpush3.msra.mxu0 %v3893_v3  ;;  %v3864_v60 = vld [vmem:[%s8471_s12 + $0x890] sm:$0xff]  ;;  %v3879_v3 = vld [vmem:[%s8471_s12 + $0x908] sm:$0xff] }
 0xee7   : > { %5436 = vmatprep.subr.mxu1 %v3798_v51  ;;  %5513 = vmatprep.subr.mxu0 %v3908_v6  ;;  %v3894_v51 = vld [vmem:[%s8471_s12 + $0x980] sm:$0xff]  ;;  %v3863_v6 = vld [vmem:[%s8471_s12 + $0x888] sm:$0xff] }
 0xee8   : > { %5437 = vmatpush3.msra.mxu1 %v3782_v7  ;;  %5514 = vmatpush3.msra.mxu0 %v3892_v25  ;;  %v3878_v7 = vld [vmem:[%s8471_s12 + $0x900] sm:$0xff]  ;;  %v3847_v25 = vld [vmem:[%s8471_s12 + $0x808] sm:$0xff] }
 0xee9   : > { %4409 = vmatmul.mubr.f32.vlgmr.msra.gmra.mxu1 %v3559_v36  ;;  %5476 = vmatprep.subr.mxu1 %v3877_v18  ;;  %v3862_v18 = vld [vmem:[%s8471_s12 + $0x880] sm:$0xff] }
 0xeea   : > { %5477 = vmatpush3.msra.mxu1 %v3861_v61  ;;  %5515 = vmatprep.subr.mxu0 %v3907_v27  ;;  %v3846_v61 = vld [vmem:[%s8471_s12 + $0x800] sm:$0xff] }
 0xeeb   : > { %5478 = vmatprep.subr.mxu1 %v3876_v40  ;;  %5516 = vmatpush3.msra.mxu0 %v3891_v37 }
 0xeec   : > { %5479 = vmatpush3.msra.mxu1 %v3860_v9  ;;  %5517 = vmatprep.subr.mxu0 %v3906_v41 }
 0xeed   : > { %5480 = vmatprep.subr.mxu1 %v3875_v29  ;;  %5518 = vmatpush3.msra.mxu0 %v3890_v33  ;;  %v3568_v29 = vrot.slane %v7833_v58, 2 }
 0xeee   : > { %5481 = vmatpush3.msra.mxu1 %v3859_v35  ;;  %5519 = vmatprep.subr.mxu0 %v3905_v50  ;;  %v3917_v50 = vld [vmem:[%s8471_s12 + $0xa38] sm:$0xff] }
 0xeef   : > { %5482 = vmatprep.subr.mxu1 %v3874_v53  ;;  %5520 = vmatpush3.msra.mxu0 %v3889_v32  ;;  %v3916_v32 = vld [vmem:[%s8471_s12 + $0xa30] sm:$0xff] }
 0xef0   : > { %5483 = vmatpush3.msra.mxu1 %v3858_v24  ;;  %5521 = vmatprep.subr.mxu0 %v3904_v55 }
 0xef1   : > { %5484 = vmatprep.subr.mxu1 %v3873_v38  ;;  %5522 = vmatpush3.msra.mxu0 %v3888_v42  ;;  %v3580_v38 = vrot.slane %v7833_v58, 6  ;;  %v3574_v42 = vrot.slane %v7833_v58, 4 }
 0xef2   : > { %5485 = vmatpush3.msra.mxu1 %v3857_v54  ;;  %5523 = vmatprep.subr.mxu0 %v3903_v21  ;;  %v3915_v54 = vld [vmem:[%s8471_s12 + $0xa28] sm:$0xff] }
 0xef3   : > { %5486 = vmatprep.subr.mxu1 %v3872_v16  ;;  %5524 = vmatpush3.msra.mxu0 %v3887_v0  ;;  %v3913_v0 = vld [vmem:[%s8471_s12 + $0xa18] sm:$0xff] }
 0xef4   : > { %5487 = vmatpush3.msra.mxu1 %v3856_v62  ;;  %5525 = vmatprep.subr.mxu0 %v3902_v19  ;;  %v3912_v19 = vld [vmem:[%s8471_s12 + $0xa10] sm:$0xff] }
 0xef5   : > { %5488 = vmatprep.subr.mxu1 %v3871_v44  ;;  %5526 = vmatpush3.msra.mxu0 %v3886_v23  ;;  %v3911_v23 = vld [vmem:[%s8471_s12 + $0xa08] sm:$0xff] }
 0xef6   : > { %5489 = vmatpush3.msra.mxu1 %v3855_v1  ;;  %5527 = vmatprep.subr.mxu0 %v3901_v5  ;;  %v3910_v5 = vld [vmem:[%s8471_s12 + $0xa00] sm:$0xff] }
 0xef7   : > { %5490 = vmatprep.subr.mxu1 %v3870_v48  ;;  %5528 = vmatpush3.msra.mxu0 %v3885_v34  ;;  %v4699_v34 = vld [vmem:[%s8472_s13 + $0x20] sm:$0xff] }
 0xef8   : > { %5491 = vmatpush3.msra.mxu1 %v3854_v52  ;;  %5529 = vmatprep.subr.mxu0 %v3900_v4  ;;  %v4698_v52 = vld [vmem:[%s8472_s13 + $0x18] sm:$0xff]  ;;  %v4697_v4 = vld [vmem:[%s8472_s13 + $0x10] sm:$0xff] }
 0xef9   : > { %5492 = vmatprep.subr.mxu1 %v3869_v8  ;;  %5530 = vmatpush3.msra.mxu0 %v3884_v10  ;;  %v4696_v8 = vld [vmem:[%s8472_s13 + $0x8] sm:$0xff]  ;;  %v4695_v10 = vld [vmem:[%s8472_s13] sm:$0xff] }
 0xefa   : > { %5493 = vmatpush3.msra.mxu1 %v3853_v11  ;;  %5531 = vmatprep.subr.mxu0 %v3899_v46 }
 0xefb   : > { %5494 = vmatprep.subr.mxu1 %v3868_v12  ;;  %5532 = vmatpush3.msra.mxu0 %v3883_v22 }
 0xefc   : > { %5495 = vmatpush3.msra.mxu1 %v3852_v26  ;;  %5533 = vmatprep.subr.mxu0 %v3898_v59  ;;  %v6068_v26 = vld [vmem:[%s8474_s15 + $0x8] sm:$0x3] }
 0xefd   : > { %5496 = vmatprep.subr.mxu1 %v3867_v28  ;;  %5534 = vmatpush3.msra.mxu0 %v3882_v30  ;;  %v3919_v59 = vrot.slane %v6068_v26, 1 }
 0xefe   : > { %5497 = vmatpush3.msra.mxu1 %v3851_v13  ;;  %5535 = vmatprep.subr.mxu0 %v3897_v39 }
 0xeff   : > { %5498 = vmatprep.subr.mxu1 %v3866_v14  ;;  %5536 = vmatpush3.msra.mxu0 %v3881_v15 }
 0xf00   : > { %5499 = vmatpush3.msra.mxu1 %v3850_v56  ;;  %5537 = vmatprep.subr.mxu0 %v3896_v45 }
 0xf01   : > { %5500 = vmatprep.subr.mxu1 %v3865_v17  ;;  %5538 = vmatpush3.msra.mxu0 %v3880_v57 }
 0xf02   : > { %5501 = vmatpush3.msra.mxu1 %v3849_v49  ;;  %5539 = vmatprep.subr.mxu0 %v3895_v43 }
 0xf03   : > { %5502 = vmatprep.subr.mxu1 %v3864_v60  ;;  %5540 = vmatpush3.msra.mxu0 %v3879_v3 }
 0xf04   : > { %5503 = vmatpush3.msra.mxu1 %v3848_v47  ;;  %5541 = vmatprep.subr.mxu0 %v3894_v51 }
 0xf05   : > { %5504 = vmatprep.subr.mxu1 %v3863_v6  ;;  %5542 = vmatpush3.msra.mxu0 %v3878_v7 }
 0xf06   : > { %5505 = vmatpush3.msra.mxu1 %v3847_v25  ;;  %5879 = vmatprep.subr.mxu0 %v6131_v2 }
 0xf07   : > { %5506 = vmatprep.subr.mxu1 %v3862_v18 }
 0xf08   : > { %5507 = vmatpush3.msra.mxu1 %v3846_v61 }
 0xf09   : > { %5860 = vmatprep.subr.mxu1 %v6131_v2 }
 0xf21   : > { %v5228_v11 = vpop.f32.mrf.mxu1  ;;  %v5263_v46 = vpop.f32.mrf.mxu0 }
 0xf23   : > { %v5229_v12 = vpop.f32.mrf.mxu1  ;;  %v5264_v30 = vpop.f32.mrf.mxu0 }
 0xf24   : > { %v5230_v28 = vadd.f32 %v5229_v12, %v5228_v11  ;;  %v5265_v56 = vadd.f32 %v5264_v30, %v5263_v46 }
 0xf26   : > { %v3991_v14 = vadd.f32 %v5230_v28, %v3919_v59 }
 0xf28   : > { %v3410_v27 = vpop.xlane.xlu1 %3409 }
 0xf29   : > { %v3416_v36 = vmul.f32 0.015625, %v3410_v27 }
 0xf2b   : > { %v3422_v40 = vadd.f32 1e-05, %v3416_v36 }
 0xf2d   : > { %6065 = vrsqrt.f32 %v3422_v40  ;;  %v5986_v37 = vpop.permute.xlu0 %5985 }
 0xf2e   : > { %v5988_v9 = vunpack.i.h.bf16 %v5986_v37  ;;  %v5987_v41 = vunpack.i.l.bf16 %v5986_v37 }
 0xf30   : > { %v3587_v33 = vsel %vm1412_vm0, %v3568_v29, %v5987_v41  ;;  %v3586_v35 = vsel %vm1412_vm0, %v7833_v58, %v5988_v9  ;;  %v3914_v58 = vld [vmem:[%s8471_s12 + $0xa20] sm:$0xff] }
 0xf31   : > { %4548 = vmatprep.mubr.f32.mxu1 %v3587_v33 }
 0xf32   : > { %v5991_v53 = vpop.permute.xlu0 %5990  ;;  %4549 = vmatmul.mubr.f32.vlgmr.msra.gmra.mxu1 %v3586_v35 }
 0xf33   : > { %v5993_v24 = vunpack.i.h.bf16 %v5991_v53  ;;  %v5992_v55 = vunpack.i.l.bf16 %v5991_v53  ;;  %5861 = vmatpush3.msra.mxu1 %v3917_v50  ;;  %5876 = vmatprep.mubr.msk.f32.mxu1 %vm6135_vm5, %v6131_v2 }
 0xf34   : > { %5862 = vmatprep.subr.mxu1 %v6131_v2 }
 0xf35   : > { %v3589_v21 = vsel %vm1412_vm0, %v3580_v38, %v5992_v55  ;;  %v3588_v16 = vsel %vm1412_vm0, %v3574_v42, %v5993_v24  ;;  %5863 = vmatpush3.msra.mxu1 %v3916_v32 }
 0xf36   : > { %4618 = vmatprep.mubr.f32.mxu0 %v3589_v21  ;;  %5864 = vmatprep.subr.mxu1 %v6131_v2 }
 0xf37   : > { %4619 = vmatmul.mubr.f32.vlgmr.msra.gmra.mxu0 %v3588_v16  ;;  %5865 = vmatpush3.msra.mxu1 %v3915_v54  ;;  %v4703_v16 = vld [vmem:[%s8473_s14] sm:$0x1] }
 0xf38   : > { %5866 = vmatprep.subr.mxu1 %v6131_v2  ;;  %5895 = vmatprep.mubr.msk.f32.mxu0 %vm6135_vm5, %v6131_v2 }
 0xf39   : > { %5867 = vmatpush3.msra.mxu1 %v3914_v58 }
 0xf3a   : > { %v6066_v62 = vpop.eup %6065  ;;  %5868 = vmatprep.subr.mxu1 %v6131_v2 }
 0xf3b   : > { %v3434_v44 = vmul.f32 %v6066_v62, %v7708_v31  ;;  %5869 = vmatpush3.msra.mxu1 %v3913_v0  ;;  %v4702_v31 = vld [vmem:[%s8472_s13 + $0x38] sm:$0xff] }
 0xf3c   : > { %5870 = vmatprep.subr.mxu1 %v6131_v2  ;;  %5880 = vmatpush3.msra.mxu0 %v4702_v31 }
 0xf3d   : > { %5871 = vmatpush3.msra.mxu1 %v3912_v19  ;;  %v3444_v1 = vmul.f32 %v7421_v63, %v3434_v44  ;;  %v4701_v63 = vld [vmem:[%s8472_s13 + $0x30] sm:$0xff]  ;;  %5881 = vmatprep.subr.mxu0 %v6131_v2 }
 0xf3e   : > { %5872 = vmatprep.subr.mxu1 %v6131_v2  ;;  %5882 = vmatpush3.msra.mxu0 %v4701_v63 }
 0xf3f   : > { %5873 = vmatpush3.msra.mxu1 %v3911_v23  ;;  %v3454_v48 = vadd.f32 %v7439_v20, %v3444_v1  ;;  %v4700_v20 = vld [vmem:[%s8472_s13 + $0x28] sm:$0xff]  ;;  %5883 = vmatprep.subr.mxu0 %v6131_v2 }
 0xf40   : > { %5874 = vmatprep.subr.mxu1 %v6131_v2  ;;  %5884 = vmatpush3.msra.mxu0 %v4700_v20 }
 0xf41   : > { %5875 = vmatpush3.msra.mxu1 %v3910_v5  ;;  %5885 = vmatprep.subr.mxu0 %v6131_v2 }
 0xf42   : > { %5877 = vmatmul.mubr.msk.f32.vlgmr.msra.gmra.mxu1 %vm1412_vm0, %v3454_v48  ;;  %5886 = vmatpush3.msra.mxu0 %v4699_v34 }
 0xf43   : > { %5887 = vmatprep.subr.mxu0 %v6131_v2 }
 0xf44   : > { %5888 = vmatpush3.msra.mxu0 %v4698_v52 }
 0xf45   : > { %5889 = vmatprep.subr.mxu0 %v6131_v2 }
 0xf46   : > { %5890 = vmatpush3.msra.mxu0 %v4697_v4 }
 0xf47   : > { %5891 = vmatprep.subr.mxu0 %v6131_v2 }
 0xf48   : > { %5892 = vmatpush3.msra.mxu0 %v4696_v8 }
 0xf49   : > { %5893 = vmatprep.subr.mxu0 %v6131_v2  ;;  %v4061_v2 = vadd.f32 %v5265_v56, %v3991_v14 }
 0xf4a   : > { %5894 = vmatpush3.msra.mxu0 %v4695_v10 }
 0xf60   : > { %v5333_v13 = vpop.f32.mrf.mxu0 }
 0xf62   : > { %v5334_v45 = vpop.f32.mrf.mxu0 }
 0xf63   : > { %v5335_v3 = vadd.f32 %v5334_v45, %v5333_v13 }
 0xf65   : > { %v5298_v22 = vpop.f32.mrf.mxu1 }
 0xf67   : > { %v5299_v39 = vpop.f32.mrf.mxu1 }
 0xf68   : > { %v5300_v17 = vadd.f32 %v5299_v39, %v5298_v22 }
 0xf6a   : > { %v4131_v43 = vadd.f32 %v5300_v17, %v4061_v2 }
 0xf6c   : > { %v4201_v6 = vadd.f32 %v5335_v3, %v4131_v43 }
 0xf82   : > { %v5403_v57 = vpop.f32.mrf.mxu0 }
 0xf84   : > { %v5404_v47 = vpop.f32.mrf.mxu0 }
 0xf85   : > { %v5405_v27 = vadd.f32 %v5404_v47, %v5403_v57 }
 0xf88   : > { %v5368_v15 = vpop.f32.mrf.mxu1 }
 0xf8a   : > { %v5369_v49 = vpop.f32.mrf.mxu1 }
 0xf8b   : > { %v5370_v51 = vadd.f32 %v5369_v49, %v5368_v15 }
 0xf8d   : > { %v4271_v18 = vadd.f32 %v5370_v51, %v4201_v6 }
 0xf8f   : > { %v4341_v37 = vadd.f32 %v5405_v27, %v4271_v18 }
 0xfa4   : > { %v5473_v7 = vpop.f32.mrf.mxu0 }
 0xfa6   : > { %v5474_v36 = vpop.f32.mrf.mxu0 }
 0xfa7   : > { %v5475_v35 = vadd.f32 %v5474_v36, %v5473_v7 }
 0xfa9   : > { %v5438_v60 = vpop.f32.mrf.mxu1 }
 0xfab   : > { %v5439_v25 = vpop.f32.mrf.mxu1 }
 0xfac   : > { %v5440_v40 = vadd.f32 %v5439_v25, %v5438_v60 }
 0xfae   : > { %v4411_v29 = vadd.f32 %v5440_v40, %v4341_v37 }
 0xfb0   : > { %v4481_v53 = vadd.f32 %v5475_v35, %v4411_v29 }
 0xff2   : > { %v5508_v61 = vpop.f32.mrf.mxu1 }
 0xff4   : > { %v5509_v41 = vpop.f32.mrf.mxu1 }
 0xff5   : > { %v5510_v50 = vadd.f32 %v5509_v41, %v5508_v61 }
 0xff7   : > { %v5543_v9 = vpop.f32.mrf.mxu0  ;;  %v4551_v24 = vadd.f32 %v5510_v50, %v4481_v53 }
 0xff9   : > { %v5544_v33 = vpop.f32.mrf.mxu0 }
 0xffa   : > { %v5545_v32 = vadd.f32 %v5544_v33, %v5543_v9 }
 0xffc   : > { %v4621_v55 = vadd.f32 %v5545_v32, %v4551_v24 }
0x1002   : > { %v4690_v38 = vpop.f32.mrf.mxu1 }
0x1003   : > { %v4691_v42 = vadd.f32 %v4690_v38, %v4621_v55 }
0x1004   : > { %v5878_v54 = vpop.f32.mrf.mxu1 }
0x1005   : > { %v4694_v21 = vmax.f32 %v4691_v42, 0.0 }
0x1007   : > { %5896 = vmatmul.mubr.msk.f32.vlgmr.msra.gmra.mxu0 %vm1412_vm0, %v4694_v21 }
0x10c7   : > { %v4773_v58 = vpop.f32.mrf.mxu0 }
0x10c8   : > { %v4774_v0 = vadd.f32 %v4773_v58, %v4703_v16 }
0x10c9   : > { %v5897_v62 = vpop.f32.mrf.mxu0 }
0x10ca   : > { %4778 = vst.msk [vmem:[%s533_s20] sm:$0x1] %vm4777_vm6, %v4774_v0 }
0x10cb   : > { %6082 = shalt.err (!%p6079_p4)
}
0x10cc   : > { %s6083_s19 = scalar_lea.hbm %s8424_s29, 16  ;;  %s6087_s26 = scalar_lea.hbm %s8475_s16, 32 }
0x10cd   : > { %p6084_p7 = scmp.ne.s32.totalorder %s8424_s29, %s6083_s19  ;;  %p6088_p10 = scmp.lt.s32.totalorder %s8424_s29, %s8475_s16 }
0x10ce   : > { %p6089_p11 = scmp.lt.s32.totalorder %s6087_s26, %s6083_s19 }
0x10cf   : > { %p6085_p8 = pnand %p6084_p7, %p6260_p5 }
0x10d0   : > { %p6090_p12 = por %p6089_p11, %p6088_p10 }
0x10d1   : > { %p6086_p9 = pneg %p6085_p8 }
0x10d3   : > { %p6091_p13 = pnand %p6090_p12, %p6086_p9 }
0x10d5   : > { %6094 = shalt.err (!%p6091_p13)
}
0x10d6   : > { %5900 = dma.vmem_to_hbm [thread:$0]  (%p6260_p5), %s4793_s1, 16, %s8424_s29, %s4780_s2  }
0x10d7 PF: > { %p5906_p0 = scmp.ge.s32.totalorder %s6129_s24, 2  ;;  %s4804_s23 = sand.u32 1, %s6117_s21  }
0x10d8   : > { %s4805_s3 = scalar_lea.sflag [#allocation3], %s4804_s23 }
0x10d9   : > { %p5903_p1 = pnand %p5906_p0, %p6264_p6 }
0x10db   : > { %p5904_p2 = pneg %p5903_p1 }
0x10dd   : > { %6112 = dma.done.wait (%p5904_p2), %s4805_s3, 16  }
0x10de   : > { %6114 = vsyncadd (%p5904_p2), %s4805_s3, 4294967280  ;;  %s8492_s18 = sld [smem:[#allocation5_spill]]  ;;  %p26_p3 = scmp.ge.s32.totalorder %s6247_s27, 4  }
0x10df   : > { %s8493_s23 = sld [smem:[#allocation6_spill]]  ;;  %s8494_s21 = smov %s6121_s22 }
0x10e0   : > { %s8496_s24 = smov %s6247_s27  ;;  %28 = sbr.rel (!%p26_p3) target bundleno = 8 (0x8), region = 122 }
0x10e4   : > { %s8495_s22 = smov %s8492_s18 }
0x10e5   :  { %4809 = vsyncpa [#allocation3], 1 }
0x10e6   :  { %4811 = vsyncpa [#allocation3 + $0x1], 1 }

</bundles_post_ra>
